<compile_context>
chip_gen: v7x
topology: tpu7x:2x2x1
jax: 0.10.0
libtpu: 0.0.40
codegen_flags: <defaults>
</compile_context>

<pallas_src>
import functools
import math

import jax
import jax.numpy as jnp
from jax.experimental import pallas as pl
from jax.experimental.pallas import tpu as pltpu


def _round_up(x, m):
    return ((x + m - 1) // m) * m


def _num_batch_blocks(b_pad):
    """Split the batch into 2 blocks only on multi-TensorCore chips (v7x)."""
    try:
        kind = jax.devices()[0].device_kind.lower()
    except Exception:  # pragma: no cover - defensive
        kind = ""
    if "v7" in kind and b_pad >= 16 and (b_pad // 2) % 8 == 0:
        return 2
    return 1


def _resident_spec(shape, index_map):
    """Constant-index resident operand; request single buffering when supported."""
    try:
        return pl.BlockSpec(shape, index_map, pipeline_mode=pl.Buffered(1))
    except (TypeError, AttributeError):
        return pl.BlockSpec(shape, index_map)


# ----------------------------------------------------------------------------
# Tiled matmul + bias kernel (used for the hoisted input projection and the FC)
# ----------------------------------------------------------------------------
def _matmul_bias_kernel(x_ref, w_ref, b_ref, o_ref, acc_ref):
    @pl.when(pl.program_id(2) == 0)
    def _():
        acc_ref[...] = jnp.zeros_like(acc_ref)

    acc_ref[...] += jnp.dot(x_ref[...], w_ref[...],
                            preferred_element_type=jnp.float32)

    @pl.when(pl.program_id(2) == pl.num_programs(2) - 1)
    def _():
        o_ref[...] = (acc_ref[...] + b_ref[...]).astype(o_ref.dtype)


def matmul_bias(x, w_t, b, *, out_dtype=jnp.float32,
                compute_dtype=jnp.bfloat16, tm=128, tn=512, tk=512):
    """(M, K) @ (K, N) + b, tiled for the MXU.  Pads to tile multiples internally."""
    M, K = x.shape
    K2, N = w_t.shape
    assert K == K2
    tm = min(tm, _round_up(M, 8))
    tn = min(tn, _round_up(N, 128))
    tk = min(tk, _round_up(K, 128))
    Mp, Kp, Np = _round_up(M, tm), _round_up(K, tk), _round_up(N, tn)

    x_p = jnp.pad(x.astype(compute_dtype), ((0, Mp - M), (0, Kp - K)))
    w_p = jnp.pad(w_t.astype(compute_dtype), ((0, Kp - K), (0, Np - N)))
    b_p = jnp.pad(b.astype(jnp.float32), (0, Np - N)).reshape(1, Np)

    out = pl.pallas_call(
        _matmul_bias_kernel,
        out_shape=jax.ShapeDtypeStruct((Mp, Np), out_dtype),
        grid_spec=pltpu.PrefetchScalarGridSpec(
            num_scalar_prefetch=0,
            grid=(Mp // tm, Np // tn, Kp // tk),
            in_specs=[
                pl.BlockSpec((tm, tk), lambda i, j, k: (i, k)),
                pl.BlockSpec((tk, tn), lambda i, j, k: (k, j)),
                pl.BlockSpec((1, tn), lambda i, j, k: (0, j)),
            ],
            out_specs=pl.BlockSpec((tm, tn), lambda i, j, k: (i, j)),
            scratch_shapes=[pltpu.VMEM((tm, tn), jnp.float32)],
        ),
        compiler_params=pltpu.CompilerParams(
            dimension_semantics=("parallel", "parallel", "arbitrary")),
    )(x_p, w_p, b_p)
    return out[:M, :N]


# ----------------------------------------------------------------------------
# LSTM recurrence kernel: time-blocked grid, carry in VMEM scratch.
# Inputs are the precomputed bf16 gates_x (x @ W_ih^T + bias); only h @ W_hh^T runs here,
# evaluated per gate against a 128-aligned column slice of the resident W_hh^T.
# ----------------------------------------------------------------------------
def _lstm_scan_kernel(gx_ref, h0_ref, c0_ref, whh_ref,
                      y_ref, hT_ref, cT_ref, h_sc, c_sc,
                      *, hidden_pad, time_block, seq_len):
    t_blk = pl.program_id(1)

    @pl.when(t_blk == 0)
    def _():
        h_sc[...] = h0_ref[...]
        c_sc[...] = c0_ref[...]

    Hp = hidden_pad

    def _sig(x):
        # sigmoid(x) == 0.5*tanh(0.5*x)+0.5: one EUP pass instead of exp + reciprocal.
        return 0.5 * jnp.tanh(0.5 * x) + 0.5

    def step(i, carry):
        h_prev = h_sc[...]                       # (BB, Hp) fp32
        c_prev = c_sc[...]
        h_cd = h_prev.astype(whh_ref.dtype)      # bf16 MXU operand
        gx_t = gx_ref[i]                         # (BB, 4Hp) bf16

        def pre(g):
            lo = g * Hp                          # 128-lane-aligned gate slice
            return (gx_t[:, lo:lo + Hp].astype(jnp.float32)
                    + jnp.dot(h_cd, whh_ref[:, lo:lo + Hp],
                              preferred_element_type=jnp.float32))

        i_g = _sig(pre(0))
        f_g = _sig(pre(1))
        g_g = jnp.tanh(pre(2))
        o_g = _sig(pre(3))
        c_new = f_g * c_prev + i_g * g_g
        h_new = o_g * jnp.tanh(c_new)

        if seq_len % time_block != 0:
            # Mask out padded timesteps so the final carry matches the true last step.
            m = ((t_blk * time_block + i) < seq_len).astype(jnp.float32)
            c_new = m * c_new + (1.0 - m) * c_prev
            h_new = m * h_new + (1.0 - m) * h_prev

        h_sc[...] = h_new
        c_sc[...] = c_new
        y_ref[i] = h_new.astype(y_ref.dtype)     # VMEM store; HBM writeback once/block
        return carry

    unroll = True if time_block <= 16 else 8
    jax.lax.fori_loop(0, time_block, step, 0, unroll=unroll)

    @pl.when(t_blk == pl.num_programs(1) - 1)
    def _():
        hT_ref[...] = h_sc[...]
        cT_ref[...] = c_sc[...]


def lstm_layer(gx, h0_p, c0_p, whh_t_p, *, seq_len, time_block, batch_block):
    """gx: (T_pad, B_pad, 4Hp) bf16 precomputed input gates; h0/c0: (B_pad, Hp) fp32;
    whh_t_p: (Hp, 4Hp) compute dtype.  Returns y (T_pad, B_pad, Hp) bf16, hT, cT fp32."""
    T_pad, B_pad, G = gx.shape
    Hp = G // 4
    TT, BB = time_block, batch_block
    nb, nt = B_pad // BB, T_pad // TT

    # VMEM budget: resident W_hh (budget 2 bufs in case Buffered(1) is unavailable)
    # + double-buffered gx/y blocks + h0/c0/hT/cT + fp32 carry scratch.
    est = (Hp * G * 2 * 2
           + TT * BB * G * 2 * 2
           + TT * BB * Hp * 2 * 2
           + 6 * BB * Hp * 4 * 2)
    vmem_limit = min(100 * 1024 * 1024, max(32 * 1024 * 1024, int(est * 1.5)))

    kernel = functools.partial(_lstm_scan_kernel, hidden_pad=Hp,
                               time_block=TT, seq_len=seq_len)
    y, hT, cT = pl.pallas_call(
        kernel,
        out_shape=(jax.ShapeDtypeStruct((T_pad, B_pad, Hp), whh_t_p.dtype),
                   jax.ShapeDtypeStruct((B_pad, Hp), jnp.float32),
                   jax.ShapeDtypeStruct((B_pad, Hp), jnp.float32)),
        grid_spec=pltpu.PrefetchScalarGridSpec(
            num_scalar_prefetch=0,
            grid=(nb, nt),                                  # (batch blocks, time blocks)
            in_specs=[
                pl.BlockSpec((TT, BB, G), lambda b, t: (t, b, 0)),
                pl.BlockSpec((BB, Hp), lambda b, t: (b, 0)),
                pl.BlockSpec((BB, Hp), lambda b, t: (b, 0)),
                _resident_spec((Hp, G), lambda b, t: (0, 0)),  # W_hh^T resident, 1 buf
            ],
            out_specs=[
                pl.BlockSpec((TT, BB, Hp), lambda b, t: (t, b, 0)),
                pl.BlockSpec((BB, Hp), lambda b, t: (b, 0)),
                pl.BlockSpec((BB, Hp), lambda b, t: (b, 0)),
            ],
            scratch_shapes=[pltpu.VMEM((BB, Hp), jnp.float32),
                            pltpu.VMEM((BB, Hp), jnp.float32)],
        ),
        # Time must stay "arbitrary" (sequential carry); batch blocks are independent.
        compiler_params=pltpu.CompilerParams(
            dimension_semantics=("parallel", "arbitrary"),
            vmem_limit_bytes=vmem_limit),
    )(gx, h0_p, c0_p, whh_t_p)
    return y, hT, cT


# ----------------------------------------------------------------------------
# Weight preprocessing: gate-blocked padding so gate slices are 128-aligned.
# ----------------------------------------------------------------------------
def _gate_block_pad(w_ih, w_hh, bias, H, Hp, in_pad):
    """w_ih: (4H, In) -> W_ih^T padded (in_pad, 4Hp); w_hh: (4H, H) -> (Hp, 4Hp);
    bias: (4H,) -> (4Hp,).  Padded rows/cols are zero, keeping padded h/c at 0."""
    In = w_ih.shape[1]
    w_ih4 = jnp.pad(w_ih.reshape(4, H, In), ((0, 0), (0, Hp - H), (0, in_pad - In)))
    wih_t = jnp.transpose(w_ih4, (2, 0, 1)).reshape(in_pad, 4 * Hp)
    w_hh4 = jnp.pad(w_hh.reshape(4, H, H), ((0, 0), (0, Hp - H), (0, Hp - H)))
    whh_t = jnp.transpose(w_hh4, (2, 0, 1)).reshape(Hp, 4 * Hp)
    b_p = jnp.pad(bias.reshape(4, H), ((0, 0), (0, Hp - H))).reshape(4 * Hp)
    return wih_t, whh_t, b_p


def prepare_params(params, *, num_layers, compute_dtype=jnp.bfloat16):
    """One-time (outside jit) weight layout prep: gate-blocked padding, transposes,
    bf16 casts.  Removes per-call transpose/pad glue from the forward."""
    H = params["w_hh_0"].shape[1]
    E = params["w_ih_0"].shape[1]
    Hp = _round_up(H, 128)
    prepped = {
        "embedding": params["embedding"].astype(compute_dtype),          # (V, E) bf16
        "fc_w_t": jnp.transpose(params["fc_w"]).astype(compute_dtype),   # (H, V) bf16
        "fc_b": params["fc_b"].astype(jnp.float32),
    }
    for layer in range(num_layers):
        in_dim = E if layer == 0 else Hp
        bias = params[f"b_ih_{layer}"] + params[f"b_hh_{layer}"]
        wih_t, whh_t, b_p = _gate_block_pad(params[f"w_ih_{layer}"],
                                            params[f"w_hh_{layer}"],
                                            bias, H, Hp, in_dim)
        prepped[f"wih_t_{layer}"] = wih_t.astype(compute_dtype)
        prepped[f"whh_t_{layer}"] = whh_t.astype(compute_dtype)
        prepped[f"b_{layer}"] = b_p.astype(jnp.float32)
    return prepped


# ----------------------------------------------------------------------------
# Model forward (glue in plain JAX around the Pallas kernels)
# ----------------------------------------------------------------------------
def lstm_lm_forward(prepped, src, hidden, *, num_layers, time_block=32,
                    compute_dtype=jnp.bfloat16):
    """src: (B, T) int32 token ids; hidden = (h0, c0) each (L, B, H).
    Returns (logits (B, T, V), (hT, cT))."""
    h0_all, c0_all = hidden
    B, T = src.shape
    H = h0_all.shape[-1]
    Hp = prepped["whh_t_0"].shape[0]

    B_pad = _round_up(max(B, 8), 8)              # batch padded to sublane width
    TT = max(1, min(time_block, T))              # timesteps per grid step
    T_pad = _round_up(T, TT)
    nb = _num_batch_blocks(B_pad)                # 2 only on v7x-class (2 TC) chips
    BB = B_pad // nb

    # Embedding gather directly in (T, B, E) order (no activation transpose);
    # dropout layers are eval-mode identity.
    # TODO(synk): dropout omitted (eval mode); embedding gather left to XLA.
    x = jnp.take(prepped["embedding"], jnp.transpose(src), axis=0)     # (T, B, E) bf16
    x = jnp.pad(x, ((0, T_pad - T), (0, B_pad - B), (0, 0)))           # (T_pad, B_pad, E)

    h_out, c_out = [], []
    for layer in range(num_layers):
        wih_t = prepped[f"wih_t_{layer}"]
        whh_t = prepped[f"whh_t_{layer}"]
        b_p = prepped[f"b_{layer}"]
        in_dim = x.shape[-1]                     # E for layer 0, Hp for layers >= 1

        # Hoisted input projection + fused bias: one big MXU matmul over all timesteps.
        # Stored bf16 to halve the gx HBM round trip.
        gx = matmul_bias(x.reshape(T_pad * B_pad, in_dim), wih_t, b_p,
                         out_dtype=jnp.bfloat16, compute_dtype=compute_dtype)
        gx = gx.reshape(T_pad, B_pad, 4 * Hp)

        h0_p = jnp.pad(h0_all[layer], ((0, B_pad - B), (0, Hp - H)))
        c0_p = jnp.pad(c0_all[layer], ((0, B_pad - B), (0, Hp - H)))

        y, hT, cT = lstm_layer(gx, h0_p, c0_p, whh_t,
                               seq_len=T, time_block=TT, batch_block=BB)
        x = y                                    # padded bf16 activation feeds next layer
        h_out.append(hT[:B, :H])
        c_out.append(cT[:B, :H])
        # TODO(synk): inter-layer / output dropout omitted (eval-mode identity).

    out = x[:T, :B, :H]                                        # (T, B, H) bf16
    out = jnp.transpose(out, (1, 0, 2)).reshape(B * T, H)      # (B*T, H)
    logits = matmul_bias(out, prepped["fc_w_t"], prepped["fc_b"],
                         out_dtype=jnp.float32, compute_dtype=compute_dtype)
    logits = logits.reshape(B, T, -1)
    return logits, (jnp.stack(h_out), jnp.stack(c_out))


# ----------------------------------------------------------------------------
# Pure-JAX reference for verification.  cast_dtype=bf16 mirrors the kernel's
# precision policy (matmul operands bf16, gx stored bf16, fp32 accumulation /
# elementwise); cast_dtype=None is the full-fp32 PyTorch-equivalent math.
# ----------------------------------------------------------------------------
def lstm_lm_forward_ref(params, src, hidden, *, num_layers, cast_dtype=None):
    def mc(a):
        return a if cast_dtype is None else a.astype(cast_dtype).astype(jnp.float32)

    h0_all, c0_all = hidden
    H = h0_all.shape[-1]
    x = jnp.take(params["embedding"], src, axis=0)            # (B, T, E)
    h_out, c_out = [], []
    for layer in range(num_layers):
        w_ih_t = params[f"w_ih_{layer}"].T
        w_hh_t = params[f"w_hh_{layer}"].T
        b = params[f"b_ih_{layer}"] + params[f"b_hh_{layer}"]

        def step(carry, x_t, w_ih_t=w_ih_t, w_hh_t=w_hh_t, b=b):
            h, c = carry
            gx = mc(mc(x_t) @ mc(w_ih_t) + b)     # kernel stores gx in bf16
            gates = gx + mc(h) @ mc(w_hh_t)
            i = jax.nn.sigmoid(gates[:, 0 * H:1 * H])
            f = jax.nn.sigmoid(gates[:, 1 * H:2 * H])
            g = jnp.tanh(gates[:, 2 * H:3 * H])
            o = jax.nn.sigmoid(gates[:, 3 * H:4 * H])
            c_new = f * c + i * g
            h_new = o * jnp.tanh(c_new)
            return (h_new, c_new), h_new

        (hT, cT), ys = jax.lax.scan(step, (h0_all[layer], c0_all[layer]),
                                    jnp.transpose(x, (1, 0, 2)))
        x = jnp.transpose(ys, (1, 0, 2))
        h_out.append(hT)
        c_out.append(cT)
    logits = mc(x) @ mc(params["fc_w"].T) + params["fc_b"]
    return logits, (jnp.stack(h_out), jnp.stack(c_out))


# ----------------------------------------------------------------------------
# Deterministic parameter init (mirrors the module's init_weights semantics)
# ----------------------------------------------------------------------------
def init_params(key, vocab_size, embedding_dim, hidden_dim, num_layers):
    init_emb = 0.1
    init_other = 1.0 / math.sqrt(hidden_dim)
    keys = jax.random.split(key, 2 + 4 * num_layers)
    params = {
        "embedding": jax.random.uniform(keys[0], (vocab_size, embedding_dim),
                                        jnp.float32, -init_emb, init_emb),
        "fc_w": jax.random.uniform(keys[1], (vocab_size, hidden_dim),
                                   jnp.float32, -init_other, init_other),
        "fc_b": jnp.zeros((vocab_size,), jnp.float32),
    }
    for l in range(num_layers):
        in_dim = embedding_dim if l == 0 else hidden_dim
        k = keys[2 + 4 * l: 2 + 4 * (l + 1)]
        params[f"w_ih_{l}"] = jax.random.uniform(
            k[0], (4 * hidden_dim, in_dim), jnp.float32, -init_other, init_other)
        params[f"w_hh_{l}"] = jax.random.uniform(
            k[1], (4 * hidden_dim, hidden_dim), jnp.float32, -init_other, init_other)
        params[f"b_ih_{l}"] = jax.random.uniform(
            k[2], (4 * hidden_dim,), jnp.float32, -init_other, init_other)
        params[f"b_hh_{l}"] = jax.random.uniform(
            k[3], (4 * hidden_dim,), jnp.float32, -init_other, init_other)
    return params


if __name__ == "__main__":
    vocab_size, embedding_dim, hidden_dim, num_layers = 64, 32, 32, 2
    batch, seq_len = 2, 8

    key = jax.random.PRNGKey(0)
    k_params, k_src = jax.random.split(key)
    params = init_params(k_params, vocab_size, embedding_dim, hidden_dim, num_layers)
    prepped = prepare_params(params, num_layers=num_layers)   # one-time weight layout prep

    src = jax.random.randint(k_src, (batch, seq_len), 0, vocab_size, dtype=jnp.int32)
    hidden0 = (jnp.zeros((num_layers, batch, hidden_dim), jnp.float32),
               jnp.zeros((num_layers, batch, hidden_dim), jnp.float32))

    fwd = jax.jit(functools.partial(lstm_lm_forward, num_layers=num_layers))
    logits, (hT, cT) = fwd(prepped, src, hidden0)
    jax.block_until_ready(logits)
    jax.block_until_ready(hT)
    jax.block_until_ready(cT)

    assert logits.shape == (batch, seq_len, vocab_size)
    assert hT.shape == (num_layers, batch, hidden_dim)
    assert cT.shape == (num_layers, batch, hidden_dim)

    # Strict check vs. a reference using the same bf16-operand / bf16-gx / fp32-accumulate policy.
    logits_mx, (hT_mx, cT_mx) = lstm_lm_forward_ref(
        params, src, hidden0, num_layers=num_layers, cast_dtype=jnp.bfloat16)
    assert jnp.allclose(logits, logits_mx, atol=2e-3, rtol=2e-3)
    assert jnp.allclose(hT, hT_mx, atol=2e-3, rtol=2e-3)
    assert jnp.allclose(cT, cT_mx, atol=2e-3, rtol=2e-3)

    # Loose sanity check vs. full-fp32 math (bf16 quantization is the only difference).
    logits_fp, (hT_fp, cT_fp) = lstm_lm_forward_ref(
        params, src, hidden0, num_layers=num_layers, cast_dtype=None)
    assert jnp.allclose(logits, logits_fp, atol=1e-1, rtol=1e-1)
    assert jnp.allclose(hT, hT_fp, atol=1e-1, rtol=1e-1)

    print("KERNEL_OK")
</pallas_src>

<mosaic_0001>
module attributes {stable_mosaic.version = 11 : i64} {
  func.func @_matmul_bias_kernel(%arg0: i32, %arg1: i32, %arg2: i32, %arg3: memref<64x128xbf16, #tpu.memory_space<vmem>>, %arg4: memref<128x512xbf16, #tpu.memory_space<vmem>>, %arg5: memref<1x512xf32, #tpu.memory_space<vmem>>, %arg6: memref<64x512xbf16, #tpu.memory_space<vmem>>, %arg7: memref<64x512xf32, #tpu.memory_space<vmem>>) attributes {dimension_semantics = [#tpu.dimension_semantics<parallel>, #tpu.dimension_semantics<parallel>, #tpu.dimension_semantics<arbitrary>], iteration_bounds = array<i64: 1, 1, 1>, scalar_prefetch = 0 : i64, scratch_operands = 1 : i64, tpu.core_type = #tpu.core_type<tc>, window_params = [{transform_indices = @transform_0, window_bounds = array<i64: 64, 128>}, {transform_indices = @transform_1, window_bounds = array<i64: 128, 512>}, {transform_indices = @transform_2, window_bounds = array<i64: 1, 512>}, {transform_indices = @transform_3, window_bounds = array<i64: 64, 512>}]} {
    %c0_i32 = arith.constant 0 : i32
    %0 = arith.cmpi eq, %arg2, %c0_i32 : i32
    %1 = arith.extui %0 : i1 to i32
    %c0_i32_0 = arith.constant 0 : i32
    %2 = arith.cmpi ne, %1, %c0_i32_0 : i32
    scf.if %2 {
      %cst_10 = arith.constant 0.000000e+00 : f32
      %12 = vector.broadcast %cst_10 : f32 to vector<64x512xf32>
      %c0_11 = arith.constant 0 : index
      %c0_12 = arith.constant 0 : index
      %13 = vector.load %arg7[%c0_11, %c0_12] : memref<64x512xf32, #tpu.memory_space<vmem>>, vector<64x512xf32>
      tpu.vector_store %arg7[%c0_11, %c0_12], %12 {strides = array<i32>} : memref<64x512xf32, #tpu.memory_space<vmem>>, vector<64x512xf32>,
    } else {
    }
    %c0 = arith.constant 0 : index
    %c0_1 = arith.constant 0 : index
    %3 = vector.load %arg7[%c0, %c0_1] : memref<64x512xf32, #tpu.memory_space<vmem>>, vector<64x512xf32>
    %c0_2 = arith.constant 0 : index
    %c0_3 = arith.constant 0 : index
    %4 = vector.load %arg3[%c0_2, %c0_3] : memref<64x128xbf16, #tpu.memory_space<vmem>>, vector<64x128xbf16>
    %c0_4 = arith.constant 0 : index
    %c0_5 = arith.constant 0 : index
    %5 = vector.load %arg4[%c0_4, %c0_5] : memref<128x512xbf16, #tpu.memory_space<vmem>>, vector<128x512xbf16>
    %cst = arith.constant dense<0.000000e+00> : vector<64x512xf32>
    %6 = tpu.matmul %4, %5, %cst {dimension_numbers = #tpu.dot_dimension_numbers<[1], [0], [0], [1], [0, 0, 1, 1], [], []>} : vector<64x128xbf16>, vector<128x512xbf16>, vector<64x512xf32> -> vector<64x512xf32>
    %7 = arith.addf %3, %6 : vector<64x512xf32>
    %c0_6 = arith.constant 0 : index
    %c0_7 = arith.constant 0 : index
    %8 = vector.load %arg7[%c0_6, %c0_7] : memref<64x512xf32, #tpu.memory_space<vmem>>, vector<64x512xf32>
    tpu.vector_store %arg7[%c0_6, %c0_7], %7 {strides = array<i32>} : memref<64x512xf32, #tpu.memory_space<vmem>>, vector<64x512xf32>,
    %c0_i32_8 = arith.constant 0 : i32
    %9 = arith.cmpi eq, %arg2, %c0_i32_8 : i32
    %10 = arith.extui %9 : i1 to i32
    %c0_i32_9 = arith.constant 0 : i32
    %11 = arith.cmpi ne, %10, %c0_i32_9 : i32
    scf.if %11 {
      %c0_10 = arith.constant 0 : index
      %c0_11 = arith.constant 0 : index
      %12 = vector.load %arg7[%c0_10, %c0_11] : memref<64x512xf32, #tpu.memory_space<vmem>>, vector<64x512xf32>
      %c0_12 = arith.constant 0 : index
      %c0_13 = arith.constant 0 : index
      %13 = vector.load %arg5[%c0_12, %c0_13] : memref<1x512xf32, #tpu.memory_space<vmem>>, vector<1x512xf32>
      %14 = vector.broadcast %13 : vector<1x512xf32> to vector<64x512xf32>
      %15 = arith.addf %12, %14 : vector<64x512xf32>
      %16 = arith.truncf %15 : vector<64x512xf32> to vector<64x512xbf16>
      %c0_14 = arith.constant 0 : index
      %c0_15 = arith.constant 0 : index
      %17 = vector.load %arg6[%c0_14, %c0_15] : memref<64x512xbf16, #tpu.memory_space<vmem>>, vector<64x512xbf16>
      tpu.vector_store %arg6[%c0_14, %c0_15], %16 {strides = array<i32>} : memref<64x512xbf16, #tpu.memory_space<vmem>>, vector<64x512xbf16>,
    } else {
    }
    return
  }
  func.func @transform_0(%arg0: i32, %arg1: i32, %arg2: i32) -> (i32, i32) {
    %c0_i32 = arith.constant 0 : i32
    return %arg0, %arg2 : i32, i32
  }
  func.func @transform_1(%arg0: i32, %arg1: i32, %arg2: i32) -> (i32, i32) {
    %c0_i32 = arith.constant 0 : i32
    return %arg2, %arg1 : i32, i32
  }
  func.func @transform_2(%arg0: i32, %arg1: i32, %arg2: i32) -> (i32, i32) {
    %c0_i32 = arith.constant 0 : i32
    %c0_i32_0 = arith.constant 0 : i32
    return %c0_i32, %arg1 : i32, i32
  }
  func.func @transform_3(%arg0: i32, %arg1: i32, %arg2: i32) -> (i32, i32) {
    %c0_i32 = arith.constant 0 : i32
    return %arg0, %arg1 : i32, i32
  }
}

module attributes {stable_mosaic.version = 11 : i64} {
  func.func @_matmul_bias_kernel(%arg0: i32, %arg1: i32, %arg2: i32, %arg3: memref<16x128xbf16, #tpu.memory_space<vmem>>, %arg4: memref<128x128xbf16, #tpu.memory_space<vmem>>, %arg5: memref<1x128xf32, #tpu.memory_space<vmem>>, %arg6: memref<16x128xf32, #tpu.memory_space<vmem>>, %arg7: memref<16x128xf32, #tpu.memory_space<vmem>>) attributes {dimension_semantics = [#tpu.dimension_semantics<parallel>, #tpu.dimension_semantics<parallel>, #tpu.dimension_semantics<arbitrary>], iteration_bounds = array<i64: 1, 1, 1>, scalar_prefetch = 0 : i64, scratch_operands = 1 : i64, tpu.core_type = #tpu.core_type<tc>, window_params = [{transform_indices = @transform_0, window_bounds = array<i64: 16, 128>}, {transform_indices = @transform_1, window_bounds = array<i64: 128, 128>}, {transform_indices = @transform_2, window_bounds = array<i64: 1, 128>}, {transform_indices = @transform_3, window_bounds = array<i64: 16, 128>}]} {
    %c0_i32 = arith.constant 0 : i32
    %0 = arith.cmpi eq, %arg2, %c0_i32 : i32
    %1 = arith.extui %0 : i1 to i32
    %c0_i32_0 = arith.constant 0 : i32
    %2 = arith.cmpi ne, %1, %c0_i32_0 : i32
    scf.if %2 {
      %cst_10 = arith.constant 0.000000e+00 : f32
      %12 = vector.broadcast %cst_10 : f32 to vector<16x128xf32>
      %c0_11 = arith.constant 0 : index
      %c0_12 = arith.constant 0 : index
      %13 = vector.load %arg7[%c0_11, %c0_12] : memref<16x128xf32, #tpu.memory_space<vmem>>, vector<16x128xf32>
      tpu.vector_store %arg7[%c0_11, %c0_12], %12 {strides = array<i32>} : memref<16x128xf32, #tpu.memory_space<vmem>>, vector<16x128xf32>,
    } else {
    }
    %c0 = arith.constant 0 : index
    %c0_1 = arith.constant 0 : index
    %3 = vector.load %arg7[%c0, %c0_1] : memref<16x128xf32, #tpu.memory_space<vmem>>, vector<16x128xf32>
    %c0_2 = arith.constant 0 : index
    %c0_3 = arith.constant 0 : index
    %4 = vector.load %arg3[%c0_2, %c0_3] : memref<16x128xbf16, #tpu.memory_space<vmem>>, vector<16x128xbf16>
    %c0_4 = arith.constant 0 : index
    %c0_5 = arith.constant 0 : index
    %5 = vector.load %arg4[%c0_4, %c0_5] : memref<128x128xbf16, #tpu.memory_space<vmem>>, vector<128x128xbf16>
    %cst = arith.constant dense<0.000000e+00> : vector<16x128xf32>
    %6 = tpu.matmul %4, %5, %cst {dimension_numbers = #tpu.dot_dimension_numbers<[1], [0], [0], [1], [0, 0, 1, 1], [], []>} : vector<16x128xbf16>, vector<128x128xbf16>, vector<16x128xf32> -> vector<16x128xf32>
    %7 = arith.addf %3, %6 : vector<16x128xf32>
    %c0_6 = arith.constant 0 : index
    %c0_7 = arith.constant 0 : index
    %8 = vector.load %arg7[%c0_6, %c0_7] : memref<16x128xf32, #tpu.memory_space<vmem>>, vector<16x128xf32>
    tpu.vector_store %arg7[%c0_6, %c0_7], %7 {strides = array<i32>} : memref<16x128xf32, #tpu.memory_space<vmem>>, vector<16x128xf32>,
    %c0_i32_8 = arith.constant 0 : i32
    %9 = arith.cmpi eq, %arg2, %c0_i32_8 : i32
    %10 = arith.extui %9 : i1 to i32
    %c0_i32_9 = arith.constant 0 : i32
    %11 = arith.cmpi ne, %10, %c0_i32_9 : i32
    scf.if %11 {
      %c0_10 = arith.constant 0 : index
      %c0_11 = arith.constant 0 : index
      %12 = vector.load %arg7[%c0_10, %c0_11] : memref<16x128xf32, #tpu.memory_space<vmem>>, vector<16x128xf32>
      %c0_12 = arith.constant 0 : index
      %c0_13 = arith.constant 0 : index
      %13 = vector.load %arg5[%c0_12, %c0_13] : memref<1x128xf32, #tpu.memory_space<vmem>>, vector<1x128xf32>
      %14 = vector.broadcast %13 : vector<1x128xf32> to vector<16x128xf32>
      %15 = arith.addf %12, %14 : vector<16x128xf32>
      %c0_14 = arith.constant 0 : index
      %c0_15 = arith.constant 0 : index
      %16 = vector.load %arg6[%c0_14, %c0_15] : memref<16x128xf32, #tpu.memory_space<vmem>>, vector<16x128xf32>
      tpu.vector_store %arg6[%c0_14, %c0_15], %15 {strides = array<i32>} : memref<16x128xf32, #tpu.memory_space<vmem>>, vector<16x128xf32>,
    } else {
    }
    return
  }
  func.func @transform_0(%arg0: i32, %arg1: i32, %arg2: i32) -> (i32, i32) {
    %c0_i32 = arith.constant 0 : i32
    return %arg0, %arg2 : i32, i32
  }
  func.func @transform_1(%arg0: i32, %arg1: i32, %arg2: i32) -> (i32, i32) {
    %c0_i32 = arith.constant 0 : i32
    return %arg2, %arg1 : i32, i32
  }
  func.func @transform_2(%arg0: i32, %arg1: i32, %arg2: i32) -> (i32, i32) {
    %c0_i32 = arith.constant 0 : i32
    %c0_i32_0 = arith.constant 0 : i32
    return %c0_i32, %arg1 : i32, i32
  }
  func.func @transform_3(%arg0: i32, %arg1: i32, %arg2: i32) -> (i32, i32) {
    %c0_i32 = arith.constant 0 : i32
    return %arg0, %arg1 : i32, i32
  }
}

module attributes {stable_mosaic.version = 11 : i64} {
  func.func @_lstm_scan_kernel(%arg0: i32, %arg1: i32, %arg2: memref<8x8x512xbf16, #tpu.memory_space<vmem>>, %arg3: memref<8x128xf32, #tpu.memory_space<vmem>>, %arg4: memref<8x128xf32, #tpu.memory_space<vmem>>, %arg5: memref<128x512xbf16, #tpu.memory_space<vmem>>, %arg6: memref<8x8x128xbf16, #tpu.memory_space<vmem>>, %arg7: memref<8x128xf32, #tpu.memory_space<vmem>>, %arg8: memref<8x128xf32, #tpu.memory_space<vmem>>, %arg9: memref<8x128xf32, #tpu.memory_space<vmem>>, %arg10: memref<8x128xf32, #tpu.memory_space<vmem>>) attributes {dimension_semantics = [#tpu.dimension_semantics<parallel>, #tpu.dimension_semantics<arbitrary>], iteration_bounds = array<i64: 1, 1>, scalar_prefetch = 0 : i64, scratch_operands = 2 : i64, tpu.core_type = #tpu.core_type<tc>, window_params = [{transform_indices = @transform_0, window_bounds = array<i64: 8, 8, 512>}, {transform_indices = @transform_1, window_bounds = array<i64: 8, 128>}, {transform_indices = @transform_2, window_bounds = array<i64: 8, 128>}, {pipeline_mode = #tpu.pipeline_mode<synchronous>, transform_indices = @transform_3, window_bounds = array<i64: 128, 512>}, {transform_indices = @transform_4, window_bounds = array<i64: 8, 8, 128>}, {transform_indices = @transform_5, window_bounds = array<i64: 8, 128>}, {transform_indices = @transform_6, window_bounds = array<i64: 8, 128>}]} {
    %c0_i32 = arith.constant 0 : i32
    %0 = arith.cmpi eq, %arg1, %c0_i32 : i32
    %1 = arith.extui %0 : i1 to i32
    %c0_i32_0 = arith.constant 0 : i32
    %2 = arith.cmpi ne, %1, %c0_i32_0 : i32
    scf.if %2 {
      %c0_263 = arith.constant 0 : index
      %c0_264 = arith.constant 0 : index
      %486 = vector.load %arg3[%c0_263, %c0_264] : memref<8x128xf32, #tpu.memory_space<vmem>>, vector<8x128xf32>
      %c0_265 = arith.constant 0 : index
      %c0_266 = arith.constant 0 : index
      %487 = vector.load %arg9[%c0_265, %c0_266] : memref<8x128xf32, #tpu.memory_space<vmem>>, vector<8x128xf32>
      tpu.vector_store %arg9[%c0_265, %c0_266], %486 {strides = array<i32>} : memref<8x128xf32, #tpu.memory_space<vmem>>, vector<8x128xf32>,
      %c0_267 = arith.constant 0 : index
      %c0_268 = arith.constant 0 : index
      %488 = vector.load %arg4[%c0_267, %c0_268] : memref<8x128xf32, #tpu.memory_space<vmem>>, vector<8x128xf32>
      %c0_269 = arith.constant 0 : index
      %c0_270 = arith.constant 0 : index
      %489 = vector.load %arg10[%c0_269, %c0_270] : memref<8x128xf32, #tpu.memory_space<vmem>>, vector<8x128xf32>
      tpu.vector_store %arg10[%c0_269, %c0_270], %488 {strides = array<i32>} : memref<8x128xf32, #tpu.memory_space<vmem>>, vector<8x128xf32>,
    } else {
    }
    %c0_i32_1 = arith.constant 0 : i32
    %c0 = arith.constant 0 : index
    %c0_2 = arith.constant 0 : index
    %3 = vector.load %arg9[%c0, %c0_2] : memref<8x128xf32, #tpu.memory_space<vmem>>, vector<8x128xf32>
    %c0_3 = arith.constant 0 : index
    %c0_4 = arith.constant 0 : index
    %4 = vector.load %arg10[%c0_3, %c0_4] : memref<8x128xf32, #tpu.memory_space<vmem>>, vector<8x128xf32>
    %5 = arith.truncf %3 : vector<8x128xf32> to vector<8x128xbf16>
    %6 = arith.index_cast %c0_i32_1 : i32 to index
    %c0_5 = arith.constant 0 : index
    %c0_6 = arith.constant 0 : index
    %7 = vector.load %arg2[%6, %c0_5, %c0_6] : memref<8x8x512xbf16, #tpu.memory_space<vmem>>, vector<1x8x512xbf16>
    %8 = vector.shape_cast %7 : vector<1x8x512xbf16> to vector<8x512xbf16>
    %9 = vector.extract_strided_slice %8 {offsets = [0, 0], sizes = [8, 128], strides = [1, 1]} : vector<8x512xbf16> to vector<8x128xbf16>
    %10 = arith.extf %9 : vector<8x128xbf16> to vector<8x128xf32>
    %c0_7 = arith.constant 0 : index
    %c0_8 = arith.constant 0 : index
    %11 = vector.load %arg5[%c0_7, %c0_8] : memref<128x512xbf16, #tpu.memory_space<vmem>>, vector<128x128xbf16>
    %cst = arith.constant dense<0.000000e+00> : vector<8x128xf32>
    %12 = tpu.matmul %5, %11, %cst {dimension_numbers = #tpu.dot_dimension_numbers<[1], [0], [0], [1], [0, 0, 1, 1], [], []>} : vector<8x128xbf16>, vector<128x128xbf16>, vector<8x128xf32> -> vector<8x128xf32>
    %13 = arith.addf %10, %12 : vector<8x128xf32>
    %cst_9 = arith.constant 5.000000e-01 : f32
    %14 = vector.broadcast %cst_9 : f32 to vector<8x128xf32>
    %15 = arith.mulf %14, %13 : vector<8x128xf32>
    %16 = math.tanh %15 : vector<8x128xf32>
    %cst_10 = arith.constant 5.000000e-01 : f32
    %17 = vector.broadcast %cst_10 : f32 to vector<8x128xf32>
    %18 = arith.mulf %17, %16 : vector<8x128xf32>
    %cst_11 = arith.constant 5.000000e-01 : f32
    %19 = vector.broadcast %cst_11 : f32 to vector<8x128xf32>
    %20 = arith.addf %18, %19 : vector<8x128xf32>
    %21 = vector.extract_strided_slice %8 {offsets = [0, 128], sizes = [8, 128], strides = [1, 1]} : vector<8x512xbf16> to vector<8x128xbf16>
    %22 = arith.extf %21 : vector<8x128xbf16> to vector<8x128xf32>
    %c0_12 = arith.constant 0 : index
    %c128 = arith.constant 128 : index
    %23 = vector.load %arg5[%c0_12, %c128] : memref<128x512xbf16, #tpu.memory_space<vmem>>, vector<128x128xbf16>
    %cst_13 = arith.constant dense<0.000000e+00> : vector<8x128xf32>
    %24 = tpu.matmul %5, %23, %cst_13 {dimension_numbers = #tpu.dot_dimension_numbers<[1], [0], [0], [1], [0, 0, 1, 1], [], []>} : vector<8x128xbf16>, vector<128x128xbf16>, vector<8x128xf32> -> vector<8x128xf32>
    %25 = arith.addf %22, %24 : vector<8x128xf32>
    %cst_14 = arith.constant 5.000000e-01 : f32
    %26 = vector.broadcast %cst_14 : f32 to vector<8x128xf32>
    %27 = arith.mulf %26, %25 : vector<8x128xf32>
    %28 = math.tanh %27 : vector<8x128xf32>
    %cst_15 = arith.constant 5.000000e-01 : f32
    %29 = vector.broadcast %cst_15 : f32 to vector<8x128xf32>
    %30 = arith.mulf %29, %28 : vector<8x128xf32>
    %cst_16 = arith.constant 5.000000e-01 : f32
    %31 = vector.broadcast %cst_16 : f32 to vector<8x128xf32>
    %32 = arith.addf %30, %31 : vector<8x128xf32>
    %33 = vector.extract_strided_slice %8 {offsets = [0, 256], sizes = [8, 128], strides = [1, 1]} : vector<8x512xbf16> to vector<8x128xbf16>
    %34 = arith.extf %33 : vector<8x128xbf16> to vector<8x128xf32>
    %c0_17 = arith.constant 0 : index
    %c256 = arith.constant 256 : index
    %35 = vector.load %arg5[%c0_17, %c256] : memref<128x512xbf16, #tpu.memory_space<vmem>>, vector<128x128xbf16>
    %cst_18 = arith.constant dense<0.000000e+00> : vector<8x128xf32>
    %36 = tpu.matmul %5, %35, %cst_18 {dimension_numbers = #tpu.dot_dimension_numbers<[1], [0], [0], [1], [0, 0, 1, 1], [], []>} : vector<8x128xbf16>, vector<128x128xbf16>, vector<8x128xf32> -> vector<8x128xf32>
    %37 = arith.addf %34, %36 : vector<8x128xf32>
    %38 = math.tanh %37 : vector<8x128xf32>
    %39 = vector.extract_strided_slice %8 {offsets = [0, 384], sizes = [8, 128], strides = [1, 1]} : vector<8x512xbf16> to vector<8x128xbf16>
    %40 = arith.extf %39 : vector<8x128xbf16> to vector<8x128xf32>
    %c0_19 = arith.constant 0 : index
    %c384 = arith.constant 384 : index
    %41 = vector.load %arg5[%c0_19, %c384] : memref<128x512xbf16, #tpu.memory_space<vmem>>, vector<128x128xbf16>
    %cst_20 = arith.constant dense<0.000000e+00> : vector<8x128xf32>
    %42 = tpu.matmul %5, %41, %cst_20 {dimension_numbers = #tpu.dot_dimension_numbers<[1], [0], [0], [1], [0, 0, 1, 1], [], []>} : vector<8x128xbf16>, vector<128x128xbf16>, vector<8x128xf32> -> vector<8x128xf32>
    %43 = arith.addf %40, %42 : vector<8x128xf32>
    %cst_21 = arith.constant 5.000000e-01 : f32
    %44 = vector.broadcast %cst_21 : f32 to vector<8x128xf32>
    %45 = arith.mulf %44, %43 : vector<8x128xf32>
    %46 = math.tanh %45 : vector<8x128xf32>
    %cst_22 = arith.constant 5.000000e-01 : f32
    %47 = vector.broadcast %cst_22 : f32 to vector<8x128xf32>
    %48 = arith.mulf %47, %46 : vector<8x128xf32>
    %cst_23 = arith.constant 5.000000e-01 : f32
    %49 = vector.broadcast %cst_23 : f32 to vector<8x128xf32>
    %50 = arith.addf %48, %49 : vector<8x128xf32>
    %51 = arith.mulf %32, %4 : vector<8x128xf32>
    %52 = arith.mulf %20, %38 : vector<8x128xf32>
    %53 = arith.addf %51, %52 : vector<8x128xf32>
    %54 = math.tanh %53 : vector<8x128xf32>
    %55 = arith.mulf %50, %54 : vector<8x128xf32>
    %c0_24 = arith.constant 0 : index
    %c0_25 = arith.constant 0 : index
    %56 = vector.load %arg9[%c0_24, %c0_25] : memref<8x128xf32, #tpu.memory_space<vmem>>, vector<8x128xf32>
    tpu.vector_store %arg9[%c0_24, %c0_25], %55 {strides = array<i32>} : memref<8x128xf32, #tpu.memory_space<vmem>>, vector<8x128xf32>,
    %c0_26 = arith.constant 0 : index
    %c0_27 = arith.constant 0 : index
    %57 = vector.load %arg10[%c0_26, %c0_27] : memref<8x128xf32, #tpu.memory_space<vmem>>, vector<8x128xf32>
    tpu.vector_store %arg10[%c0_26, %c0_27], %53 {strides = array<i32>} : memref<8x128xf32, #tpu.memory_space<vmem>>, vector<8x128xf32>,
    %58 = arith.truncf %55 : vector<8x128xf32> to vector<8x128xbf16>
    %59 = arith.index_cast %c0_i32_1 : i32 to index
    %c0_28 = arith.constant 0 : index
    %c0_29 = arith.constant 0 : index
    %60 = vector.load %arg6[%59, %c0_28, %c0_29] : memref<8x8x128xbf16, #tpu.memory_space<vmem>>, vector<1x8x128xbf16>
    %61 = vector.shape_cast %60 : vector<1x8x128xbf16> to vector<8x128xbf16>
    %62 = vector.shape_cast %58 : vector<8x128xbf16> to vector<1x8x128xbf16>
    tpu.vector_store %arg6[%59, %c0_28, %c0_29], %62 {strides = array<i32>} : memref<8x8x128xbf16, #tpu.memory_space<vmem>>, vector<1x8x128xbf16>,
    %c1_i32 = arith.constant 1 : i32
    %c0_30 = arith.constant 0 : index
    %c0_31 = arith.constant 0 : index
    %63 = vector.load %arg9[%c0_30, %c0_31] : memref<8x128xf32, #tpu.memory_space<vmem>>, vector<8x128xf32>
    %c0_32 = arith.constant 0 : index
    %c0_33 = arith.constant 0 : index
    %64 = vector.load %arg10[%c0_32, %c0_33] : memref<8x128xf32, #tpu.memory_space<vmem>>, vector<8x128xf32>
    %65 = arith.truncf %63 : vector<8x128xf32> to vector<8x128xbf16>
    %66 = arith.index_cast %c1_i32 : i32 to index
    %c0_34 = arith.constant 0 : index
    %c0_35 = arith.constant 0 : index
    %67 = vector.load %arg2[%66, %c0_34, %c0_35] : memref<8x8x512xbf16, #tpu.memory_space<vmem>>, vector<1x8x512xbf16>
    %68 = vector.shape_cast %67 : vector<1x8x512xbf16> to vector<8x512xbf16>
    %69 = vector.extract_strided_slice %68 {offsets = [0, 0], sizes = [8, 128], strides = [1, 1]} : vector<8x512xbf16> to vector<8x128xbf16>
    %70 = arith.extf %69 : vector<8x128xbf16> to vector<8x128xf32>
    %c0_36 = arith.constant 0 : index
    %c0_37 = arith.constant 0 : index
    %71 = vector.load %arg5[%c0_36, %c0_37] : memref<128x512xbf16, #tpu.memory_space<vmem>>, vector<128x128xbf16>
    %cst_38 = arith.constant dense<0.000000e+00> : vector<8x128xf32>
    %72 = tpu.matmul %65, %71, %cst_38 {dimension_numbers = #tpu.dot_dimension_numbers<[1], [0], [0], [1], [0, 0, 1, 1], [], []>} : vector<8x128xbf16>, vector<128x128xbf16>, vector<8x128xf32> -> vector<8x128xf32>
    %73 = arith.addf %70, %72 : vector<8x128xf32>
    %cst_39 = arith.constant 5.000000e-01 : f32
    %74 = vector.broadcast %cst_39 : f32 to vector<8x128xf32>
    %75 = arith.mulf %74, %73 : vector<8x128xf32>
    %76 = math.tanh %75 : vector<8x128xf32>
    %cst_40 = arith.constant 5.000000e-01 : f32
    %77 = vector.broadcast %cst_40 : f32 to vector<8x128xf32>
    %78 = arith.mulf %77, %76 : vector<8x128xf32>
    %cst_41 = arith.constant 5.000000e-01 : f32
    %79 = vector.broadcast %cst_41 : f32 to vector<8x128xf32>
    %80 = arith.addf %78, %79 : vector<8x128xf32>
    %81 = vector.extract_strided_slice %68 {offsets = [0, 128], sizes = [8, 128], strides = [1, 1]} : vector<8x512xbf16> to vector<8x128xbf16>
    %82 = arith.extf %81 : vector<8x128xbf16> to vector<8x128xf32>
    %c0_42 = arith.constant 0 : index
    %c128_43 = arith.constant 128 : index
    %83 = vector.load %arg5[%c0_42, %c128_43] : memref<128x512xbf16, #tpu.memory_space<vmem>>, vector<128x128xbf16>
    %cst_44 = arith.constant dense<0.000000e+00> : vector<8x128xf32>
    %84 = tpu.matmul %65, %83, %cst_44 {dimension_numbers = #tpu.dot_dimension_numbers<[1], [0], [0], [1], [0, 0, 1, 1], [], []>} : vector<8x128xbf16>, vector<128x128xbf16>, vector<8x128xf32> -> vector<8x128xf32>
    %85 = arith.addf %82, %84 : vector<8x128xf32>
    %cst_45 = arith.constant 5.000000e-01 : f32
    %86 = vector.broadcast %cst_45 : f32 to vector<8x128xf32>
    %87 = arith.mulf %86, %85 : vector<8x128xf32>
    %88 = math.tanh %87 : vector<8x128xf32>
    %cst_46 = arith.constant 5.000000e-01 : f32
    %89 = vector.broadcast %cst_46 : f32 to vector<8x128xf32>
    %90 = arith.mulf %89, %88 : vector<8x128xf32>
    %cst_47 = arith.constant 5.000000e-01 : f32
    %91 = vector.broadcast %cst_47 : f32 to vector<8x128xf32>
    %92 = arith.addf %90, %91 : vector<8x128xf32>
    %93 = vector.extract_strided_slice %68 {offsets = [0, 256], sizes = [8, 128], strides = [1, 1]} : vector<8x512xbf16> to vector<8x128xbf16>
    %94 = arith.extf %93 : vector<8x128xbf16> to vector<8x128xf32>
    %c0_48 = arith.constant 0 : index
    %c256_49 = arith.constant 256 : index
    %95 = vector.load %arg5[%c0_48, %c256_49] : memref<128x512xbf16, #tpu.memory_space<vmem>>, vector<128x128xbf16>
    %cst_50 = arith.constant dense<0.000000e+00> : vector<8x128xf32>
    %96 = tpu.matmul %65, %95, %cst_50 {dimension_numbers = #tpu.dot_dimension_numbers<[1], [0], [0], [1], [0, 0, 1, 1], [], []>} : vector<8x128xbf16>, vector<128x128xbf16>, vector<8x128xf32> -> vector<8x128xf32>
    %97 = arith.addf %94, %96 : vector<8x128xf32>
    %98 = math.tanh %97 : vector<8x128xf32>
    %99 = vector.extract_strided_slice %68 {offsets = [0, 384], sizes = [8, 128], strides = [1, 1]} : vector<8x512xbf16> to vector<8x128xbf16>
    %100 = arith.extf %99 : vector<8x128xbf16> to vector<8x128xf32>
    %c0_51 = arith.constant 0 : index
    %c384_52 = arith.constant 384 : index
    %101 = vector.load %arg5[%c0_51, %c384_52] : memref<128x512xbf16, #tpu.memory_space<vmem>>, vector<128x128xbf16>
    %cst_53 = arith.constant dense<0.000000e+00> : vector<8x128xf32>
    %102 = tpu.matmul %65, %101, %cst_53 {dimension_numbers = #tpu.dot_dimension_numbers<[1], [0], [0], [1], [0, 0, 1, 1], [], []>} : vector<8x128xbf16>, vector<128x128xbf16>, vector<8x128xf32> -> vector<8x128xf32>
    %103 = arith.addf %100, %102 : vector<8x128xf32>
    %cst_54 = arith.constant 5.000000e-01 : f32
    %104 = vector.broadcast %cst_54 : f32 to vector<8x128xf32>
    %105 = arith.mulf %104, %103 : vector<8x128xf32>
    %106 = math.tanh %105 : vector<8x128xf32>
    %cst_55 = arith.constant 5.000000e-01 : f32
    %107 = vector.broadcast %cst_55 : f32 to vector<8x128xf32>
    %108 = arith.mulf %107, %106 : vector<8x128xf32>
    %cst_56 = arith.constant 5.000000e-01 : f32
    %109 = vector.broadcast %cst_56 : f32 to vector<8x128xf32>
    %110 = arith.addf %108, %109 : vector<8x128xf32>
    %111 = arith.mulf %92, %64 : vector<8x128xf32>
    %112 = arith.mulf %80, %98 : vector<8x128xf32>
    %113 = arith.addf %111, %112 : vector<8x128xf32>
    %114 = math.tanh %113 : vector<8x128xf32>
    %115 = arith.mulf %110, %114 : vector<8x128xf32>
    %c0_57 = arith.constant 0 : index
    %c0_58 = arith.constant 0 : index
    %116 = vector.load %arg9[%c0_57, %c0_58] : memref<8x128xf32, #tpu.memory_space<vmem>>, vector<8x128xf32>
    tpu.vector_store %arg9[%c0_57, %c0_58], %115 {strides = array<i32>} : memref<8x128xf32, #tpu.memory_space<vmem>>, vector<8x128xf32>,
    %c0_59 = arith.constant 0 : index
    %c0_60 = arith.constant 0 : index
    %117 = vector.load %arg10[%c0_59, %c0_60] : memref<8x128xf32, #tpu.memory_space<vmem>>, vector<8x128xf32>
    tpu.vector_store %arg10[%c0_59, %c0_60], %113 {strides = array<i32>} : memref<8x128xf32, #tpu.memory_space<vmem>>, vector<8x128xf32>,
    %118 = arith.truncf %115 : vector<8x128xf32> to vector<8x128xbf16>
    %119 = arith.index_cast %c1_i32 : i32 to index
    %c0_61 = arith.constant 0 : index
    %c0_62 = arith.constant 0 : index
    %120 = vector.load %arg6[%119, %c0_61, %c0_62] : memref<8x8x128xbf16, #tpu.memory_space<vmem>>, vector<1x8x128xbf16>
    %121 = vector.shape_cast %120 : vector<1x8x128xbf16> to vector<8x128xbf16>
    %122 = vector.shape_cast %118 : vector<8x128xbf16> to vector<1x8x128xbf16>
    tpu.vector_store %arg6[%119, %c0_61, %c0_62], %122 {strides = array<i32>} : memref<8x8x128xbf16, #tpu.memory_space<vmem>>, vector<1x8x128xbf16>,
    %c2_i32 = arith.constant 2 : i32
    %c0_63 = arith.constant 0 : index
    %c0_64 = arith.constant 0 : index
    %123 = vector.load %arg9[%c0_63, %c0_64] : memref<8x128xf32, #tpu.memory_space<vmem>>, vector<8x128xf32>
    %c0_65 = arith.constant 0 : index
    %c0_66 = arith.constant 0 : index
    %124 = vector.load %arg10[%c0_65, %c0_66] : memref<8x128xf32, #tpu.memory_space<vmem>>, vector<8x128xf32>
    %125 = arith.truncf %123 : vector<8x128xf32> to vector<8x128xbf16>
    %126 = arith.index_cast %c2_i32 : i32 to index
    %c0_67 = arith.constant 0 : index
    %c0_68 = arith.constant 0 : index
    %127 = vector.load %arg2[%126, %c0_67, %c0_68] : memref<8x8x512xbf16, #tpu.memory_space<vmem>>, vector<1x8x512xbf16>
    %128 = vector.shape_cast %127 : vector<1x8x512xbf16> to vector<8x512xbf16>
    %129 = vector.extract_strided_slice %128 {offsets = [0, 0], sizes = [8, 128], strides = [1, 1]} : vector<8x512xbf16> to vector<8x128xbf16>
    %130 = arith.extf %129 : vector<8x128xbf16> to vector<8x128xf32>
    %c0_69 = arith.constant 0 : index
    %c0_70 = arith.constant 0 : index
    %131 = vector.load %arg5[%c0_69, %c0_70] : memref<128x512xbf16, #tpu.memory_space<vmem>>, vector<128x128xbf16>
    %cst_71 = arith.constant dense<0.000000e+00> : vector<8x128xf32>
    %132 = tpu.matmul %125, %131, %cst_71 {dimension_numbers = #tpu.dot_dimension_numbers<[1], [0], [0], [1], [0, 0, 1, 1], [], []>} : vector<8x128xbf16>, vector<128x128xbf16>, vector<8x128xf32> -> vector<8x128xf32>
    %133 = arith.addf %130, %132 : vector<8x128xf32>
    %cst_72 = arith.constant 5.000000e-01 : f32
    %134 = vector.broadcast %cst_72 : f32 to vector<8x128xf32>
    %135 = arith.mulf %134, %133 : vector<8x128xf32>
    %136 = math.tanh %135 : vector<8x128xf32>
    %cst_73 = arith.constant 5.000000e-01 : f32
    %137 = vector.broadcast %cst_73 : f32 to vector<8x128xf32>
    %138 = arith.mulf %137, %136 : vector<8x128xf32>
    %cst_74 = arith.constant 5.000000e-01 : f32
    %139 = vector.broadcast %cst_74 : f32 to vector<8x128xf32>
    %140 = arith.addf %138, %139 : vector<8x128xf32>
    %141 = vector.extract_strided_slice %128 {offsets = [0, 128], sizes = [8, 128], strides = [1, 1]} : vector<8x512xbf16> to vector<8x128xbf16>
    %142 = arith.extf %141 : vector<8x128xbf16> to vector<8x128xf32>
    %c0_75 = arith.constant 0 : index
    %c128_76 = arith.constant 128 : index
    %143 = vector.load %arg5[%c0_75, %c128_76] : memref<128x512xbf16, #tpu.memory_space<vmem>>, vector<128x128xbf16>
    %cst_77 = arith.constant dense<0.000000e+00> : vector<8x128xf32>
    %144 = tpu.matmul %125, %143, %cst_77 {dimension_numbers = #tpu.dot_dimension_numbers<[1], [0], [0], [1], [0, 0, 1, 1], [], []>} : vector<8x128xbf16>, vector<128x128xbf16>, vector<8x128xf32> -> vector<8x128xf32>
    %145 = arith.addf %142, %144 : vector<8x128xf32>
    %cst_78 = arith.constant 5.000000e-01 : f32
    %146 = vector.broadcast %cst_78 : f32 to vector<8x128xf32>
    %147 = arith.mulf %146, %145 : vector<8x128xf32>
    %148 = math.tanh %147 : vector<8x128xf32>
    %cst_79 = arith.constant 5.000000e-01 : f32
    %149 = vector.broadcast %cst_79 : f32 to vector<8x128xf32>
    %150 = arith.mulf %149, %148 : vector<8x128xf32>
    %cst_80 = arith.constant 5.000000e-01 : f32
    %151 = vector.broadcast %cst_80 : f32 to vector<8x128xf32>
    %152 = arith.addf %150, %151 : vector<8x128xf32>
    %153 = vector.extract_strided_slice %128 {offsets = [0, 256], sizes = [8, 128], strides = [1, 1]} : vector<8x512xbf16> to vector<8x128xbf16>
    %154 = arith.extf %153 : vector<8x128xbf16> to vector<8x128xf32>
    %c0_81 = arith.constant 0 : index
    %c256_82 = arith.constant 256 : index
    %155 = vector.load %arg5[%c0_81, %c256_82] : memref<128x512xbf16, #tpu.memory_space<vmem>>, vector<128x128xbf16>
    %cst_83 = arith.constant dense<0.000000e+00> : vector<8x128xf32>
    %156 = tpu.matmul %125, %155, %cst_83 {dimension_numbers = #tpu.dot_dimension_numbers<[1], [0], [0], [1], [0, 0, 1, 1], [], []>} : vector<8x128xbf16>, vector<128x128xbf16>, vector<8x128xf32> -> vector<8x128xf32>
    %157 = arith.addf %154, %156 : vector<8x128xf32>
    %158 = math.tanh %157 : vector<8x128xf32>
    %159 = vector.extract_strided_slice %128 {offsets = [0, 384], sizes = [8, 128], strides = [1, 1]} : vector<8x512xbf16> to vector<8x128xbf16>
    %160 = arith.extf %159 : vector<8x128xbf16> to vector<8x128xf32>
    %c0_84 = arith.constant 0 : index
    %c384_85 = arith.constant 384 : index
    %161 = vector.load %arg5[%c0_84, %c384_85] : memref<128x512xbf16, #tpu.memory_space<vmem>>, vector<128x128xbf16>
    %cst_86 = arith.constant dense<0.000000e+00> : vector<8x128xf32>
    %162 = tpu.matmul %125, %161, %cst_86 {dimension_numbers = #tpu.dot_dimension_numbers<[1], [0], [0], [1], [0, 0, 1, 1], [], []>} : vector<8x128xbf16>, vector<128x128xbf16>, vector<8x128xf32> -> vector<8x128xf32>
    %163 = arith.addf %160, %162 : vector<8x128xf32>
    %cst_87 = arith.constant 5.000000e-01 : f32
    %164 = vector.broadcast %cst_87 : f32 to vector<8x128xf32>
    %165 = arith.mulf %164, %163 : vector<8x128xf32>
    %166 = math.tanh %165 : vector<8x128xf32>
    %cst_88 = arith.constant 5.000000e-01 : f32
    %167 = vector.broadcast %cst_88 : f32 to vector<8x128xf32>
    %168 = arith.mulf %167, %166 : vector<8x128xf32>
    %cst_89 = arith.constant 5.000000e-01 : f32
    %169 = vector.broadcast %cst_89 : f32 to vector<8x128xf32>
    %170 = arith.addf %168, %169 : vector<8x128xf32>
    %171 = arith.mulf %152, %124 : vector<8x128xf32>
    %172 = arith.mulf %140, %158 : vector<8x128xf32>
    %173 = arith.addf %171, %172 : vector<8x128xf32>
    %174 = math.tanh %173 : vector<8x128xf32>
    %175 = arith.mulf %170, %174 : vector<8x128xf32>
    %c0_90 = arith.constant 0 : index
    %c0_91 = arith.constant 0 : index
    %176 = vector.load %arg9[%c0_90, %c0_91] : memref<8x128xf32, #tpu.memory_space<vmem>>, vector<8x128xf32>
    tpu.vector_store %arg9[%c0_90, %c0_91], %175 {strides = array<i32>} : memref<8x128xf32, #tpu.memory_space<vmem>>, vector<8x128xf32>,
    %c0_92 = arith.constant 0 : index
    %c0_93 = arith.constant 0 : index
    %177 = vector.load %arg10[%c0_92, %c0_93] : memref<8x128xf32, #tpu.memory_space<vmem>>, vector<8x128xf32>
    tpu.vector_store %arg10[%c0_92, %c0_93], %173 {strides = array<i32>} : memref<8x128xf32, #tpu.memory_space<vmem>>, vector<8x128xf32>,
    %178 = arith.truncf %175 : vector<8x128xf32> to vector<8x128xbf16>
    %179 = arith.index_cast %c2_i32 : i32 to index
    %c0_94 = arith.constant 0 : index
    %c0_95 = arith.constant 0 : index
    %180 = vector.load %arg6[%179, %c0_94, %c0_95] : memref<8x8x128xbf16, #tpu.memory_space<vmem>>, vector<1x8x128xbf16>
    %181 = vector.shape_cast %180 : vector<1x8x128xbf16> to vector<8x128xbf16>
    %182 = vector.shape_cast %178 : vector<8x128xbf16> to vector<1x8x128xbf16>
    tpu.vector_store %arg6[%179, %c0_94, %c0_95], %182 {strides = array<i32>} : memref<8x8x128xbf16, #tpu.memory_space<vmem>>, vector<1x8x128xbf16>,
    %c3_i32 = arith.constant 3 : i32
    %c0_96 = arith.constant 0 : index
    %c0_97 = arith.constant 0 : index
    %183 = vector.load %arg9[%c0_96, %c0_97] : memref<8x128xf32, #tpu.memory_space<vmem>>, vector<8x128xf32>
    %c0_98 = arith.constant 0 : index
    %c0_99 = arith.constant 0 : index
    %184 = vector.load %arg10[%c0_98, %c0_99] : memref<8x128xf32, #tpu.memory_space<vmem>>, vector<8x128xf32>
    %185 = arith.truncf %183 : vector<8x128xf32> to vector<8x128xbf16>
    %186 = arith.index_cast %c3_i32 : i32 to index
    %c0_100 = arith.constant 0 : index
    %c0_101 = arith.constant 0 : index
    %187 = vector.load %arg2[%186, %c0_100, %c0_101] : memref<8x8x512xbf16, #tpu.memory_space<vmem>>, vector<1x8x512xbf16>
    %188 = vector.shape_cast %187 : vector<1x8x512xbf16> to vector<8x512xbf16>
    %189 = vector.extract_strided_slice %188 {offsets = [0, 0], sizes = [8, 128], strides = [1, 1]} : vector<8x512xbf16> to vector<8x128xbf16>
    %190 = arith.extf %189 : vector<8x128xbf16> to vector<8x128xf32>
    %c0_102 = arith.constant 0 : index
    %c0_103 = arith.constant 0 : index
    %191 = vector.load %arg5[%c0_102, %c0_103] : memref<128x512xbf16, #tpu.memory_space<vmem>>, vector<128x128xbf16>
    %cst_104 = arith.constant dense<0.000000e+00> : vector<8x128xf32>
    %192 = tpu.matmul %185, %191, %cst_104 {dimension_numbers = #tpu.dot_dimension_numbers<[1], [0], [0], [1], [0, 0, 1, 1], [], []>} : vector<8x128xbf16>, vector<128x128xbf16>, vector<8x128xf32> -> vector<8x128xf32>
    %193 = arith.addf %190, %192 : vector<8x128xf32>
    %cst_105 = arith.constant 5.000000e-01 : f32
    %194 = vector.broadcast %cst_105 : f32 to vector<8x128xf32>
    %195 = arith.mulf %194, %193 : vector<8x128xf32>
    %196 = math.tanh %195 : vector<8x128xf32>
    %cst_106 = arith.constant 5.000000e-01 : f32
    %197 = vector.broadcast %cst_106 : f32 to vector<8x128xf32>
    %198 = arith.mulf %197, %196 : vector<8x128xf32>
    %cst_107 = arith.constant 5.000000e-01 : f32
    %199 = vector.broadcast %cst_107 : f32 to vector<8x128xf32>
    %200 = arith.addf %198, %199 : vector<8x128xf32>
    %201 = vector.extract_strided_slice %188 {offsets = [0, 128], sizes = [8, 128], strides = [1, 1]} : vector<8x512xbf16> to vector<8x128xbf16>
    %202 = arith.extf %201 : vector<8x128xbf16> to vector<8x128xf32>
    %c0_108 = arith.constant 0 : index
    %c128_109 = arith.constant 128 : index
    %203 = vector.load %arg5[%c0_108, %c128_109] : memref<128x512xbf16, #tpu.memory_space<vmem>>, vector<128x128xbf16>
    %cst_110 = arith.constant dense<0.000000e+00> : vector<8x128xf32>
    %204 = tpu.matmul %185, %203, %cst_110 {dimension_numbers = #tpu.dot_dimension_numbers<[1], [0], [0], [1], [0, 0, 1, 1], [], []>} : vector<8x128xbf16>, vector<128x128xbf16>, vector<8x128xf32> -> vector<8x128xf32>
    %205 = arith.addf %202, %204 : vector<8x128xf32>
    %cst_111 = arith.constant 5.000000e-01 : f32
    %206 = vector.broadcast %cst_111 : f32 to vector<8x128xf32>
    %207 = arith.mulf %206, %205 : vector<8x128xf32>
    %208 = math.tanh %207 : vector<8x128xf32>
    %cst_112 = arith.constant 5.000000e-01 : f32
    %209 = vector.broadcast %cst_112 : f32 to vector<8x128xf32>
    %210 = arith.mulf %209, %208 : vector<8x128xf32>
    %cst_113 = arith.constant 5.000000e-01 : f32
    %211 = vector.broadcast %cst_113 : f32 to vector<8x128xf32>
    %212 = arith.addf %210, %211 : vector<8x128xf32>
    %213 = vector.extract_strided_slice %188 {offsets = [0, 256], sizes = [8, 128], strides = [1, 1]} : vector<8x512xbf16> to vector<8x128xbf16>
    %214 = arith.extf %213 : vector<8x128xbf16> to vector<8x128xf32>
    %c0_114 = arith.constant 0 : index
    %c256_115 = arith.constant 256 : index
    %215 = vector.load %arg5[%c0_114, %c256_115] : memref<128x512xbf16, #tpu.memory_space<vmem>>, vector<128x128xbf16>
    %cst_116 = arith.constant dense<0.000000e+00> : vector<8x128xf32>
    %216 = tpu.matmul %185, %215, %cst_116 {dimension_numbers = #tpu.dot_dimension_numbers<[1], [0], [0], [1], [0, 0, 1, 1], [], []>} : vector<8x128xbf16>, vector<128x128xbf16>, vector<8x128xf32> -> vector<8x128xf32>
    %217 = arith.addf %214, %216 : vector<8x128xf32>
    %218 = math.tanh %217 : vector<8x128xf32>
    %219 = vector.extract_strided_slice %188 {offsets = [0, 384], sizes = [8, 128], strides = [1, 1]} : vector<8x512xbf16> to vector<8x128xbf16>
    %220 = arith.extf %219 : vector<8x128xbf16> to vector<8x128xf32>
    %c0_117 = arith.constant 0 : index
    %c384_118 = arith.constant 384 : index
    %221 = vector.load %arg5[%c0_117, %c384_118] : memref<128x512xbf16, #tpu.memory_space<vmem>>, vector<128x128xbf16>
    %cst_119 = arith.constant dense<0.000000e+00> : vector<8x128xf32>
    %222 = tpu.matmul %185, %221, %cst_119 {dimension_numbers = #tpu.dot_dimension_numbers<[1], [0], [0], [1], [0, 0, 1, 1], [], []>} : vector<8x128xbf16>, vector<128x128xbf16>, vector<8x128xf32> -> vector<8x128xf32>
    %223 = arith.addf %220, %222 : vector<8x128xf32>
    %cst_120 = arith.constant 5.000000e-01 : f32
    %224 = vector.broadcast %cst_120 : f32 to vector<8x128xf32>
    %225 = arith.mulf %224, %223 : vector<8x128xf32>
    %226 = math.tanh %225 : vector<8x128xf32>
    %cst_121 = arith.constant 5.000000e-01 : f32
    %227 = vector.broadcast %cst_121 : f32 to vector<8x128xf32>
    %228 = arith.mulf %227, %226 : vector<8x128xf32>
    %cst_122 = arith.constant 5.000000e-01 : f32
    %229 = vector.broadcast %cst_122 : f32 to vector<8x128xf32>
    %230 = arith.addf %228, %229 : vector<8x128xf32>
    %231 = arith.mulf %212, %184 : vector<8x128xf32>
    %232 = arith.mulf %200, %218 : vector<8x128xf32>
    %233 = arith.addf %231, %232 : vector<8x128xf32>
    %234 = math.tanh %233 : vector<8x128xf32>
    %235 = arith.mulf %230, %234 : vector<8x128xf32>
    %c0_123 = arith.constant 0 : index
    %c0_124 = arith.constant 0 : index
    %236 = vector.load %arg9[%c0_123, %c0_124] : memref<8x128xf32, #tpu.memory_space<vmem>>, vector<8x128xf32>
    tpu.vector_store %arg9[%c0_123, %c0_124], %235 {strides = array<i32>} : memref<8x128xf32, #tpu.memory_space<vmem>>, vector<8x128xf32>,
    %c0_125 = arith.constant 0 : index
    %c0_126 = arith.constant 0 : index
    %237 = vector.load %arg10[%c0_125, %c0_126] : memref<8x128xf32, #tpu.memory_space<vmem>>, vector<8x128xf32>
    tpu.vector_store %arg10[%c0_125, %c0_126], %233 {strides = array<i32>} : memref<8x128xf32, #tpu.memory_space<vmem>>, vector<8x128xf32>,
    %238 = arith.truncf %235 : vector<8x128xf32> to vector<8x128xbf16>
    %239 = arith.index_cast %c3_i32 : i32 to index
    %c0_127 = arith.constant 0 : index
    %c0_128 = arith.constant 0 : index
    %240 = vector.load %arg6[%239, %c0_127, %c0_128] : memref<8x8x128xbf16, #tpu.memory_space<vmem>>, vector<1x8x128xbf16>
    %241 = vector.shape_cast %240 : vector<1x8x128xbf16> to vector<8x128xbf16>
    %242 = vector.shape_cast %238 : vector<8x128xbf16> to vector<1x8x128xbf16>
    tpu.vector_store %arg6[%239, %c0_127, %c0_128], %242 {strides = array<i32>} : memref<8x8x128xbf16, #tpu.memory_space<vmem>>, vector<1x8x128xbf16>,
    %c4_i32 = arith.constant 4 : i32
    %c0_129 = arith.constant 0 : index
    %c0_130 = arith.constant 0 : index
    %243 = vector.load %arg9[%c0_129, %c0_130] : memref<8x128xf32, #tpu.memory_space<vmem>>, vector<8x128xf32>
    %c0_131 = arith.constant 0 : index
    %c0_132 = arith.constant 0 : index
    %244 = vector.load %arg10[%c0_131, %c0_132] : memref<8x128xf32, #tpu.memory_space<vmem>>, vector<8x128xf32>
    %245 = arith.truncf %243 : vector<8x128xf32> to vector<8x128xbf16>
    %246 = arith.index_cast %c4_i32 : i32 to index
    %c0_133 = arith.constant 0 : index
    %c0_134 = arith.constant 0 : index
    %247 = vector.load %arg2[%246, %c0_133, %c0_134] : memref<8x8x512xbf16, #tpu.memory_space<vmem>>, vector<1x8x512xbf16>
    %248 = vector.shape_cast %247 : vector<1x8x512xbf16> to vector<8x512xbf16>
    %249 = vector.extract_strided_slice %248 {offsets = [0, 0], sizes = [8, 128], strides = [1, 1]} : vector<8x512xbf16> to vector<8x128xbf16>
    %250 = arith.extf %249 : vector<8x128xbf16> to vector<8x128xf32>
    %c0_135 = arith.constant 0 : index
    %c0_136 = arith.constant 0 : index
    %251 = vector.load %arg5[%c0_135, %c0_136] : memref<128x512xbf16, #tpu.memory_space<vmem>>, vector<128x128xbf16>
    %cst_137 = arith.constant dense<0.000000e+00> : vector<8x128xf32>
    %252 = tpu.matmul %245, %251, %cst_137 {dimension_numbers = #tpu.dot_dimension_numbers<[1], [0], [0], [1], [0, 0, 1, 1], [], []>} : vector<8x128xbf16>, vector<128x128xbf16>, vector<8x128xf32> -> vector<8x128xf32>
    %253 = arith.addf %250, %252 : vector<8x128xf32>
    %cst_138 = arith.constant 5.000000e-01 : f32
    %254 = vector.broadcast %cst_138 : f32 to vector<8x128xf32>
    %255 = arith.mulf %254, %253 : vector<8x128xf32>
    %256 = math.tanh %255 : vector<8x128xf32>
    %cst_139 = arith.constant 5.000000e-01 : f32
    %257 = vector.broadcast %cst_139 : f32 to vector<8x128xf32>
    %258 = arith.mulf %257, %256 : vector<8x128xf32>
    %cst_140 = arith.constant 5.000000e-01 : f32
    %259 = vector.broadcast %cst_140 : f32 to vector<8x128xf32>
    %260 = arith.addf %258, %259 : vector<8x128xf32>
    %261 = vector.extract_strided_slice %248 {offsets = [0, 128], sizes = [8, 128], strides = [1, 1]} : vector<8x512xbf16> to vector<8x128xbf16>
    %262 = arith.extf %261 : vector<8x128xbf16> to vector<8x128xf32>
    %c0_141 = arith.constant 0 : index
    %c128_142 = arith.constant 128 : index
    %263 = vector.load %arg5[%c0_141, %c128_142] : memref<128x512xbf16, #tpu.memory_space<vmem>>, vector<128x128xbf16>
    %cst_143 = arith.constant dense<0.000000e+00> : vector<8x128xf32>
    %264 = tpu.matmul %245, %263, %cst_143 {dimension_numbers = #tpu.dot_dimension_numbers<[1], [0], [0], [1], [0, 0, 1, 1], [], []>} : vector<8x128xbf16>, vector<128x128xbf16>, vector<8x128xf32> -> vector<8x128xf32>
    %265 = arith.addf %262, %264 : vector<8x128xf32>
    %cst_144 = arith.constant 5.000000e-01 : f32
    %266 = vector.broadcast %cst_144 : f32 to vector<8x128xf32>
    %267 = arith.mulf %266, %265 : vector<8x128xf32>
    %268 = math.tanh %267 : vector<8x128xf32>
    %cst_145 = arith.constant 5.000000e-01 : f32
    %269 = vector.broadcast %cst_145 : f32 to vector<8x128xf32>
    %270 = arith.mulf %269, %268 : vector<8x128xf32>
    %cst_146 = arith.constant 5.000000e-01 : f32
    %271 = vector.broadcast %cst_146 : f32 to vector<8x128xf32>
    %272 = arith.addf %270, %271 : vector<8x128xf32>
    %273 = vector.extract_strided_slice %248 {offsets = [0, 256], sizes = [8, 128], strides = [1, 1]} : vector<8x512xbf16> to vector<8x128xbf16>
    %274 = arith.extf %273 : vector<8x128xbf16> to vector<8x128xf32>
    %c0_147 = arith.constant 0 : index
    %c256_148 = arith.constant 256 : index
    %275 = vector.load %arg5[%c0_147, %c256_148] : memref<128x512xbf16, #tpu.memory_space<vmem>>, vector<128x128xbf16>
    %cst_149 = arith.constant dense<0.000000e+00> : vector<8x128xf32>
    %276 = tpu.matmul %245, %275, %cst_149 {dimension_numbers = #tpu.dot_dimension_numbers<[1], [0], [0], [1], [0, 0, 1, 1], [], []>} : vector<8x128xbf16>, vector<128x128xbf16>, vector<8x128xf32> -> vector<8x128xf32>
    %277 = arith.addf %274, %276 : vector<8x128xf32>
    %278 = math.tanh %277 : vector<8x128xf32>
    %279 = vector.extract_strided_slice %248 {offsets = [0, 384], sizes = [8, 128], strides = [1, 1]} : vector<8x512xbf16> to vector<8x128xbf16>
    %280 = arith.extf %279 : vector<8x128xbf16> to vector<8x128xf32>
    %c0_150 = arith.constant 0 : index
    %c384_151 = arith.constant 384 : index
    %281 = vector.load %arg5[%c0_150, %c384_151] : memref<128x512xbf16, #tpu.memory_space<vmem>>, vector<128x128xbf16>
    %cst_152 = arith.constant dense<0.000000e+00> : vector<8x128xf32>
    %282 = tpu.matmul %245, %281, %cst_152 {dimension_numbers = #tpu.dot_dimension_numbers<[1], [0], [0], [1], [0, 0, 1, 1], [], []>} : vector<8x128xbf16>, vector<128x128xbf16>, vector<8x128xf32> -> vector<8x128xf32>
    %283 = arith.addf %280, %282 : vector<8x128xf32>
    %cst_153 = arith.constant 5.000000e-01 : f32
    %284 = vector.broadcast %cst_153 : f32 to vector<8x128xf32>
    %285 = arith.mulf %284, %283 : vector<8x128xf32>
    %286 = math.tanh %285 : vector<8x128xf32>
    %cst_154 = arith.constant 5.000000e-01 : f32
    %287 = vector.broadcast %cst_154 : f32 to vector<8x128xf32>
    %288 = arith.mulf %287, %286 : vector<8x128xf32>
    %cst_155 = arith.constant 5.000000e-01 : f32
    %289 = vector.broadcast %cst_155 : f32 to vector<8x128xf32>
    %290 = arith.addf %288, %289 : vector<8x128xf32>
    %291 = arith.mulf %272, %244 : vector<8x128xf32>
    %292 = arith.mulf %260, %278 : vector<8x128xf32>
    %293 = arith.addf %291, %292 : vector<8x128xf32>
    %294 = math.tanh %293 : vector<8x128xf32>
    %295 = arith.mulf %290, %294 : vector<8x128xf32>
    %c0_156 = arith.constant 0 : index
    %c0_157 = arith.constant 0 : index
    %296 = vector.load %arg9[%c0_156, %c0_157] : memref<8x128xf32, #tpu.memory_space<vmem>>, vector<8x128xf32>
    tpu.vector_store %arg9[%c0_156, %c0_157], %295 {strides = array<i32>} : memref<8x128xf32, #tpu.memory_space<vmem>>, vector<8x128xf32>,
    %c0_158 = arith.constant 0 : index
    %c0_159 = arith.constant 0 : index
    %297 = vector.load %arg10[%c0_158, %c0_159] : memref<8x128xf32, #tpu.memory_space<vmem>>, vector<8x128xf32>
    tpu.vector_store %arg10[%c0_158, %c0_159], %293 {strides = array<i32>} : memref<8x128xf32, #tpu.memory_space<vmem>>, vector<8x128xf32>,
    %298 = arith.truncf %295 : vector<8x128xf32> to vector<8x128xbf16>
    %299 = arith.index_cast %c4_i32 : i32 to index
    %c0_160 = arith.constant 0 : index
    %c0_161 = arith.constant 0 : index
    %300 = vector.load %arg6[%299, %c0_160, %c0_161] : memref<8x8x128xbf16, #tpu.memory_space<vmem>>, vector<1x8x128xbf16>
    %301 = vector.shape_cast %300 : vector<1x8x128xbf16> to vector<8x128xbf16>
    %302 = vector.shape_cast %298 : vector<8x128xbf16> to vector<1x8x128xbf16>
    tpu.vector_store %arg6[%299, %c0_160, %c0_161], %302 {strides = array<i32>} : memref<8x8x128xbf16, #tpu.memory_space<vmem>>, vector<1x8x128xbf16>,
    %c5_i32 = arith.constant 5 : i32
    %c0_162 = arith.constant 0 : index
    %c0_163 = arith.constant 0 : index
    %303 = vector.load %arg9[%c0_162, %c0_163] : memref<8x128xf32, #tpu.memory_space<vmem>>, vector<8x128xf32>
    %c0_164 = arith.constant 0 : index
    %c0_165 = arith.constant 0 : index
    %304 = vector.load %arg10[%c0_164, %c0_165] : memref<8x128xf32, #tpu.memory_space<vmem>>, vector<8x128xf32>
    %305 = arith.truncf %303 : vector<8x128xf32> to vector<8x128xbf16>
    %306 = arith.index_cast %c5_i32 : i32 to index
    %c0_166 = arith.constant 0 : index
    %c0_167 = arith.constant 0 : index
    %307 = vector.load %arg2[%306, %c0_166, %c0_167] : memref<8x8x512xbf16, #tpu.memory_space<vmem>>, vector<1x8x512xbf16>
    %308 = vector.shape_cast %307 : vector<1x8x512xbf16> to vector<8x512xbf16>
    %309 = vector.extract_strided_slice %308 {offsets = [0, 0], sizes = [8, 128], strides = [1, 1]} : vector<8x512xbf16> to vector<8x128xbf16>
    %310 = arith.extf %309 : vector<8x128xbf16> to vector<8x128xf32>
    %c0_168 = arith.constant 0 : index
    %c0_169 = arith.constant 0 : index
    %311 = vector.load %arg5[%c0_168, %c0_169] : memref<128x512xbf16, #tpu.memory_space<vmem>>, vector<128x128xbf16>
    %cst_170 = arith.constant dense<0.000000e+00> : vector<8x128xf32>
    %312 = tpu.matmul %305, %311, %cst_170 {dimension_numbers = #tpu.dot_dimension_numbers<[1], [0], [0], [1], [0, 0, 1, 1], [], []>} : vector<8x128xbf16>, vector<128x128xbf16>, vector<8x128xf32> -> vector<8x128xf32>
    %313 = arith.addf %310, %312 : vector<8x128xf32>
    %cst_171 = arith.constant 5.000000e-01 : f32
    %314 = vector.broadcast %cst_171 : f32 to vector<8x128xf32>
    %315 = arith.mulf %314, %313 : vector<8x128xf32>
    %316 = math.tanh %315 : vector<8x128xf32>
    %cst_172 = arith.constant 5.000000e-01 : f32
    %317 = vector.broadcast %cst_172 : f32 to vector<8x128xf32>
    %318 = arith.mulf %317, %316 : vector<8x128xf32>
    %cst_173 = arith.constant 5.000000e-01 : f32
    %319 = vector.broadcast %cst_173 : f32 to vector<8x128xf32>
    %320 = arith.addf %318, %319 : vector<8x128xf32>
    %321 = vector.extract_strided_slice %308 {offsets = [0, 128], sizes = [8, 128], strides = [1, 1]} : vector<8x512xbf16> to vector<8x128xbf16>
    %322 = arith.extf %321 : vector<8x128xbf16> to vector<8x128xf32>
    %c0_174 = arith.constant 0 : index
    %c128_175 = arith.constant 128 : index
    %323 = vector.load %arg5[%c0_174, %c128_175] : memref<128x512xbf16, #tpu.memory_space<vmem>>, vector<128x128xbf16>
    %cst_176 = arith.constant dense<0.000000e+00> : vector<8x128xf32>
    %324 = tpu.matmul %305, %323, %cst_176 {dimension_numbers = #tpu.dot_dimension_numbers<[1], [0], [0], [1], [0, 0, 1, 1], [], []>} : vector<8x128xbf16>, vector<128x128xbf16>, vector<8x128xf32> -> vector<8x128xf32>
    %325 = arith.addf %322, %324 : vector<8x128xf32>
    %cst_177 = arith.constant 5.000000e-01 : f32
    %326 = vector.broadcast %cst_177 : f32 to vector<8x128xf32>
    %327 = arith.mulf %326, %325 : vector<8x128xf32>
    %328 = math.tanh %327 : vector<8x128xf32>
    %cst_178 = arith.constant 5.000000e-01 : f32
    %329 = vector.broadcast %cst_178 : f32 to vector<8x128xf32>
    %330 = arith.mulf %329, %328 : vector<8x128xf32>
    %cst_179 = arith.constant 5.000000e-01 : f32
    %331 = vector.broadcast %cst_179 : f32 to vector<8x128xf32>
    %332 = arith.addf %330, %331 : vector<8x128xf32>
    %333 = vector.extract_strided_slice %308 {offsets = [0, 256], sizes = [8, 128], strides = [1, 1]} : vector<8x512xbf16> to vector<8x128xbf16>
    %334 = arith.extf %333 : vector<8x128xbf16> to vector<8x128xf32>
    %c0_180 = arith.constant 0 : index
    %c256_181 = arith.constant 256 : index
    %335 = vector.load %arg5[%c0_180, %c256_181] : memref<128x512xbf16, #tpu.memory_space<vmem>>, vector<128x128xbf16>
    %cst_182 = arith.constant dense<0.000000e+00> : vector<8x128xf32>
    %336 = tpu.matmul %305, %335, %cst_182 {dimension_numbers = #tpu.dot_dimension_numbers<[1], [0], [0], [1], [0, 0, 1, 1], [], []>} : vector<8x128xbf16>, vector<128x128xbf16>, vector<8x128xf32> -> vector<8x128xf32>
    %337 = arith.addf %334, %336 : vector<8x128xf32>
    %338 = math.tanh %337 : vector<8x128xf32>
    %339 = vector.extract_strided_slice %308 {offsets = [0, 384], sizes = [8, 128], strides = [1, 1]} : vector<8x512xbf16> to vector<8x128xbf16>
    %340 = arith.extf %339 : vector<8x128xbf16> to vector<8x128xf32>
    %c0_183 = arith.constant 0 : index
    %c384_184 = arith.constant 384 : index
    %341 = vector.load %arg5[%c0_183, %c384_184] : memref<128x512xbf16, #tpu.memory_space<vmem>>, vector<128x128xbf16>
    %cst_185 = arith.constant dense<0.000000e+00> : vector<8x128xf32>
    %342 = tpu.matmul %305, %341, %cst_185 {dimension_numbers = #tpu.dot_dimension_numbers<[1], [0], [0], [1], [0, 0, 1, 1], [], []>} : vector<8x128xbf16>, vector<128x128xbf16>, vector<8x128xf32> -> vector<8x128xf32>
    %343 = arith.addf %340, %342 : vector<8x128xf32>
    %cst_186 = arith.constant 5.000000e-01 : f32
    %344 = vector.broadcast %cst_186 : f32 to vector<8x128xf32>
    %345 = arith.mulf %344, %343 : vector<8x128xf32>
    %346 = math.tanh %345 : vector<8x128xf32>
    %cst_187 = arith.constant 5.000000e-01 : f32
    %347 = vector.broadcast %cst_187 : f32 to vector<8x128xf32>
    %348 = arith.mulf %347, %346 : vector<8x128xf32>
    %cst_188 = arith.constant 5.000000e-01 : f32
    %349 = vector.broadcast %cst_188 : f32 to vector<8x128xf32>
    %350 = arith.addf %348, %349 : vector<8x128xf32>
    %351 = arith.mulf %332, %304 : vector<8x128xf32>
    %352 = arith.mulf %320, %338 : vector<8x128xf32>
    %353 = arith.addf %351, %352 : vector<8x128xf32>
    %354 = math.tanh %353 : vector<8x128xf32>
    %355 = arith.mulf %350, %354 : vector<8x128xf32>
    %c0_189 = arith.constant 0 : index
    %c0_190 = arith.constant 0 : index
    %356 = vector.load %arg9[%c0_189, %c0_190] : memref<8x128xf32, #tpu.memory_space<vmem>>, vector<8x128xf32>
    tpu.vector_store %arg9[%c0_189, %c0_190], %355 {strides = array<i32>} : memref<8x128xf32, #tpu.memory_space<vmem>>, vector<8x128xf32>,
    %c0_191 = arith.constant 0 : index
    %c0_192 = arith.constant 0 : index
    %357 = vector.load %arg10[%c0_191, %c0_192] : memref<8x128xf32, #tpu.memory_space<vmem>>, vector<8x128xf32>
    tpu.vector_store %arg10[%c0_191, %c0_192], %353 {strides = array<i32>} : memref<8x128xf32, #tpu.memory_space<vmem>>, vector<8x128xf32>,
    %358 = arith.truncf %355 : vector<8x128xf32> to vector<8x128xbf16>
    %359 = arith.index_cast %c5_i32 : i32 to index
    %c0_193 = arith.constant 0 : index
    %c0_194 = arith.constant 0 : index
    %360 = vector.load %arg6[%359, %c0_193, %c0_194] : memref<8x8x128xbf16, #tpu.memory_space<vmem>>, vector<1x8x128xbf16>
    %361 = vector.shape_cast %360 : vector<1x8x128xbf16> to vector<8x128xbf16>
    %362 = vector.shape_cast %358 : vector<8x128xbf16> to vector<1x8x128xbf16>
    tpu.vector_store %arg6[%359, %c0_193, %c0_194], %362 {strides = array<i32>} : memref<8x8x128xbf16, #tpu.memory_space<vmem>>, vector<1x8x128xbf16>,
    %c6_i32 = arith.constant 6 : i32
    %c0_195 = arith.constant 0 : index
    %c0_196 = arith.constant 0 : index
    %363 = vector.load %arg9[%c0_195, %c0_196] : memref<8x128xf32, #tpu.memory_space<vmem>>, vector<8x128xf32>
    %c0_197 = arith.constant 0 : index
    %c0_198 = arith.constant 0 : index
    %364 = vector.load %arg10[%c0_197, %c0_198] : memref<8x128xf32, #tpu.memory_space<vmem>>, vector<8x128xf32>
    %365 = arith.truncf %363 : vector<8x128xf32> to vector<8x128xbf16>
    %366 = arith.index_cast %c6_i32 : i32 to index
    %c0_199 = arith.constant 0 : index
    %c0_200 = arith.constant 0 : index
    %367 = vector.load %arg2[%366, %c0_199, %c0_200] : memref<8x8x512xbf16, #tpu.memory_space<vmem>>, vector<1x8x512xbf16>
    %368 = vector.shape_cast %367 : vector<1x8x512xbf16> to vector<8x512xbf16>
    %369 = vector.extract_strided_slice %368 {offsets = [0, 0], sizes = [8, 128], strides = [1, 1]} : vector<8x512xbf16> to vector<8x128xbf16>
    %370 = arith.extf %369 : vector<8x128xbf16> to vector<8x128xf32>
    %c0_201 = arith.constant 0 : index
    %c0_202 = arith.constant 0 : index
    %371 = vector.load %arg5[%c0_201, %c0_202] : memref<128x512xbf16, #tpu.memory_space<vmem>>, vector<128x128xbf16>
    %cst_203 = arith.constant dense<0.000000e+00> : vector<8x128xf32>
    %372 = tpu.matmul %365, %371, %cst_203 {dimension_numbers = #tpu.dot_dimension_numbers<[1], [0], [0], [1], [0, 0, 1, 1], [], []>} : vector<8x128xbf16>, vector<128x128xbf16>, vector<8x128xf32> -> vector<8x128xf32>
    %373 = arith.addf %370, %372 : vector<8x128xf32>
    %cst_204 = arith.constant 5.000000e-01 : f32
    %374 = vector.broadcast %cst_204 : f32 to vector<8x128xf32>
    %375 = arith.mulf %374, %373 : vector<8x128xf32>
    %376 = math.tanh %375 : vector<8x128xf32>
    %cst_205 = arith.constant 5.000000e-01 : f32
    %377 = vector.broadcast %cst_205 : f32 to vector<8x128xf32>
    %378 = arith.mulf %377, %376 : vector<8x128xf32>
    %cst_206 = arith.constant 5.000000e-01 : f32
    %379 = vector.broadcast %cst_206 : f32 to vector<8x128xf32>
    %380 = arith.addf %378, %379 : vector<8x128xf32>
    %381 = vector.extract_strided_slice %368 {offsets = [0, 128], sizes = [8, 128], strides = [1, 1]} : vector<8x512xbf16> to vector<8x128xbf16>
    %382 = arith.extf %381 : vector<8x128xbf16> to vector<8x128xf32>
    %c0_207 = arith.constant 0 : index
    %c128_208 = arith.constant 128 : index
    %383 = vector.load %arg5[%c0_207, %c128_208] : memref<128x512xbf16, #tpu.memory_space<vmem>>, vector<128x128xbf16>
    %cst_209 = arith.constant dense<0.000000e+00> : vector<8x128xf32>
    %384 = tpu.matmul %365, %383, %cst_209 {dimension_numbers = #tpu.dot_dimension_numbers<[1], [0], [0], [1], [0, 0, 1, 1], [], []>} : vector<8x128xbf16>, vector<128x128xbf16>, vector<8x128xf32> -> vector<8x128xf32>
    %385 = arith.addf %382, %384 : vector<8x128xf32>
    %cst_210 = arith.constant 5.000000e-01 : f32
    %386 = vector.broadcast %cst_210 : f32 to vector<8x128xf32>
    %387 = arith.mulf %386, %385 : vector<8x128xf32>
    %388 = math.tanh %387 : vector<8x128xf32>
    %cst_211 = arith.constant 5.000000e-01 : f32
    %389 = vector.broadcast %cst_211 : f32 to vector<8x128xf32>
    %390 = arith.mulf %389, %388 : vector<8x128xf32>
    %cst_212 = arith.constant 5.000000e-01 : f32
    %391 = vector.broadcast %cst_212 : f32 to vector<8x128xf32>
    %392 = arith.addf %390, %391 : vector<8x128xf32>
    %393 = vector.extract_strided_slice %368 {offsets = [0, 256], sizes = [8, 128], strides = [1, 1]} : vector<8x512xbf16> to vector<8x128xbf16>
    %394 = arith.extf %393 : vector<8x128xbf16> to vector<8x128xf32>
    %c0_213 = arith.constant 0 : index
    %c256_214 = arith.constant 256 : index
    %395 = vector.load %arg5[%c0_213, %c256_214] : memref<128x512xbf16, #tpu.memory_space<vmem>>, vector<128x128xbf16>
    %cst_215 = arith.constant dense<0.000000e+00> : vector<8x128xf32>
    %396 = tpu.matmul %365, %395, %cst_215 {dimension_numbers = #tpu.dot_dimension_numbers<[1], [0], [0], [1], [0, 0, 1, 1], [], []>} : vector<8x128xbf16>, vector<128x128xbf16>, vector<8x128xf32> -> vector<8x128xf32>
    %397 = arith.addf %394, %396 : vector<8x128xf32>
    %398 = math.tanh %397 : vector<8x128xf32>
    %399 = vector.extract_strided_slice %368 {offsets = [0, 384], sizes = [8, 128], strides = [1, 1]} : vector<8x512xbf16> to vector<8x128xbf16>
    %400 = arith.extf %399 : vector<8x128xbf16> to vector<8x128xf32>
    %c0_216 = arith.constant 0 : index
    %c384_217 = arith.constant 384 : index
    %401 = vector.load %arg5[%c0_216, %c384_217] : memref<128x512xbf16, #tpu.memory_space<vmem>>, vector<128x128xbf16>
    %cst_218 = arith.constant dense<0.000000e+00> : vector<8x128xf32>
    %402 = tpu.matmul %365, %401, %cst_218 {dimension_numbers = #tpu.dot_dimension_numbers<[1], [0], [0], [1], [0, 0, 1, 1], [], []>} : vector<8x128xbf16>, vector<128x128xbf16>, vector<8x128xf32> -> vector<8x128xf32>
    %403 = arith.addf %400, %402 : vector<8x128xf32>
    %cst_219 = arith.constant 5.000000e-01 : f32
    %404 = vector.broadcast %cst_219 : f32 to vector<8x128xf32>
    %405 = arith.mulf %404, %403 : vector<8x128xf32>
    %406 = math.tanh %405 : vector<8x128xf32>
    %cst_220 = arith.constant 5.000000e-01 : f32
    %407 = vector.broadcast %cst_220 : f32 to vector<8x128xf32>
    %408 = arith.mulf %407, %406 : vector<8x128xf32>
    %cst_221 = arith.constant 5.000000e-01 : f32
    %409 = vector.broadcast %cst_221 : f32 to vector<8x128xf32>
    %410 = arith.addf %408, %409 : vector<8x128xf32>
    %411 = arith.mulf %392, %364 : vector<8x128xf32>
    %412 = arith.mulf %380, %398 : vector<8x128xf32>
    %413 = arith.addf %411, %412 : vector<8x128xf32>
    %414 = math.tanh %413 : vector<8x128xf32>
    %415 = arith.mulf %410, %414 : vector<8x128xf32>
    %c0_222 = arith.constant 0 : index
    %c0_223 = arith.constant 0 : index
    %416 = vector.load %arg9[%c0_222, %c0_223] : memref<8x128xf32, #tpu.memory_space<vmem>>, vector<8x128xf32>
    tpu.vector_store %arg9[%c0_222, %c0_223], %415 {strides = array<i32>} : memref<8x128xf32, #tpu.memory_space<vmem>>, vector<8x128xf32>,
    %c0_224 = arith.constant 0 : index
    %c0_225 = arith.constant 0 : index
    %417 = vector.load %arg10[%c0_224, %c0_225] : memref<8x128xf32, #tpu.memory_space<vmem>>, vector<8x128xf32>
    tpu.vector_store %arg10[%c0_224, %c0_225], %413 {strides = array<i32>} : memref<8x128xf32, #tpu.memory_space<vmem>>, vector<8x128xf32>,
    %418 = arith.truncf %415 : vector<8x128xf32> to vector<8x128xbf16>
    %419 = arith.index_cast %c6_i32 : i32 to index
    %c0_226 = arith.constant 0 : index
    %c0_227 = arith.constant 0 : index
    %420 = vector.load %arg6[%419, %c0_226, %c0_227] : memref<8x8x128xbf16, #tpu.memory_space<vmem>>, vector<1x8x128xbf16>
    %421 = vector.shape_cast %420 : vector<1x8x128xbf16> to vector<8x128xbf16>
    %422 = vector.shape_cast %418 : vector<8x128xbf16> to vector<1x8x128xbf16>
    tpu.vector_store %arg6[%419, %c0_226, %c0_227], %422 {strides = array<i32>} : memref<8x8x128xbf16, #tpu.memory_space<vmem>>, vector<1x8x128xbf16>,
    %c7_i32 = arith.constant 7 : i32
    %c0_228 = arith.constant 0 : index
    %c0_229 = arith.constant 0 : index
    %423 = vector.load %arg9[%c0_228, %c0_229] : memref<8x128xf32, #tpu.memory_space<vmem>>, vector<8x128xf32>
    %c0_230 = arith.constant 0 : index
    %c0_231 = arith.constant 0 : index
    %424 = vector.load %arg10[%c0_230, %c0_231] : memref<8x128xf32, #tpu.memory_space<vmem>>, vector<8x128xf32>
    %425 = arith.truncf %423 : vector<8x128xf32> to vector<8x128xbf16>
    %426 = arith.index_cast %c7_i32 : i32 to index
    %c0_232 = arith.constant 0 : index
    %c0_233 = arith.constant 0 : index
    %427 = vector.load %arg2[%426, %c0_232, %c0_233] : memref<8x8x512xbf16, #tpu.memory_space<vmem>>, vector<1x8x512xbf16>
    %428 = vector.shape_cast %427 : vector<1x8x512xbf16> to vector<8x512xbf16>
    %429 = vector.extract_strided_slice %428 {offsets = [0, 0], sizes = [8, 128], strides = [1, 1]} : vector<8x512xbf16> to vector<8x128xbf16>
    %430 = arith.extf %429 : vector<8x128xbf16> to vector<8x128xf32>
    %c0_234 = arith.constant 0 : index
    %c0_235 = arith.constant 0 : index
    %431 = vector.load %arg5[%c0_234, %c0_235] : memref<128x512xbf16, #tpu.memory_space<vmem>>, vector<128x128xbf16>
    %cst_236 = arith.constant dense<0.000000e+00> : vector<8x128xf32>
    %432 = tpu.matmul %425, %431, %cst_236 {dimension_numbers = #tpu.dot_dimension_numbers<[1], [0], [0], [1], [0, 0, 1, 1], [], []>} : vector<8x128xbf16>, vector<128x128xbf16>, vector<8x128xf32> -> vector<8x128xf32>
    %433 = arith.addf %430, %432 : vector<8x128xf32>
    %cst_237 = arith.constant 5.000000e-01 : f32
    %434 = vector.broadcast %cst_237 : f32 to vector<8x128xf32>
    %435 = arith.mulf %434, %433 : vector<8x128xf32>
    %436 = math.tanh %435 : vector<8x128xf32>
    %cst_238 = arith.constant 5.000000e-01 : f32
    %437 = vector.broadcast %cst_238 : f32 to vector<8x128xf32>
    %438 = arith.mulf %437, %436 : vector<8x128xf32>
    %cst_239 = arith.constant 5.000000e-01 : f32
    %439 = vector.broadcast %cst_239 : f32 to vector<8x128xf32>
    %440 = arith.addf %438, %439 : vector<8x128xf32>
    %441 = vector.extract_strided_slice %428 {offsets = [0, 128], sizes = [8, 128], strides = [1, 1]} : vector<8x512xbf16> to vector<8x128xbf16>
    %442 = arith.extf %441 : vector<8x128xbf16> to vector<8x128xf32>
    %c0_240 = arith.constant 0 : index
    %c128_241 = arith.constant 128 : index
    %443 = vector.load %arg5[%c0_240, %c128_241] : memref<128x512xbf16, #tpu.memory_space<vmem>>, vector<128x128xbf16>
    %cst_242 = arith.constant dense<0.000000e+00> : vector<8x128xf32>
    %444 = tpu.matmul %425, %443, %cst_242 {dimension_numbers = #tpu.dot_dimension_numbers<[1], [0], [0], [1], [0, 0, 1, 1], [], []>} : vector<8x128xbf16>, vector<128x128xbf16>, vector<8x128xf32> -> vector<8x128xf32>
    %445 = arith.addf %442, %444 : vector<8x128xf32>
    %cst_243 = arith.constant 5.000000e-01 : f32
    %446 = vector.broadcast %cst_243 : f32 to vector<8x128xf32>
    %447 = arith.mulf %446, %445 : vector<8x128xf32>
    %448 = math.tanh %447 : vector<8x128xf32>
    %cst_244 = arith.constant 5.000000e-01 : f32
    %449 = vector.broadcast %cst_244 : f32 to vector<8x128xf32>
    %450 = arith.mulf %449, %448 : vector<8x128xf32>
    %cst_245 = arith.constant 5.000000e-01 : f32
    %451 = vector.broadcast %cst_245 : f32 to vector<8x128xf32>
    %452 = arith.addf %450, %451 : vector<8x128xf32>
    %453 = vector.extract_strided_slice %428 {offsets = [0, 256], sizes = [8, 128], strides = [1, 1]} : vector<8x512xbf16> to vector<8x128xbf16>
    %454 = arith.extf %453 : vector<8x128xbf16> to vector<8x128xf32>
    %c0_246 = arith.constant 0 : index
    %c256_247 = arith.constant 256 : index
    %455 = vector.load %arg5[%c0_246, %c256_247] : memref<128x512xbf16, #tpu.memory_space<vmem>>, vector<128x128xbf16>
    %cst_248 = arith.constant dense<0.000000e+00> : vector<8x128xf32>
    %456 = tpu.matmul %425, %455, %cst_248 {dimension_numbers = #tpu.dot_dimension_numbers<[1], [0], [0], [1], [0, 0, 1, 1], [], []>} : vector<8x128xbf16>, vector<128x128xbf16>, vector<8x128xf32> -> vector<8x128xf32>
    %457 = arith.addf %454, %456 : vector<8x128xf32>
    %458 = math.tanh %457 : vector<8x128xf32>
    %459 = vector.extract_strided_slice %428 {offsets = [0, 384], sizes = [8, 128], strides = [1, 1]} : vector<8x512xbf16> to vector<8x128xbf16>
    %460 = arith.extf %459 : vector<8x128xbf16> to vector<8x128xf32>
    %c0_249 = arith.constant 0 : index
    %c384_250 = arith.constant 384 : index
    %461 = vector.load %arg5[%c0_249, %c384_250] : memref<128x512xbf16, #tpu.memory_space<vmem>>, vector<128x128xbf16>
    %cst_251 = arith.constant dense<0.000000e+00> : vector<8x128xf32>
    %462 = tpu.matmul %425, %461, %cst_251 {dimension_numbers = #tpu.dot_dimension_numbers<[1], [0], [0], [1], [0, 0, 1, 1], [], []>} : vector<8x128xbf16>, vector<128x128xbf16>, vector<8x128xf32> -> vector<8x128xf32>
    %463 = arith.addf %460, %462 : vector<8x128xf32>
    %cst_252 = arith.constant 5.000000e-01 : f32
    %464 = vector.broadcast %cst_252 : f32 to vector<8x128xf32>
    %465 = arith.mulf %464, %463 : vector<8x128xf32>
    %466 = math.tanh %465 : vector<8x128xf32>
    %cst_253 = arith.constant 5.000000e-01 : f32
    %467 = vector.broadcast %cst_253 : f32 to vector<8x128xf32>
    %468 = arith.mulf %467, %466 : vector<8x128xf32>
    %cst_254 = arith.constant 5.000000e-01 : f32
    %469 = vector.broadcast %cst_254 : f32 to vector<8x128xf32>
    %470 = arith.addf %468, %469 : vector<8x128xf32>
    %471 = arith.mulf %452, %424 : vector<8x128xf32>
    %472 = arith.mulf %440, %458 : vector<8x128xf32>
    %473 = arith.addf %471, %472 : vector<8x128xf32>
    %474 = math.tanh %473 : vector<8x128xf32>
    %475 = arith.mulf %470, %474 : vector<8x128xf32>
    %c0_255 = arith.constant 0 : index
    %c0_256 = arith.constant 0 : index
    %476 = vector.load %arg9[%c0_255, %c0_256] : memref<8x128xf32, #tpu.memory_space<vmem>>, vector<8x128xf32>
    tpu.vector_store %arg9[%c0_255, %c0_256], %475 {strides = array<i32>} : memref<8x128xf32, #tpu.memory_space<vmem>>, vector<8x128xf32>,
    %c0_257 = arith.constant 0 : index
    %c0_258 = arith.constant 0 : index
    %477 = vector.load %arg10[%c0_257, %c0_258] : memref<8x128xf32, #tpu.memory_space<vmem>>, vector<8x128xf32>
    tpu.vector_store %arg10[%c0_257, %c0_258], %473 {strides = array<i32>} : memref<8x128xf32, #tpu.memory_space<vmem>>, vector<8x128xf32>,
    %478 = arith.truncf %475 : vector<8x128xf32> to vector<8x128xbf16>
    %479 = arith.index_cast %c7_i32 : i32 to index
    %c0_259 = arith.constant 0 : index
    %c0_260 = arith.constant 0 : index
    %480 = vector.load %arg6[%479, %c0_259, %c0_260] : memref<8x8x128xbf16, #tpu.memory_space<vmem>>, vector<1x8x128xbf16>
    %481 = vector.shape_cast %480 : vector<1x8x128xbf16> to vector<8x128xbf16>
    %482 = vector.shape_cast %478 : vector<8x128xbf16> to vector<1x8x128xbf16>
    tpu.vector_store %arg6[%479, %c0_259, %c0_260], %482 {strides = array<i32>} : memref<8x8x128xbf16, #tpu.memory_space<vmem>>, vector<1x8x128xbf16>,
    %c8_i32 = arith.constant 8 : i32
    %c0_i32_261 = arith.constant 0 : i32
    %483 = arith.cmpi eq, %arg1, %c0_i32_261 : i32
    %484 = arith.extui %483 : i1 to i32
    %c0_i32_262 = arith.constant 0 : i32
    %485 = arith.cmpi ne, %484, %c0_i32_262 : i32
    scf.if %485 {
      %c0_263 = arith.constant 0 : index
      %c0_264 = arith.constant 0 : index
      %486 = vector.load %arg9[%c0_263, %c0_264] : memref<8x128xf32, #tpu.memory_space<vmem>>, vector<8x128xf32>
      %c0_265 = arith.constant 0 : index
      %c0_266 = arith.constant 0 : index
      %487 = vector.load %arg7[%c0_265, %c0_266] : memref<8x128xf32, #tpu.memory_space<vmem>>, vector<8x128xf32>
      tpu.vector_store %arg7[%c0_265, %c0_266], %486 {strides = array<i32>} : memref<8x128xf32, #tpu.memory_space<vmem>>, vector<8x128xf32>,
      %c0_267 = arith.constant 0 : index
      %c0_268 = arith.constant 0 : index
      %488 = vector.load %arg10[%c0_267, %c0_268] : memref<8x128xf32, #tpu.memory_space<vmem>>, vector<8x128xf32>
      %c0_269 = arith.constant 0 : index
      %c0_270 = arith.constant 0 : index
      %489 = vector.load %arg8[%c0_269, %c0_270] : memref<8x128xf32, #tpu.memory_space<vmem>>, vector<8x128xf32>
      tpu.vector_store %arg8[%c0_269, %c0_270], %488 {strides = array<i32>} : memref<8x128xf32, #tpu.memory_space<vmem>>, vector<8x128xf32>,
    } else {
    }
    return
  }
  func.func @transform_0(%arg0: i32, %arg1: i32) -> (i32, i32, i32) {
    %c0_i32 = arith.constant 0 : i32
    %c0_i32_0 = arith.constant 0 : i32
    return %arg1, %arg0, %c0_i32 : i32, i32, i32
  }
  func.func @transform_1(%arg0: i32, %arg1: i32) -> (i32, i32) {
    %c0_i32 = arith.constant 0 : i32
    %c0_i32_0 = arith.constant 0 : i32
    return %arg0, %c0_i32 : i32, i32
  }
  func.func @transform_2(%arg0: i32, %arg1: i32) -> (i32, i32) {
    %c0_i32 = arith.constant 0 : i32
    %c0_i32_0 = arith.constant 0 : i32
    return %arg0, %c0_i32 : i32, i32
  }
  func.func @transform_3(%arg0: i32, %arg1: i32) -> (i32, i32) {
    %c0_i32 = arith.constant 0 : i32
    %c0_i32_0 = arith.constant 0 : i32
    %c0_i32_1 = arith.constant 0 : i32
    return %c0_i32, %c0_i32_0 : i32, i32
  }
  func.func @transform_4(%arg0: i32, %arg1: i32) -> (i32, i32, i32) {
    %c0_i32 = arith.constant 0 : i32
    %c0_i32_0 = arith.constant 0 : i32
    return %arg1, %arg0, %c0_i32 : i32, i32, i32
  }
  func.func @transform_5(%arg0: i32, %arg1: i32) -> (i32, i32) {
    %c0_i32 = arith.constant 0 : i32
    %c0_i32_0 = arith.constant 0 : i32
    return %arg0, %c0_i32 : i32, i32
  }
  func.func @transform_6(%arg0: i32, %arg1: i32) -> (i32, i32) {
    %c0_i32 = arith.constant 0 : i32
    %c0_i32_0 = arith.constant 0 : i32
    return %arg0, %c0_i32 : i32, i32
  }
}

</mosaic_0001>

<bundles_post_ra>
// kernel: lstm_lm_forward.9
= control target key start
LH: loop header
LB: loop body
LE: loop exit
PB: predicated region body
PF: predicated region fallthrough
CT: control target
= control target key end

     0   :  { %v210_v0 = vmov 0.0   ;;  %vm211_vm0 = vmmov 0   ;;  %s268_s1 = inlined_call_operand.vmem [shape: bf16[128,128], index: 1, kind: input, shape index: {}]   ;;  %s269_s0 = inlined_call_operand.vmem [shape: bf16[16,128], index: 0, kind: input, shape index: {}]   ;;  %s270_s2 = inlined_call_operand.vmem [shape: f32[1,128], index: 2, kind: input, shape index: {}]   ;;  %s271_s3 = inlined_call_operand.vmem [shape: f32[16,128], index: 3, kind: output, shape index: {}]  }
   0x1   :  { %179 = vmatprep.subr.bf16.mxu0 %v210_v0  ;;  %v201_v1 = vld [vmem:[%s268_s1] sm:$0xff]   ;;  %195 = vmatprep.mubr.msk.bf16.mxu0 %vm211_vm0, %v210_v0  ;;  %v202_v2 = vld [vmem:[%s268_s1 + $0x8] sm:$0xff]   ;;  %v203_v3 = vld [vmem:[%s268_s1 + $0x10] sm:$0xff]  }
   0x2   :  { %180 = vmatpush3.bf16.msra.mxu0 %v201_v1  ;;  %v204_v4 = vld [vmem:[%s268_s1 + $0x18] sm:$0xff]   ;;  %v205_v5 = vld [vmem:[%s268_s1 + $0x20] sm:$0xff]   ;;  %v206_v6 = vld [vmem:[%s268_s1 + $0x28] sm:$0xff]  }
   0x3   :  { %181 = vmatprep.subr.bf16.mxu0 %v210_v0  ;;  %v207_v7 = vld [vmem:[%s268_s1 + $0x30] sm:$0xff]   ;;  %v208_v8 = vld [vmem:[%s268_s1 + $0x38] sm:$0xff]   ;;  %v209_v9 = vld [vmem:[%s269_s0] sm:$0xff]  }
   0x4   :  { %v169_v10 = vld [vmem:[%s270_s2] ss:$0 sm:$0xff] }
   0x6   :  { %182 = vmatpush3.bf16.msra.mxu0 %v202_v2 }
   0x7   :  { %183 = vmatprep.subr.bf16.mxu0 %v210_v0 }
   0xa   :  { %184 = vmatpush3.bf16.msra.mxu0 %v203_v3 }
   0xb   :  { %185 = vmatprep.subr.bf16.mxu0 %v210_v0 }
   0xe   :  { %186 = vmatpush3.bf16.msra.mxu0 %v204_v4 }
   0xf   :  { %187 = vmatprep.subr.bf16.mxu0 %v210_v0 }
  0x12   :  { %188 = vmatpush3.bf16.msra.mxu0 %v205_v5 }
  0x13   :  { %189 = vmatprep.subr.bf16.mxu0 %v210_v0 }
  0x16   :  { %190 = vmatpush3.bf16.msra.mxu0 %v206_v6 }
  0x17   :  { %191 = vmatprep.subr.bf16.mxu0 %v210_v0 }
  0x1a   :  { %192 = vmatpush3.bf16.msra.mxu0 %v207_v7 }
  0x1b   :  { %193 = vmatprep.subr.bf16.mxu0 %v210_v0 }
  0x1e   :  { %194 = vmatpush3.bf16.msra.mxu0 %v208_v8 }
  0x21   :  { %196 = vmatmul.mubr.bf16.vlgmr.msra.gmra.mrb[0].mxu0 %v209_v9 }
  0xf4   :  { %v129_v11 = vpop.f32.mrb[0].mxu0 }
  0xf5   :  { %v152_v12 = vadd.f32 %v169_v10, %v129_v11  ;;  %v197_v13 = vpop.f32.mrb[1].mxu0 }
  0xf6   :  { %v132_v14 = vpop.f32.mrb[2].mxu0 }
  0xf7   :  { %154 = vst [vmem:[%s271_s3] sm:$0xff] %v152_v12  ;;  %v153_v15 = vadd.f32 %v169_v10, %v132_v14  ;;  %v198_v16 = vpop.f32.mrb[3].mxu0 }
  0xf9   :  { %155 = vst [vmem:[%s271_s3 + $0x8] sm:$0xff] %v153_v15 }

// kernel: lstm_lm_forward.5
= control target key start
LH: loop header
LB: loop body
LE: loop exit
PB: predicated region body
PF: predicated region fallthrough
CT: control target
= control target key end

     0   :  { %v843_v1 = vmov 0   ;;  %v554_v37 = vlaneseq  ;;  %s1071_s1 = inlined_call_operand.vmem [shape: bf16[128,512], index: 1, kind: input, shape index: {}]   ;;  %s1072_s0 = inlined_call_operand.vmem [shape: bf16[64,128], index: 0, kind: input, shape index: {}]   ;;  %s1073_s2 = inlined_call_operand.vmem [shape: f32[1,512], index: 2, kind: input, shape index: {}]   ;;  %s1074_s3 = inlined_call_operand.vmem [shape: bf16[64,512], index: 3, kind: output, shape index: {}]  }
   0x1   :  { %v791_v0 = vld [vmem:[%s1071_s1 + $0x4] ss:$16 sps:$4 sm:$0xff]   ;;  %339 = vmatprep.mubr.bf16.mxu0 %v843_v1  ;;  %412 = vmatprep.mubr.bf16.mxu1 %v843_v1  ;;  %v793_v2 = vld [vmem:[%s1071_s1 + $0xc] ss:$16 sps:$4 sm:$0xff]   ;;  %v795_v3 = vld [vmem:[%s1071_s1] ss:$16 sps:$4 sm:$0xff]  }
   0x2   :  { %307 = vmatprep.subr.bf16.mxu0 %v791_v0  ;;  %v796_v4 = vld [vmem:[%s1071_s1 + $0x8] ss:$16 sps:$4 sm:$0xff]   ;;  %380 = vmatprep.subr.bf16.mxu1 %v793_v2  ;;  %v797_v5 = vld [vmem:[%s1071_s1 + $0x24] ss:$16 sps:$4 sm:$0xff]   ;;  %v799_v6 = vld [vmem:[%s1071_s1 + $0x2c] ss:$16 sps:$4 sm:$0xff]  }
   0x3   :  { %308 = vmatpush1.bf16.msra.mxu0 %v795_v3  ;;  %381 = vmatpush1.bf16.msra.mxu1 %v796_v4  ;;  %v801_v7 = vld [vmem:[%s1071_s1 + $0x20] ss:$16 sps:$4 sm:$0xff]   ;;  %v802_v8 = vld [vmem:[%s1071_s1 + $0x28] ss:$16 sps:$4 sm:$0xff]   ;;  %v803_v9 = vld [vmem:[%s1071_s1 + $0x44] ss:$16 sps:$4 sm:$0xff]  }
   0x4   :  { %309 = vmatprep.subr.bf16.mxu0 %v797_v5  ;;  %382 = vmatprep.subr.bf16.mxu1 %v799_v6  ;;  %v805_v10 = vld [vmem:[%s1071_s1 + $0x4c] ss:$16 sps:$4 sm:$0xff]   ;;  %v807_v11 = vld [vmem:[%s1071_s1 + $0x40] ss:$16 sps:$4 sm:$0xff]   ;;  %v808_v12 = vld [vmem:[%s1071_s1 + $0x48] ss:$16 sps:$4 sm:$0xff]  }
   0x5   :  { %v809_v13 = vld [vmem:[%s1071_s1 + $0x64] ss:$16 sps:$4 sm:$0xff]   ;;  %v811_v14 = vld [vmem:[%s1071_s1 + $0x6c] ss:$16 sps:$4 sm:$0xff]   ;;  %v813_v15 = vld [vmem:[%s1071_s1 + $0x60] ss:$16 sps:$4 sm:$0xff]  }
   0x6   :  { %v814_v16 = vld [vmem:[%s1071_s1 + $0x68] ss:$16 sps:$4 sm:$0xff]   ;;  %v815_v17 = vld [vmem:[%s1071_s1 + $0x84] ss:$16 sps:$4 sm:$0xff]   ;;  %v817_v18 = vld [vmem:[%s1071_s1 + $0x8c] ss:$16 sps:$4 sm:$0xff]  }
   0x7   :  { %310 = vmatpush1.bf16.msra.mxu0 %v801_v7  ;;  %383 = vmatpush1.bf16.msra.mxu1 %v802_v8  ;;  %v819_v19 = vld [vmem:[%s1071_s1 + $0x80] ss:$16 sps:$4 sm:$0xff]   ;;  %v820_v20 = vld [vmem:[%s1071_s1 + $0x88] ss:$16 sps:$4 sm:$0xff]   ;;  %v821_v21 = vld [vmem:[%s1071_s1 + $0xa4] ss:$16 sps:$4 sm:$0xff]  }
   0x8   :  { %311 = vmatprep.subr.bf16.mxu0 %v803_v9  ;;  %384 = vmatprep.subr.bf16.mxu1 %v805_v10  ;;  %v823_v22 = vld [vmem:[%s1071_s1 + $0xac] ss:$16 sps:$4 sm:$0xff]   ;;  %v825_v23 = vld [vmem:[%s1071_s1 + $0xa0] ss:$16 sps:$4 sm:$0xff]   ;;  %v826_v24 = vld [vmem:[%s1071_s1 + $0xa8] ss:$16 sps:$4 sm:$0xff]  }
   0x9   :  { %v827_v25 = vld [vmem:[%s1071_s1 + $0xc4] ss:$16 sps:$4 sm:$0xff]   ;;  %v829_v26 = vld [vmem:[%s1071_s1 + $0xcc] ss:$16 sps:$4 sm:$0xff]   ;;  %v831_v27 = vld [vmem:[%s1071_s1 + $0xc0] ss:$16 sps:$4 sm:$0xff]  }
   0xa   :  { %v832_v28 = vld [vmem:[%s1071_s1 + $0xc8] ss:$16 sps:$4 sm:$0xff]   ;;  %v833_v29 = vld [vmem:[%s1071_s1 + $0xe4] ss:$16 sps:$4 sm:$0xff]   ;;  %v835_v30 = vld [vmem:[%s1071_s1 + $0xec] ss:$16 sps:$4 sm:$0xff]  }
   0xb   :  { %312 = vmatpush1.bf16.msra.mxu0 %v807_v11  ;;  %385 = vmatpush1.bf16.msra.mxu1 %v808_v12  ;;  %v837_v31 = vld [vmem:[%s1071_s1 + $0xe0] ss:$16 sps:$4 sm:$0xff]   ;;  %v838_v32 = vld [vmem:[%s1071_s1 + $0xe8] ss:$16 sps:$4 sm:$0xff]   ;;  %v555_v38 = vshrl.u32 %v554_v37, 7 }
   0xc   :  { %313 = vmatprep.subr.bf16.mxu0 %v809_v13  ;;  %386 = vmatprep.subr.bf16.mxu1 %v811_v14  ;;  %v839_v33 = vld [vmem:[%s1072_s0] sm:$0xff]   ;;  %v840_v34 = vld [vmem:[%s1072_s0 + $0x8] sm:$0xff]   ;;  %v841_v35 = vld [vmem:[%s1072_s0 + $0x10] sm:$0xff]  }
   0xd   :  { %v842_v36 = vld [vmem:[%s1072_s0 + $0x18] sm:$0xff]   ;;  %v556_v39 = vsub.s32 0, %v555_v38  ;;  %v564_v40 = vsub.s32 2, %v555_v38  ;;  %v552_v41 = vld [vmem:[%s1073_s2] sm:$0xf]  ;;  %v560_v42 = vsub.s32 1, %v555_v38 }
   0xe   :  { %v568_v43 = vsub.s32 3, %v555_v38 }
   0xf   :  { %314 = vmatpush1.bf16.msra.mxu0 %v813_v15  ;;  %387 = vmatpush1.bf16.msra.mxu1 %v814_v16  ;;  %v983_v44 = vrot.slane %v552_v41, %v556_v39  ;;  %v985_v45 = vrot.slane %v552_v41, %v564_v40  ;;  %v987_v46 = vrot.slane %v552_v41, %v560_v42 }
  0x10   :  { %315 = vmatprep.subr.bf16.mxu0 %v815_v17  ;;  %388 = vmatprep.subr.bf16.mxu1 %v817_v18  ;;  %v989_v47 = vrot.slane %v552_v41, %v568_v43 }
  0x13   :  { %316 = vmatpush1.bf16.msra.mxu0 %v819_v19  ;;  %389 = vmatpush1.bf16.msra.mxu1 %v820_v20 }
  0x14   :  { %317 = vmatprep.subr.bf16.mxu0 %v821_v21  ;;  %390 = vmatprep.subr.bf16.mxu1 %v823_v22 }
  0x17   :  { %318 = vmatpush1.bf16.msra.mxu0 %v825_v23  ;;  %391 = vmatpush1.bf16.msra.mxu1 %v826_v24 }
  0x18   :  { %319 = vmatprep.subr.bf16.mxu0 %v827_v25  ;;  %392 = vmatprep.subr.bf16.mxu1 %v829_v26 }
  0x1b   :  { %320 = vmatpush1.bf16.msra.mxu0 %v831_v27  ;;  %393 = vmatpush1.bf16.msra.mxu1 %v832_v28 }
  0x1c   :  { %321 = vmatprep.subr.bf16.mxu0 %v833_v29  ;;  %394 = vmatprep.subr.bf16.mxu1 %v835_v30 }
  0x1f   :  { %322 = vmatpush1.bf16.msra.mxu0 %v837_v31  ;;  %395 = vmatpush1.bf16.msra.mxu1 %v838_v32 }
  0x22   :  { %340 = vmatmul.mubr.bf16.vlgmr.msra.gmra.mrb[0].mxu0 %v839_v33  ;;  %413 = vmatmul.mubr.bf16.vlgmr.msra.gmra.mrb[0].mxu1 %v839_v33 }
  0x23   :  { %349 = vmatprep.mubr.bf16.mxu0 %v843_v1  ;;  %422 = vmatprep.mubr.bf16.mxu1 %v843_v1 }
  0x2a   :  { %350 = vmatmul.mubr.bf16.gmra.mrb[4].mxu0 %v840_v34  ;;  %423 = vmatmul.mubr.bf16.gmra.mrb[4].mxu1 %v840_v34 }
  0x2b   :  { %359 = vmatprep.mubr.bf16.mxu0 %v843_v1  ;;  %432 = vmatprep.mubr.bf16.mxu1 %v843_v1 }
  0x32   :  { %360 = vmatmul.mubr.bf16.gmra.mrb[8].mxu0 %v841_v35  ;;  %433 = vmatmul.mubr.bf16.gmra.mrb[8].mxu1 %v841_v35 }
  0x33   :  { %369 = vmatprep.mubr.bf16.mxu0 %v843_v1  ;;  %442 = vmatprep.mubr.bf16.mxu1 %v843_v1 }
  0x3a   :  { %370 = vmatmul.mubr.bf16.gmra.mrb[12].mxu0 %v842_v36  ;;  %443 = vmatmul.mubr.bf16.gmra.mrb[12].mxu1 %v842_v36 }
  0xf5   :  { %v341_v48 = vpop.f32.mrb[0].mxu0  ;;  %v414_v49 = vpop.f32.mrb[0].mxu1 }
  0xf6   :  { %v574_v50 = vadd.f32 %v983_v44, %v341_v48  ;;  %v576_v51 = vadd.f32 %v985_v45, %v414_v49  ;;  %v343_v52 = vpop.f32.mrb[1].mxu0  ;;  %v416_v53 = vpop.f32.mrb[1].mxu1 }
  0xf7   :  { %v575_v54 = vadd.f32 %v987_v46, %v343_v52  ;;  %v577_v55 = vadd.f32 %v989_v47, %v416_v53  ;;  %v345_v56 = vpop.f32.mrb[2].mxu0  ;;  %v418_v57 = vpop.f32.mrb[2].mxu1 }
  0xf8   :  { %v578_v58 = vadd.f32 %v983_v44, %v345_v56  ;;  %v580_v59 = vadd.f32 %v985_v45, %v418_v57  ;;  %v347_v60 = vpop.f32.mrb[3].mxu0  ;;  %v420_v61 = vpop.f32.mrb[3].mxu1 }
  0xf9   :  { %v774_v62 = vpack.c.bf16 %v575_v54, %v574_v50  ;;  %v775_v63 = vpack.c.bf16 %v577_v55, %v576_v51  ;;  %v579_v0 = vadd.f32 %v987_v46, %v347_v60  ;;  %v581_v1 = vadd.f32 %v989_v47, %v420_v61 }
  0xfb   :  { %702 = vst [vmem:[%s1074_s3] sm:$0xff] %v774_v62  ;;  %703 = vst [vmem:[%s1074_s3 + $0x8] sm:$0xff] %v775_v63  ;;  %v776_v2 = vpack.c.bf16 %v579_v0, %v578_v58  ;;  %v777_v3 = vpack.c.bf16 %v581_v1, %v580_v59 }
  0xfd   :  { %704 = vst [vmem:[%s1074_s3 + $0x10] sm:$0xff] %v776_v2  ;;  %705 = vst [vmem:[%s1074_s3 + $0x18] sm:$0xff] %v777_v3  ;;  %v351_v4 = vpop.f32.mrb[4].mxu0  ;;  %v424_v5 = vpop.f32.mrb[4].mxu1 }
  0xfe   :  { %v582_v6 = vadd.f32 %v983_v44, %v351_v4  ;;  %v584_v7 = vadd.f32 %v985_v45, %v424_v5  ;;  %v353_v8 = vpop.f32.mrb[5].mxu0  ;;  %v426_v9 = vpop.f32.mrb[5].mxu1 }
  0xff   :  { %v583_v10 = vadd.f32 %v987_v46, %v353_v8  ;;  %v585_v11 = vadd.f32 %v989_v47, %v426_v9  ;;  %v355_v12 = vpop.f32.mrb[6].mxu0  ;;  %v428_v13 = vpop.f32.mrb[6].mxu1 }
 0x100   :  { %v586_v14 = vadd.f32 %v983_v44, %v355_v12  ;;  %v588_v15 = vadd.f32 %v985_v45, %v428_v13  ;;  %v357_v16 = vpop.f32.mrb[7].mxu0  ;;  %v430_v17 = vpop.f32.mrb[7].mxu1 }
 0x101   :  { %v778_v18 = vpack.c.bf16 %v583_v10, %v582_v6  ;;  %v779_v19 = vpack.c.bf16 %v585_v11, %v584_v7  ;;  %v587_v20 = vadd.f32 %v987_v46, %v357_v16  ;;  %v589_v21 = vadd.f32 %v989_v47, %v430_v17 }
 0x103   :  { %706 = vst [vmem:[%s1074_s3 + $0x20] sm:$0xff] %v778_v18  ;;  %707 = vst [vmem:[%s1074_s3 + $0x28] sm:$0xff] %v779_v19  ;;  %v780_v22 = vpack.c.bf16 %v587_v20, %v586_v14  ;;  %v781_v23 = vpack.c.bf16 %v589_v21, %v588_v15 }
 0x105   :  { %708 = vst [vmem:[%s1074_s3 + $0x30] sm:$0xff] %v780_v22  ;;  %709 = vst [vmem:[%s1074_s3 + $0x38] sm:$0xff] %v781_v23  ;;  %v361_v24 = vpop.f32.mrb[8].mxu0  ;;  %v434_v25 = vpop.f32.mrb[8].mxu1 }
 0x106   :  { %v590_v26 = vadd.f32 %v983_v44, %v361_v24  ;;  %v592_v27 = vadd.f32 %v985_v45, %v434_v25  ;;  %v363_v28 = vpop.f32.mrb[9].mxu0  ;;  %v436_v29 = vpop.f32.mrb[9].mxu1 }
 0x107   :  { %v591_v30 = vadd.f32 %v987_v46, %v363_v28  ;;  %v593_v31 = vadd.f32 %v989_v47, %v436_v29  ;;  %v365_v32 = vpop.f32.mrb[10].mxu0  ;;  %v438_v33 = vpop.f32.mrb[10].mxu1 }
 0x108   :  { %v594_v34 = vadd.f32 %v983_v44, %v365_v32  ;;  %v596_v35 = vadd.f32 %v985_v45, %v438_v33  ;;  %v367_v36 = vpop.f32.mrb[11].mxu0  ;;  %v440_v37 = vpop.f32.mrb[11].mxu1 }
 0x109   :  { %v782_v38 = vpack.c.bf16 %v591_v30, %v590_v26  ;;  %v783_v39 = vpack.c.bf16 %v593_v31, %v592_v27  ;;  %v595_v40 = vadd.f32 %v987_v46, %v367_v36  ;;  %v597_v41 = vadd.f32 %v989_v47, %v440_v37 }
 0x10b   :  { %710 = vst [vmem:[%s1074_s3 + $0x40] sm:$0xff] %v782_v38  ;;  %711 = vst [vmem:[%s1074_s3 + $0x48] sm:$0xff] %v783_v39  ;;  %v784_v42 = vpack.c.bf16 %v595_v40, %v594_v34  ;;  %v785_v43 = vpack.c.bf16 %v597_v41, %v596_v35 }
 0x10d   :  { %712 = vst [vmem:[%s1074_s3 + $0x50] sm:$0xff] %v784_v42  ;;  %713 = vst [vmem:[%s1074_s3 + $0x58] sm:$0xff] %v785_v43  ;;  %v371_v48 = vpop.f32.mrb[12].mxu0  ;;  %v444_v49 = vpop.f32.mrb[12].mxu1 }
 0x10e   :  { %v598_v50 = vadd.f32 %v983_v44, %v371_v48  ;;  %v600_v51 = vadd.f32 %v985_v45, %v444_v49  ;;  %v373_v52 = vpop.f32.mrb[13].mxu0  ;;  %v446_v53 = vpop.f32.mrb[13].mxu1 }
 0x10f   :  { %v599_v54 = vadd.f32 %v987_v46, %v373_v52  ;;  %v601_v55 = vadd.f32 %v989_v47, %v446_v53  ;;  %v375_v56 = vpop.f32.mrb[14].mxu0  ;;  %v448_v57 = vpop.f32.mrb[14].mxu1 }
 0x110   :  { %v602_v58 = vadd.f32 %v983_v44, %v375_v56  ;;  %v604_v59 = vadd.f32 %v985_v45, %v448_v57  ;;  %v377_v60 = vpop.f32.mrb[15].mxu0  ;;  %v450_v61 = vpop.f32.mrb[15].mxu1 }
 0x111   :  { %v786_v62 = vpack.c.bf16 %v599_v54, %v598_v50  ;;  %v787_v63 = vpack.c.bf16 %v601_v55, %v600_v51  ;;  %v603_v0 = vadd.f32 %v987_v46, %v377_v60  ;;  %v605_v1 = vadd.f32 %v989_v47, %v450_v61 }
 0x113   :  { %714 = vst [vmem:[%s1074_s3 + $0x60] sm:$0xff] %v786_v62  ;;  %715 = vst [vmem:[%s1074_s3 + $0x68] sm:$0xff] %v787_v63  ;;  %v788_v2 = vpack.c.bf16 %v603_v0, %v602_v58  ;;  %v789_v44 = vpack.c.bf16 %v605_v1, %v604_v59 }
 0x115   :  { %716 = vst [vmem:[%s1074_s3 + $0x70] sm:$0xff] %v788_v2  ;;  %717 = vst [vmem:[%s1074_s3 + $0x78] sm:$0xff] %v789_v44 }

// kernel: lstm_lm_forward.6
= control target key start
LH: loop header
LB: loop body
LE: loop exit
PB: predicated region body
PF: predicated region fallthrough
CT: control target
= control target key end

     0   :  { %v5261_v0 = vmov 0.0   ;;  %vm5262_vm0 = vmmov 0   ;;  %s6498_s3 = inlined_call_operand.vmem [shape: bf16[128,512], index: 3, kind: input, shape index: {}]   ;;  %s6499_s1 = inlined_call_operand.vmem [shape: f32[8,128], index: 1, kind: input, shape index: {}]   ;;  %s6500_s0 = inlined_call_operand.vmem [shape: bf16[8,8,512], index: 0, kind: input, shape index: {}]   ;;  %s6501_s2 = inlined_call_operand.vmem [shape: f32[8,128], index: 2, kind: input, shape index: {}]   ;;  %s6502_s4 = inlined_call_operand.vmem [shape: bf16[8,8,128], index: 4, kind: output, shape index: {0}]   ;;  %s6503_s6 = inlined_call_operand.vmem [shape: f32[8,128], index: 6, kind: output, shape index: {2}]   ;;  %s6504_s5 = inlined_call_operand.vmem [shape: f32[8,128], index: 5, kind: output, shape index: {1}]  }
   0x1   :  { %4283 = vmatprep.subr.bf16.mxu0 %v5261_v0  ;;  %v4925_v1 = vld [vmem:[%s6498_s3] ss:$16 sps:$4 sm:$0xff]   ;;  %4303 = vmatprep.subr.bf16.mxu1 %v5261_v0  ;;  %v4927_v3 = vld [vmem:[%s6498_s3 + $0x4] ss:$16 sps:$4 sm:$0xff]   ;;  %v4940_v19 = vld [vmem:[%s6498_s3 + $0x8] ss:$16 sps:$4 sm:$0xff]  }
   0x2   :  { %v4926_v2 = vld [vmem:[%s6498_s3 + $0x20] ss:$16 sps:$4 sm:$0xff]   ;;  %4299 = vmatprep.mubr.msk.bf16.mxu0 %vm5262_vm0, %v5261_v0  ;;  %4319 = vmatprep.mubr.msk.bf16.mxu1 %vm5262_vm0, %v5261_v0  ;;  %v4929_v4 = vld [vmem:[%s6498_s3 + $0x24] ss:$16 sps:$4 sm:$0xff]   ;;  %v4942_v20 = vld [vmem:[%s6498_s3 + $0x28] ss:$16 sps:$4 sm:$0xff]  }
   0x3   :  { %4284 = vmatpush3.bf16.msra.mxu0 %v4925_v1  ;;  %4304 = vmatpush3.bf16.msra.mxu1 %v4927_v3  ;;  %v4928_v5 = vld [vmem:[%s6498_s3 + $0x40] ss:$16 sps:$4 sm:$0xff]   ;;  %v4931_v6 = vld [vmem:[%s6498_s3 + $0x44] ss:$16 sps:$4 sm:$0xff]   ;;  %v4943_v21 = vld [vmem:[%s6498_s3 + $0xc] ss:$16 sps:$4 sm:$0xff]  }
   0x4   :  { %4285 = vmatprep.subr.bf16.mxu0 %v5261_v0  ;;  %4305 = vmatprep.subr.bf16.mxu1 %v5261_v0  ;;  %v4930_v7 = vld [vmem:[%s6498_s3 + $0x60] ss:$16 sps:$4 sm:$0xff]   ;;  %v4933_v8 = vld [vmem:[%s6498_s3 + $0x64] ss:$16 sps:$4 sm:$0xff]   ;;  %v4945_v22 = vld [vmem:[%s6498_s3 + $0x2c] ss:$16 sps:$4 sm:$0xff]  }
   0x5   :  { %v4932_v9 = vld [vmem:[%s6498_s3 + $0x80] ss:$16 sps:$4 sm:$0xff]   ;;  %v4935_v10 = vld [vmem:[%s6498_s3 + $0x84] ss:$16 sps:$4 sm:$0xff]   ;;  %v4944_v23 = vld [vmem:[%s6498_s3 + $0x48] ss:$16 sps:$4 sm:$0xff]  }
   0x6   :  { %v4934_v11 = vld [vmem:[%s6498_s3 + $0xa0] ss:$16 sps:$4 sm:$0xff]   ;;  %v4937_v12 = vld [vmem:[%s6498_s3 + $0xa4] ss:$16 sps:$4 sm:$0xff]   ;;  %v4947_v24 = vld [vmem:[%s6498_s3 + $0x4c] ss:$16 sps:$4 sm:$0xff]  }
   0x7   :  { %4286 = vmatpush3.bf16.msra.mxu0 %v4926_v2  ;;  %4306 = vmatpush3.bf16.msra.mxu1 %v4929_v4  ;;  %v4936_v13 = vld [vmem:[%s6498_s3 + $0xc0] ss:$16 sps:$4 sm:$0xff]   ;;  %v4939_v14 = vld [vmem:[%s6498_s3 + $0xc4] ss:$16 sps:$4 sm:$0xff]   ;;  %v4946_v25 = vld [vmem:[%s6498_s3 + $0x68] ss:$16 sps:$4 sm:$0xff]  }
   0x8   :  { %4287 = vmatprep.subr.bf16.mxu0 %v5261_v0  ;;  %4307 = vmatprep.subr.bf16.mxu1 %v5261_v0  ;;  %v4938_v15 = vld [vmem:[%s6498_s3 + $0xe0] ss:$16 sps:$4 sm:$0xff]   ;;  %v4941_v17 = vld [vmem:[%s6498_s3 + $0xe4] ss:$16 sps:$4 sm:$0xff]   ;;  %v4949_v26 = vld [vmem:[%s6498_s3 + $0x6c] ss:$16 sps:$4 sm:$0xff]  }
   0x9   :  { %v25_v16 = vld [vmem:[%s6499_s1] sm:$0xff]  ;;  %v4948_v27 = vld [vmem:[%s6498_s3 + $0x88] ss:$16 sps:$4 sm:$0xff]   ;;  %v4951_v28 = vld [vmem:[%s6498_s3 + $0x8c] ss:$16 sps:$4 sm:$0xff]  }
   0xa   :  { %v31_v18 = vpack.c.bf16 %v25_v16, %v25_v16  ;;  %v4950_v29 = vld [vmem:[%s6498_s3 + $0xa8] ss:$16 sps:$4 sm:$0xff]   ;;  %v4953_v30 = vld [vmem:[%s6498_s3 + $0xac] ss:$16 sps:$4 sm:$0xff]   ;;  %v4957_v35 = vld [vmem:[%s6498_s3] ss:$16 sps:$4 sm:$0xff]  }
   0xb   :  { %4288 = vmatpush3.bf16.msra.mxu0 %v4928_v5  ;;  %4308 = vmatpush3.bf16.msra.mxu1 %v4931_v6  ;;  %v4952_v31 = vld [vmem:[%s6498_s3 + $0xc8] ss:$16 sps:$4 sm:$0xff]   ;;  %v4955_v32 = vld [vmem:[%s6498_s3 + $0xcc] ss:$16 sps:$4 sm:$0xff]   ;;  %v4958_v36 = vld [vmem:[%s6498_s3 + $0x4] ss:$16 sps:$4 sm:$0xff]  }
   0xc   :  { %4289 = vmatprep.subr.bf16.mxu0 %v5261_v0  ;;  %4309 = vmatprep.subr.bf16.mxu1 %v5261_v0  ;;  %v4954_v33 = vld [vmem:[%s6498_s3 + $0xe8] ss:$16 sps:$4 sm:$0xff]   ;;  %v4956_v34 = vld [vmem:[%s6498_s3 + $0xec] ss:$16 sps:$4 sm:$0xff]   ;;  %v4959_v37 = vld [vmem:[%s6498_s3 + $0x20] ss:$16 sps:$4 sm:$0xff]  }
   0xd   :  { %v4960_v38 = vld [vmem:[%s6498_s3 + $0x24] ss:$16 sps:$4 sm:$0xff]   ;;  %v4961_v39 = vld [vmem:[%s6498_s3 + $0x40] ss:$16 sps:$4 sm:$0xff]   ;;  %v33_v4 = vld [vmem:[%s6500_s0 + $0x8] sm:$0xff] }
   0xe   :  { %v4962_v40 = vld [vmem:[%s6498_s3 + $0x44] ss:$16 sps:$4 sm:$0xff]   ;;  %v4963_v41 = vld [vmem:[%s6498_s3 + $0x60] ss:$16 sps:$4 sm:$0xff]   ;;  %v365_v5 = vrot.slane %v33_v4, 4  ;;  %v257_v6 = vunpack.c.l.bf16 %v33_v4 }
   0xf   :  { %4290 = vmatpush3.bf16.msra.mxu0 %v4930_v7  ;;  %4310 = vmatpush3.bf16.msra.mxu1 %v4933_v8  ;;  %v4964_v42 = vld [vmem:[%s6498_s3 + $0x64] ss:$16 sps:$4 sm:$0xff]   ;;  %v4965_v43 = vld [vmem:[%s6498_s3 + $0x80] ss:$16 sps:$4 sm:$0xff]  }
  0x10   :  { %4291 = vmatprep.subr.bf16.mxu0 %v5261_v0  ;;  %4311 = vmatprep.subr.bf16.mxu1 %v5261_v0  ;;  %v4966_v44 = vld [vmem:[%s6498_s3 + $0x84] ss:$16 sps:$4 sm:$0xff]   ;;  %v4967_v45 = vld [vmem:[%s6498_s3 + $0xa0] ss:$16 sps:$4 sm:$0xff]   ;;  %v367_v7 = vunpack.c.l.bf16 %v365_v5 }
  0x11   :  { %v4968_v46 = vld [vmem:[%s6498_s3 + $0xa4] ss:$16 sps:$4 sm:$0xff]   ;;  %v4969_v47 = vld [vmem:[%s6498_s3 + $0xc0] ss:$16 sps:$4 sm:$0xff]  }
  0x12   :  { %v4970_v48 = vld [vmem:[%s6498_s3 + $0xc4] ss:$16 sps:$4 sm:$0xff]   ;;  %v4971_v49 = vld [vmem:[%s6498_s3 + $0xe0] ss:$16 sps:$4 sm:$0xff]  }
  0x13   :  { %4292 = vmatpush3.bf16.msra.mxu0 %v4932_v9  ;;  %4312 = vmatpush3.bf16.msra.mxu1 %v4935_v10  ;;  %v4972_v50 = vld [vmem:[%s6498_s3 + $0xe4] ss:$16 sps:$4 sm:$0xff]  }
  0x14   :  { %4293 = vmatprep.subr.bf16.mxu0 %v5261_v0  ;;  %4313 = vmatprep.subr.bf16.mxu1 %v5261_v0  ;;  %v32_v59 = vld [vmem:[%s6500_s0] sm:$0xff] }
  0x15   :  { %v145_v60 = vrot.slane %v32_v59, 4  ;;  %v34_v62 = vunpack.c.l.bf16 %v32_v59  ;;  %v4996_v59 = vld [vmem:[%s6498_s3 + $0x64] ss:$16 sps:$4 sm:$0xff]  }
  0x16   :  { %v5004_v4 = vld [vmem:[%s6498_s3 + $0xe4] ss:$16 sps:$4 sm:$0xff]  }
  0x17   :  { %4294 = vmatpush3.bf16.msra.mxu0 %v4934_v11  ;;  %4314 = vmatpush3.bf16.msra.mxu1 %v4937_v12  ;;  %v147_v61 = vunpack.c.l.bf16 %v145_v60  ;;  %v4997_v60 = vld [vmem:[%s6498_s3 + $0x80] ss:$16 sps:$4 sm:$0xff]  }
  0x18   :  { %4295 = vmatprep.subr.bf16.mxu0 %v5261_v0  ;;  %4315 = vmatprep.subr.bf16.mxu1 %v5261_v0 }
  0x1b   :  { %4296 = vmatpush3.bf16.msra.mxu0 %v4936_v13  ;;  %4316 = vmatpush3.bf16.msra.mxu1 %v4939_v14 }
  0x1c   :  { %4297 = vmatprep.subr.bf16.mxu0 %v5261_v0  ;;  %4317 = vmatprep.subr.bf16.mxu1 %v5261_v0 }
  0x1f   :  { %4298 = vmatpush3.bf16.msra.mxu0 %v4938_v15  ;;  %4318 = vmatpush3.bf16.msra.mxu1 %v4941_v17 }
  0x20   :  { %4323 = vmatprep.subr.bf16.mxu0 %v5261_v0  ;;  %4343 = vmatprep.subr.bf16.mxu1 %v5261_v0 }
  0x22   :  { %4300 = vmatmul.mubr.bf16.vlgmr.msra.gmra.mrb[0].mxu0 %v31_v18  ;;  %4320 = vmatmul.mubr.bf16.vlgmr.msra.gmra.mrb[0].mxu1 %v31_v18 }
  0x23   :  { %4324 = vmatpush3.bf16.msra.mxu0 %v4940_v19  ;;  %4339 = vmatprep.mubr.msk.bf16.mxu0 %vm5262_vm0, %v5261_v0 }
  0x24   :  { %4325 = vmatprep.subr.bf16.mxu0 %v5261_v0  ;;  %4344 = vmatpush3.bf16.msra.mxu1 %v4943_v21 }
  0x25   :  { %4359 = vmatprep.mubr.msk.bf16.mxu1 %vm5262_vm0, %v5261_v0  ;;  %4345 = vmatprep.subr.bf16.mxu1 %v5261_v0 }
  0x27   :  { %4326 = vmatpush3.bf16.msra.mxu0 %v4942_v20 }
  0x28   :  { %4327 = vmatprep.subr.bf16.mxu0 %v5261_v0  ;;  %4346 = vmatpush3.bf16.msra.mxu1 %v4945_v22 }
  0x29   :  { %4347 = vmatprep.subr.bf16.mxu1 %v5261_v0 }
  0x2b   :  { %4328 = vmatpush3.bf16.msra.mxu0 %v4944_v23 }
  0x2c   :  { %4329 = vmatprep.subr.bf16.mxu0 %v5261_v0  ;;  %4348 = vmatpush3.bf16.msra.mxu1 %v4947_v24  ;;  %v27_v24 = vld [vmem:[%s6501_s2] sm:$0xff] }
  0x2d   :  { %4349 = vmatprep.subr.bf16.mxu1 %v5261_v0 }
  0x2f   :  { %4330 = vmatpush3.bf16.msra.mxu0 %v4946_v25 }
  0x30   :  { %4331 = vmatprep.subr.bf16.mxu0 %v5261_v0  ;;  %4350 = vmatpush3.bf16.msra.mxu1 %v4949_v26 }
  0x31   :  { %4351 = vmatprep.subr.bf16.mxu1 %v5261_v0 }
  0x33   :  { %4332 = vmatpush3.bf16.msra.mxu0 %v4948_v27 }
  0x34   :  { %4333 = vmatprep.subr.bf16.mxu0 %v5261_v0  ;;  %4352 = vmatpush3.bf16.msra.mxu1 %v4951_v28 }
  0x35   :  { %4353 = vmatprep.subr.bf16.mxu1 %v5261_v0 }
  0x37   :  { %4334 = vmatpush3.bf16.msra.mxu0 %v4950_v29 }
  0x38   :  { %4335 = vmatprep.subr.bf16.mxu0 %v5261_v0  ;;  %4354 = vmatpush3.bf16.msra.mxu1 %v4953_v30 }
  0x39   :  { %4355 = vmatprep.subr.bf16.mxu1 %v5261_v0 }
  0x3b   :  { %4336 = vmatpush3.bf16.msra.mxu0 %v4952_v31 }
  0x3c   :  { %4337 = vmatprep.subr.bf16.mxu0 %v5261_v0  ;;  %4356 = vmatpush3.bf16.msra.mxu1 %v4955_v32 }
  0x3d   :  { %4357 = vmatprep.subr.bf16.mxu1 %v5261_v0 }
  0x3f   :  { %4338 = vmatpush3.bf16.msra.mxu0 %v4954_v33 }
  0x40   :  { %4363 = vmatprep.subr.bf16.mxu0 %v5261_v0  ;;  %4358 = vmatpush3.bf16.msra.mxu1 %v4956_v34 }
  0x41   :  { %4383 = vmatprep.subr.bf16.mxu1 %v5261_v0 }
  0x42   :  { %4340 = vmatmul.mubr.bf16.vlgmr.msra.gmra.mrb[4].mxu0 %v31_v18 }
  0x43   :  { %4379 = vmatprep.mubr.msk.bf16.mxu0 %vm5262_vm0, %v5261_v0  ;;  %4360 = vmatmul.mubr.bf16.vlgmr.msra.gmra.mrb[4].mxu1 %v31_v18 }
  0x44   :  { %4399 = vmatprep.mubr.msk.bf16.mxu1 %vm5262_vm0, %v5261_v0  ;;  %4364 = vmatpush3.bf16.msra.mxu0 %v4957_v35  ;;  %v4973_v35 = vld [vmem:[%s6498_s3 + $0x8] ss:$16 sps:$4 sm:$0xff]  }
  0x45   :  { %4384 = vmatpush3.bf16.msra.mxu1 %v4958_v36  ;;  %4365 = vmatprep.subr.bf16.mxu0 %v5261_v0  ;;  %v4974_v36 = vld [vmem:[%s6498_s3 + $0xc] ss:$16 sps:$4 sm:$0xff]  }
  0x46   :  { %4385 = vmatprep.subr.bf16.mxu1 %v5261_v0 }
  0x48   :  { %4366 = vmatpush3.bf16.msra.mxu0 %v4959_v37 }
  0x49   :  { %4386 = vmatpush3.bf16.msra.mxu1 %v4960_v38  ;;  %4367 = vmatprep.subr.bf16.mxu0 %v5261_v0  ;;  %v4975_v38 = vld [vmem:[%s6498_s3 + $0x28] ss:$16 sps:$4 sm:$0xff]  }
  0x4a   :  { %4387 = vmatprep.subr.bf16.mxu1 %v5261_v0 }
  0x4c   :  { %4368 = vmatpush3.bf16.msra.mxu0 %v4961_v39  ;;  %v4976_v39 = vld [vmem:[%s6498_s3 + $0x2c] ss:$16 sps:$4 sm:$0xff]  }
  0x4d   :  { %4388 = vmatpush3.bf16.msra.mxu1 %v4962_v40  ;;  %4369 = vmatprep.subr.bf16.mxu0 %v5261_v0  ;;  %v4977_v40 = vld [vmem:[%s6498_s3 + $0x48] ss:$16 sps:$4 sm:$0xff]  }
  0x4e   :  { %4389 = vmatprep.subr.bf16.mxu1 %v5261_v0 }
  0x50   :  { %4370 = vmatpush3.bf16.msra.mxu0 %v4963_v41  ;;  %v4978_v41 = vld [vmem:[%s6498_s3 + $0x4c] ss:$16 sps:$4 sm:$0xff]  }
  0x51   :  { %4390 = vmatpush3.bf16.msra.mxu1 %v4964_v42  ;;  %4371 = vmatprep.subr.bf16.mxu0 %v5261_v0  ;;  %v4979_v42 = vld [vmem:[%s6498_s3 + $0x68] ss:$16 sps:$4 sm:$0xff]  }
  0x52   :  { %4391 = vmatprep.subr.bf16.mxu1 %v5261_v0 }
  0x54   :  { %4372 = vmatpush3.bf16.msra.mxu0 %v4965_v43  ;;  %v4980_v43 = vld [vmem:[%s6498_s3 + $0x6c] ss:$16 sps:$4 sm:$0xff]  }
  0x55   :  { %4392 = vmatpush3.bf16.msra.mxu1 %v4966_v44  ;;  %4373 = vmatprep.subr.bf16.mxu0 %v5261_v0  ;;  %v4981_v44 = vld [vmem:[%s6498_s3 + $0x88] ss:$16 sps:$4 sm:$0xff]  }
  0x56   :  { %4393 = vmatprep.subr.bf16.mxu1 %v5261_v0 }
  0x58   :  { %4374 = vmatpush3.bf16.msra.mxu0 %v4967_v45  ;;  %v4982_v45 = vld [vmem:[%s6498_s3 + $0x8c] ss:$16 sps:$4 sm:$0xff]  }
  0x59   :  { %4394 = vmatpush3.bf16.msra.mxu1 %v4968_v46  ;;  %4375 = vmatprep.subr.bf16.mxu0 %v5261_v0  ;;  %v4983_v46 = vld [vmem:[%s6498_s3 + $0xa8] ss:$16 sps:$4 sm:$0xff]  }
  0x5a   :  { %4395 = vmatprep.subr.bf16.mxu1 %v5261_v0 }
  0x5c   :  { %4376 = vmatpush3.bf16.msra.mxu0 %v4969_v47  ;;  %v4984_v47 = vld [vmem:[%s6498_s3 + $0xac] ss:$16 sps:$4 sm:$0xff]  }
  0x5d   :  { %4396 = vmatpush3.bf16.msra.mxu1 %v4970_v48  ;;  %4377 = vmatprep.subr.bf16.mxu0 %v5261_v0  ;;  %v4985_v48 = vld [vmem:[%s6498_s3 + $0xc8] ss:$16 sps:$4 sm:$0xff]  }
  0x5e   :  { %4397 = vmatprep.subr.bf16.mxu1 %v5261_v0 }
  0x60   :  { %4378 = vmatpush3.bf16.msra.mxu0 %v4971_v49  ;;  %v4986_v49 = vld [vmem:[%s6498_s3 + $0xcc] ss:$16 sps:$4 sm:$0xff]  }
  0x61   :  { %4398 = vmatpush3.bf16.msra.mxu1 %v4972_v50  ;;  %4403 = vmatprep.subr.bf16.mxu0 %v5261_v0  ;;  %v4987_v50 = vld [vmem:[%s6498_s3 + $0xe8] ss:$16 sps:$4 sm:$0xff]  }
  0x62   :  { %4423 = vmatprep.subr.bf16.mxu1 %v5261_v0 }
  0xf5   :  { %v133_v51 = vpop.f32.mrb[0].mxu0  ;;  %v246_v54 = vpop.f32.mrb[0].mxu1 }
  0xf6   :  { %v4301_v52 = vpop.f32.mrb[1].mxu0  ;;  %v4321_v56 = vpop.f32.mrb[1].mxu1  ;;  %v252_v63 = vadd.f32 %v246_v54, %v147_v61  ;;  %v139_v1 = vadd.f32 %v133_v51, %v34_v62  ;;  %v4988_v51 = vld [vmem:[%s6498_s3 + $0xec] ss:$16 sps:$4 sm:$0xff]   ;;  %v4991_v54 = vld [vmem:[%s6498_s3 + $0x20] ss:$16 sps:$4 sm:$0xff]  }
  0xf7   :  { %v136_v53 = vpop.f32.mrb[2].mxu0  ;;  %v249_v57 = vpop.f32.mrb[2].mxu1  ;;  %v4989_v52 = vld [vmem:[%s6498_s3] ss:$16 sps:$4 sm:$0xff]   ;;  %v4998_v61 = vld [vmem:[%s6498_s3 + $0x84] ss:$16 sps:$4 sm:$0xff]  }
  0xf8   :  { %v4302_v55 = vpop.f32.mrb[3].mxu0  ;;  %v4322_v58 = vpop.f32.mrb[3].mxu1  ;;  %v253_v2 = vmul.f32 0.5, %v252_v63  ;;  %v140_v3 = vmul.f32 0.5, %v139_v1  ;;  %v4990_v53 = vld [vmem:[%s6498_s3 + $0x4] ss:$16 sps:$4 sm:$0xff]  }
  0xf9   :  { %v4992_v55 = vld [vmem:[%s6498_s3 + $0x24] ss:$16 sps:$4 sm:$0xff]   ;;  %v4993_v56 = vld [vmem:[%s6498_s3 + $0x40] ss:$16 sps:$4 sm:$0xff]  }
  0xfa   :  { %5181 = vtanh.f32 %v253_v2  ;;  %v4994_v57 = vld [vmem:[%s6498_s3 + $0x44] ss:$16 sps:$4 sm:$0xff]   ;;  %v4995_v58 = vld [vmem:[%s6498_s3 + $0x60] ss:$16 sps:$4 sm:$0xff]  }
  0xfb   :  { %5183 = vtanh.f32 %v140_v3  ;;  %v4999_v62 = vld [vmem:[%s6498_s3 + $0xa0] ss:$16 sps:$4 sm:$0xff]   ;;  %v5000_v63 = vld [vmem:[%s6498_s3 + $0xa4] ss:$16 sps:$4 sm:$0xff]  }
  0xfc   :  { %v5001_v1 = vld [vmem:[%s6498_s3 + $0xc0] ss:$16 sps:$4 sm:$0xff]   ;;  %v5002_v2 = vld [vmem:[%s6498_s3 + $0xc4] ss:$16 sps:$4 sm:$0xff]  }
  0xfd   :  { %v5003_v3 = vld [vmem:[%s6498_s3 + $0xe0] ss:$16 sps:$4 sm:$0xff]  }
 0x104   :  { %v5182_v13 = vpop.eup %5181 }
 0x105   :  { %v5184_v18 = vpop.eup %5183  ;;  %v255_v21 = vmul.f32 0.5, %v5182_v13  ;;  %v3750_v13 = vld [vmem:[%s6500_s0 + $0x10] sm:$0xff] }
 0x106   :  { %v142_v22 = vmul.f32 0.5, %v5184_v18 }
 0x107   :  { %v256_v23 = vadd.f32 0.5, %v255_v21  ;;  %v3751_v21 = vld [vmem:[%s6500_s0 + $0x18] sm:$0xff] }
 0x108   :  { %v143_v25 = vadd.f32 0.5, %v142_v22  ;;  %v823_v22 = vrot.slane %v3751_v21, 4 }
 0x109   :  { %v477_v27 = vmul.f32 %v256_v23, %v27_v24  ;;  %v715_v23 = vunpack.c.l.bf16 %v3751_v21 }
 0x10a   :  { %v825_v24 = vunpack.c.l.bf16 %v823_v22 }
 0x115   :  { %v356_v8 = vpop.f32.mrb[4].mxu0 }
 0x116   :  { %v362_v9 = vadd.f32 %v356_v8, %v257_v6  ;;  %v4341_v10 = vpop.f32.mrb[5].mxu0  ;;  %v466_v12 = vpop.f32.mrb[4].mxu1 }
 0x117   :  { %v359_v11 = vpop.f32.mrb[6].mxu0  ;;  %v472_v15 = vadd.f32 %v466_v12, %v367_v7  ;;  %v4361_v16 = vpop.f32.mrb[5].mxu1 }
 0x118   :  { %5185 = vtanh.f32 %v362_v9  ;;  %v4342_v14 = vpop.f32.mrb[7].mxu0  ;;  %v469_v17 = vpop.f32.mrb[6].mxu1  ;;  %v492_v16 = vunpack.c.l.bf16 %v3750_v13 }
 0x119   :  { %v473_v19 = vmul.f32 0.5, %v472_v15  ;;  %v4362_v20 = vpop.f32.mrb[7].mxu1  ;;  %v603_v14 = vrot.slane %v3750_v13, 4  ;;  %v5029_v13 = vld [vmem:[%s6498_s3 + $0x80] ss:$16 sps:$4 sm:$0xff]  }
 0x11b   :  { %5187 = vtanh.f32 %v473_v19  ;;  %v605_v15 = vunpack.c.l.bf16 %v603_v14  ;;  %v5030_v14 = vld [vmem:[%s6498_s3 + $0x84] ss:$16 sps:$4 sm:$0xff]  }
 0x122   :  { %v5186_v26 = vpop.eup %5185 }
 0x123   :  { %v478_v28 = vmul.f32 %v5186_v26, %v143_v25 }
 0x125   :  { %v5516_v29 = vadd.f32 %v478_v28, %v477_v27  ;;  %v5188_v30 = vpop.eup %5187 }
 0x126   :  { %v475_v31 = vmul.f32 0.5, %v5188_v30 }
 0x127   :  { %5189 = vtanh.f32 %v5516_v29 }
 0x128   :  { %v476_v32 = vadd.f32 0.5, %v475_v31 }
 0x131   :  { %v5190_v33 = vpop.eup %5189 }
 0x132   :  { %v481_v34 = vmul.f32 %v5190_v33, %v476_v32 }
 0x134   :  { %v484_v37 = vpack.c.bf16 %v481_v34, %v481_v34 }
 0x136   :  { %485 = vst [vmem:[%s6502_s4] sm:$0xf] %v484_v37  ;;  %4380 = vmatmul.mubr.bf16.vlgmr.msra.gmra.mrb[8].mxu0 %v484_v37  ;;  %4400 = vmatmul.mubr.bf16.vlgmr.msra.gmra.mrb[8].mxu1 %v484_v37 }
 0x137   :  { %4404 = vmatpush3.bf16.msra.mxu0 %v4973_v35  ;;  %4424 = vmatpush3.bf16.msra.mxu1 %v4974_v36 }
 0x138   :  { %4405 = vmatprep.subr.bf16.mxu0 %v5261_v0  ;;  %4425 = vmatprep.subr.bf16.mxu1 %v5261_v0 }
 0x139   :  { %4419 = vmatprep.mubr.msk.bf16.mxu0 %vm5262_vm0, %v5261_v0  ;;  %4439 = vmatprep.mubr.msk.bf16.mxu1 %vm5262_vm0, %v5261_v0 }
 0x13b   :  { %4406 = vmatpush3.bf16.msra.mxu0 %v4975_v38  ;;  %4426 = vmatpush3.bf16.msra.mxu1 %v4976_v39 }
 0x13c   :  { %4407 = vmatprep.subr.bf16.mxu0 %v5261_v0  ;;  %4427 = vmatprep.subr.bf16.mxu1 %v5261_v0 }
 0x13f   :  { %4408 = vmatpush3.bf16.msra.mxu0 %v4977_v40  ;;  %4428 = vmatpush3.bf16.msra.mxu1 %v4978_v41 }
 0x140   :  { %4409 = vmatprep.subr.bf16.mxu0 %v5261_v0  ;;  %4429 = vmatprep.subr.bf16.mxu1 %v5261_v0 }
 0x143   :  { %4410 = vmatpush3.bf16.msra.mxu0 %v4979_v42  ;;  %4430 = vmatpush3.bf16.msra.mxu1 %v4980_v43 }
 0x144   :  { %4411 = vmatprep.subr.bf16.mxu0 %v5261_v0  ;;  %4431 = vmatprep.subr.bf16.mxu1 %v5261_v0 }
 0x147   :  { %4412 = vmatpush3.bf16.msra.mxu0 %v4981_v44  ;;  %4432 = vmatpush3.bf16.msra.mxu1 %v4982_v45 }
 0x148   :  { %4413 = vmatprep.subr.bf16.mxu0 %v5261_v0  ;;  %4433 = vmatprep.subr.bf16.mxu1 %v5261_v0 }
 0x14b   :  { %4414 = vmatpush3.bf16.msra.mxu0 %v4983_v46  ;;  %4434 = vmatpush3.bf16.msra.mxu1 %v4984_v47 }
 0x14c   :  { %4415 = vmatprep.subr.bf16.mxu0 %v5261_v0  ;;  %4435 = vmatprep.subr.bf16.mxu1 %v5261_v0 }
 0x14f   :  { %4416 = vmatpush3.bf16.msra.mxu0 %v4985_v48  ;;  %4436 = vmatpush3.bf16.msra.mxu1 %v4986_v49 }
 0x150   :  { %4417 = vmatprep.subr.bf16.mxu0 %v5261_v0  ;;  %4437 = vmatprep.subr.bf16.mxu1 %v5261_v0 }
 0x153   :  { %4418 = vmatpush3.bf16.msra.mxu0 %v4987_v50  ;;  %4438 = vmatpush3.bf16.msra.mxu1 %v4988_v51 }
 0x154   :  { %4443 = vmatprep.subr.bf16.mxu0 %v5261_v0  ;;  %4463 = vmatprep.subr.bf16.mxu1 %v5261_v0 }
 0x156   :  { %4420 = vmatmul.mubr.bf16.vlgmr.msra.gmra.mrb[12].mxu0 %v484_v37  ;;  %4440 = vmatmul.mubr.bf16.vlgmr.msra.gmra.mrb[12].mxu1 %v484_v37 }
 0x157   :  { %4459 = vmatprep.mubr.msk.bf16.mxu0 %vm5262_vm0, %v5261_v0  ;;  %4479 = vmatprep.mubr.msk.bf16.mxu1 %vm5262_vm0, %v5261_v0 }
 0x158   :  { %4444 = vmatpush3.bf16.msra.mxu0 %v4989_v52  ;;  %4464 = vmatpush3.bf16.msra.mxu1 %v4990_v53  ;;  %v5005_v52 = vld [vmem:[%s6498_s3 + $0x8] ss:$16 sps:$4 sm:$0xff]   ;;  %v5006_v53 = vld [vmem:[%s6498_s3 + $0xc] ss:$16 sps:$4 sm:$0xff]  }
 0x159   :  { %4445 = vmatprep.subr.bf16.mxu0 %v5261_v0  ;;  %4465 = vmatprep.subr.bf16.mxu1 %v5261_v0 }
 0x15c   :  { %4446 = vmatpush3.bf16.msra.mxu0 %v4991_v54  ;;  %4466 = vmatpush3.bf16.msra.mxu1 %v4992_v55  ;;  %v5008_v55 = vld [vmem:[%s6498_s3 + $0x2c] ss:$16 sps:$4 sm:$0xff]  }
 0x15d   :  { %4447 = vmatprep.subr.bf16.mxu0 %v5261_v0  ;;  %4467 = vmatprep.subr.bf16.mxu1 %v5261_v0 }
 0x160   :  { %4448 = vmatpush3.bf16.msra.mxu0 %v4993_v56  ;;  %4468 = vmatpush3.bf16.msra.mxu1 %v4994_v57  ;;  %v5009_v56 = vld [vmem:[%s6498_s3 + $0x48] ss:$16 sps:$4 sm:$0xff]   ;;  %v5010_v57 = vld [vmem:[%s6498_s3 + $0x4c] ss:$16 sps:$4 sm:$0xff]  }
 0x161   :  { %4449 = vmatprep.subr.bf16.mxu0 %v5261_v0  ;;  %4469 = vmatprep.subr.bf16.mxu1 %v5261_v0 }
 0x164   :  { %4450 = vmatpush3.bf16.msra.mxu0 %v4995_v58  ;;  %4470 = vmatpush3.bf16.msra.mxu1 %v4996_v59  ;;  %v5011_v58 = vld [vmem:[%s6498_s3 + $0x68] ss:$16 sps:$4 sm:$0xff]   ;;  %v5012_v59 = vld [vmem:[%s6498_s3 + $0x6c] ss:$16 sps:$4 sm:$0xff]  }
 0x165   :  { %4451 = vmatprep.subr.bf16.mxu0 %v5261_v0  ;;  %4471 = vmatprep.subr.bf16.mxu1 %v5261_v0 }
 0x168   :  { %4452 = vmatpush3.bf16.msra.mxu0 %v4997_v60  ;;  %4472 = vmatpush3.bf16.msra.mxu1 %v4998_v61  ;;  %v5013_v60 = vld [vmem:[%s6498_s3 + $0x88] ss:$16 sps:$4 sm:$0xff]   ;;  %v5014_v61 = vld [vmem:[%s6498_s3 + $0x8c] ss:$16 sps:$4 sm:$0xff]  }
 0x169   :  { %4453 = vmatprep.subr.bf16.mxu0 %v5261_v0  ;;  %4473 = vmatprep.subr.bf16.mxu1 %v5261_v0 }
 0x16c   :  { %4454 = vmatpush3.bf16.msra.mxu0 %v4999_v62  ;;  %4474 = vmatpush3.bf16.msra.mxu1 %v5000_v63  ;;  %v5015_v62 = vld [vmem:[%s6498_s3 + $0xa8] ss:$16 sps:$4 sm:$0xff]   ;;  %v5016_v63 = vld [vmem:[%s6498_s3 + $0xac] ss:$16 sps:$4 sm:$0xff]  }
 0x16d   :  { %4455 = vmatprep.subr.bf16.mxu0 %v5261_v0  ;;  %4475 = vmatprep.subr.bf16.mxu1 %v5261_v0 }
 0x170   :  { %4456 = vmatpush3.bf16.msra.mxu0 %v5001_v1  ;;  %4476 = vmatpush3.bf16.msra.mxu1 %v5002_v2  ;;  %v5017_v1 = vld [vmem:[%s6498_s3 + $0xc8] ss:$16 sps:$4 sm:$0xff]   ;;  %v5018_v2 = vld [vmem:[%s6498_s3 + $0xcc] ss:$16 sps:$4 sm:$0xff]  }
 0x171   :  { %4457 = vmatprep.subr.bf16.mxu0 %v5261_v0  ;;  %4477 = vmatprep.subr.bf16.mxu1 %v5261_v0 }
 0x174   :  { %4458 = vmatpush3.bf16.msra.mxu0 %v5003_v3  ;;  %4478 = vmatpush3.bf16.msra.mxu1 %v5004_v4  ;;  %v5019_v3 = vld [vmem:[%s6498_s3 + $0xe8] ss:$16 sps:$4 sm:$0xff]   ;;  %v5020_v4 = vld [vmem:[%s6498_s3 + $0xec] ss:$16 sps:$4 sm:$0xff]  }
 0x175   :  { %4483 = vmatprep.subr.bf16.mxu0 %v5261_v0  ;;  %4503 = vmatprep.subr.bf16.mxu1 %v5261_v0 }
 0x209   :  { %v591_v5 = vpop.f32.mrb[8].mxu0  ;;  %v704_v6 = vpop.f32.mrb[8].mxu1 }
 0x20a   :  { %v4381_v7 = vpop.f32.mrb[9].mxu0  ;;  %v4401_v8 = vpop.f32.mrb[9].mxu1  ;;  %v710_v17 = vadd.f32 %v704_v6, %v605_v15  ;;  %v597_v18 = vadd.f32 %v591_v5, %v492_v16  ;;  %v5021_v5 = vld [vmem:[%s6498_s3] ss:$16 sps:$4 sm:$0xff]   ;;  %v5022_v6 = vld [vmem:[%s6498_s3 + $0x4] ss:$16 sps:$4 sm:$0xff]  }
 0x20b   :  { %v594_v9 = vpop.f32.mrb[10].mxu0  ;;  %v707_v10 = vpop.f32.mrb[10].mxu1  ;;  %v5023_v7 = vld [vmem:[%s6498_s3 + $0x20] ss:$16 sps:$4 sm:$0xff]   ;;  %v5024_v8 = vld [vmem:[%s6498_s3 + $0x24] ss:$16 sps:$4 sm:$0xff]  }
 0x20c   :  { %v4382_v11 = vpop.f32.mrb[11].mxu0  ;;  %v4402_v12 = vpop.f32.mrb[11].mxu1  ;;  %v711_v19 = vmul.f32 0.5, %v710_v17  ;;  %v598_v20 = vmul.f32 0.5, %v597_v18  ;;  %v5025_v9 = vld [vmem:[%s6498_s3 + $0x40] ss:$16 sps:$4 sm:$0xff]  }
 0x20d   :  { %v5026_v10 = vld [vmem:[%s6498_s3 + $0x44] ss:$16 sps:$4 sm:$0xff]   ;;  %v5027_v11 = vld [vmem:[%s6498_s3 + $0x60] ss:$16 sps:$4 sm:$0xff]  }
 0x20e   :  { %5191 = vtanh.f32 %v711_v19  ;;  %v5028_v12 = vld [vmem:[%s6498_s3 + $0x64] ss:$16 sps:$4 sm:$0xff]   ;;  %v5031_v15 = vld [vmem:[%s6498_s3 + $0xa0] ss:$16 sps:$4 sm:$0xff]  }
 0x20f   :  { %5193 = vtanh.f32 %v598_v20  ;;  %v5032_v16 = vld [vmem:[%s6498_s3 + $0xa4] ss:$16 sps:$4 sm:$0xff]   ;;  %v5033_v17 = vld [vmem:[%s6498_s3 + $0xc0] ss:$16 sps:$4 sm:$0xff]  }
 0x210   :  { %v5034_v18 = vld [vmem:[%s6498_s3 + $0xc4] ss:$16 sps:$4 sm:$0xff]   ;;  %v5035_v19 = vld [vmem:[%s6498_s3 + $0xe0] ss:$16 sps:$4 sm:$0xff]  }
 0x211   :  { %v5036_v20 = vld [vmem:[%s6498_s3 + $0xe4] ss:$16 sps:$4 sm:$0xff]  }
 0x218   :  { %v5192_v34 = vpop.eup %5191 }
 0x219   :  { %v5194_v37 = vpop.eup %5193  ;;  %v713_v38 = vmul.f32 0.5, %v5192_v34 }
 0x21a   :  { %v600_v40 = vmul.f32 0.5, %v5194_v37 }
 0x21b   :  { %v714_v41 = vadd.f32 0.5, %v713_v38  ;;  %v3786_v38 = vld [vmem:[%s6500_s0 + $0x28] sm:$0xff] }
 0x21c   :  { %v601_v42 = vadd.f32 0.5, %v600_v40  ;;  %v1174_v40 = vunpack.c.l.bf16 %v3786_v38 }
 0x21d   :  { %v935_v44 = vmul.f32 %v714_v41, %v5516_v29  ;;  %v5007_v29 = vld [vmem:[%s6498_s3 + $0x28] ss:$16 sps:$4 sm:$0xff]  }
 0x229   :  { %v814_v25 = vpop.f32.mrb[12].mxu0  ;;  %v924_v26 = vpop.f32.mrb[12].mxu1 }
 0x22a   :  { %v820_v27 = vadd.f32 %v814_v25, %v715_v23  ;;  %v4421_v28 = vpop.f32.mrb[13].mxu0  ;;  %v4441_v30 = vpop.f32.mrb[13].mxu1  ;;  %v930_v31 = vadd.f32 %v924_v26, %v825_v24 }
 0x22b   :  { %v817_v32 = vpop.f32.mrb[14].mxu0  ;;  %v927_v33 = vpop.f32.mrb[14].mxu1  ;;  %v3785_v30 = vld [vmem:[%s6500_s0 + $0x20] sm:$0xff] }
 0x22c   :  { %5195 = vtanh.f32 %v820_v27  ;;  %v4422_v35 = vpop.f32.mrb[15].mxu0  ;;  %v4442_v36 = vpop.f32.mrb[15].mxu1  ;;  %v931_v39 = vmul.f32 0.5, %v930_v31  ;;  %v1062_v31 = vrot.slane %v3785_v30, 4  ;;  %v951_v33 = vunpack.c.l.bf16 %v3785_v30  ;;  %v5061_v30 = vld [vmem:[%s6498_s3 + $0x80] ss:$16 sps:$4 sm:$0xff]  }
 0x22e   :  { %5197 = vtanh.f32 %v931_v39  ;;  %v1064_v32 = vunpack.c.l.bf16 %v1062_v31  ;;  %v1282_v39 = vrot.slane %v3786_v38, 4  ;;  %v5062_v31 = vld [vmem:[%s6498_s3 + $0x84] ss:$16 sps:$4 sm:$0xff]  }
 0x230   :  { %v1284_v41 = vunpack.c.l.bf16 %v1282_v39 }
 0x236   :  { %v5196_v43 = vpop.eup %5195 }
 0x237   :  { %v936_v45 = vmul.f32 %v5196_v43, %v601_v42 }
 0x238   :  { %v5198_v47 = vpop.eup %5197 }
 0x239   :  { %v5665_v46 = vadd.f32 %v936_v45, %v935_v44  ;;  %v933_v48 = vmul.f32 0.5, %v5198_v47 }
 0x23b   :  { %5199 = vtanh.f32 %v5665_v46  ;;  %v934_v49 = vadd.f32 0.5, %v933_v48 }
 0x245   :  { %v5200_v50 = vpop.eup %5199 }
 0x246   :  { %v939_v51 = vmul.f32 %v5200_v50, %v934_v49 }
 0x248   :  { %v942_v54 = vpack.c.bf16 %v939_v51, %v939_v51 }
 0x24a   :  { %3784 = vst [vmem:[%s6502_s4 + $0x4] sm:$0xf] %v942_v54  ;;  %4460 = vmatmul.mubr.bf16.vlgmr.msra.gmra.mrb[16].mxu0 %v942_v54  ;;  %4480 = vmatmul.mubr.bf16.vlgmr.msra.gmra.mrb[16].mxu1 %v942_v54 }
 0x24b   :  { %4484 = vmatpush3.bf16.msra.mxu0 %v5005_v52  ;;  %4504 = vmatpush3.bf16.msra.mxu1 %v5006_v53 }
 0x24c   :  { %4485 = vmatprep.subr.bf16.mxu0 %v5261_v0  ;;  %4505 = vmatprep.subr.bf16.mxu1 %v5261_v0 }
 0x24d   :  { %4499 = vmatprep.mubr.msk.bf16.mxu0 %vm5262_vm0, %v5261_v0  ;;  %4519 = vmatprep.mubr.msk.bf16.mxu1 %vm5262_vm0, %v5261_v0 }
 0x24f   :  { %4486 = vmatpush3.bf16.msra.mxu0 %v5007_v29  ;;  %4506 = vmatpush3.bf16.msra.mxu1 %v5008_v55 }
 0x250   :  { %4487 = vmatprep.subr.bf16.mxu0 %v5261_v0  ;;  %4507 = vmatprep.subr.bf16.mxu1 %v5261_v0 }
 0x253   :  { %4488 = vmatpush3.bf16.msra.mxu0 %v5009_v56  ;;  %4508 = vmatpush3.bf16.msra.mxu1 %v5010_v57 }
 0x254   :  { %4489 = vmatprep.subr.bf16.mxu0 %v5261_v0  ;;  %4509 = vmatprep.subr.bf16.mxu1 %v5261_v0 }
 0x257   :  { %4490 = vmatpush3.bf16.msra.mxu0 %v5011_v58  ;;  %4510 = vmatpush3.bf16.msra.mxu1 %v5012_v59 }
 0x258   :  { %4491 = vmatprep.subr.bf16.mxu0 %v5261_v0  ;;  %4511 = vmatprep.subr.bf16.mxu1 %v5261_v0 }
 0x25b   :  { %4492 = vmatpush3.bf16.msra.mxu0 %v5013_v60  ;;  %4512 = vmatpush3.bf16.msra.mxu1 %v5014_v61 }
 0x25c   :  { %4493 = vmatprep.subr.bf16.mxu0 %v5261_v0  ;;  %4513 = vmatprep.subr.bf16.mxu1 %v5261_v0 }
 0x25f   :  { %4494 = vmatpush3.bf16.msra.mxu0 %v5015_v62  ;;  %4514 = vmatpush3.bf16.msra.mxu1 %v5016_v63 }
 0x260   :  { %4495 = vmatprep.subr.bf16.mxu0 %v5261_v0  ;;  %4515 = vmatprep.subr.bf16.mxu1 %v5261_v0 }
 0x263   :  { %4496 = vmatpush3.bf16.msra.mxu0 %v5017_v1  ;;  %4516 = vmatpush3.bf16.msra.mxu1 %v5018_v2 }
 0x264   :  { %4497 = vmatprep.subr.bf16.mxu0 %v5261_v0  ;;  %4517 = vmatprep.subr.bf16.mxu1 %v5261_v0 }
 0x267   :  { %4498 = vmatpush3.bf16.msra.mxu0 %v5019_v3  ;;  %4518 = vmatpush3.bf16.msra.mxu1 %v5020_v4 }
 0x268   :  { %4523 = vmatprep.subr.bf16.mxu0 %v5261_v0  ;;  %4543 = vmatprep.subr.bf16.mxu1 %v5261_v0 }
 0x26a   :  { %4500 = vmatmul.mubr.bf16.vlgmr.msra.gmra.mrb[20].mxu0 %v942_v54  ;;  %4520 = vmatmul.mubr.bf16.vlgmr.msra.gmra.mrb[20].mxu1 %v942_v54 }
 0x26b   :  { %4539 = vmatprep.mubr.msk.bf16.mxu0 %vm5262_vm0, %v5261_v0  ;;  %4559 = vmatprep.mubr.msk.bf16.mxu1 %vm5262_vm0, %v5261_v0 }
 0x26c   :  { %4524 = vmatpush3.bf16.msra.mxu0 %v5021_v5  ;;  %4544 = vmatpush3.bf16.msra.mxu1 %v5022_v6  ;;  %v5037_v5 = vld [vmem:[%s6498_s3 + $0x8] ss:$16 sps:$4 sm:$0xff]   ;;  %v5038_v6 = vld [vmem:[%s6498_s3 + $0xc] ss:$16 sps:$4 sm:$0xff]  }
 0x26d   :  { %4525 = vmatprep.subr.bf16.mxu0 %v5261_v0  ;;  %4545 = vmatprep.subr.bf16.mxu1 %v5261_v0 }
 0x270   :  { %4526 = vmatpush3.bf16.msra.mxu0 %v5023_v7  ;;  %4546 = vmatpush3.bf16.msra.mxu1 %v5024_v8  ;;  %v5040_v8 = vld [vmem:[%s6498_s3 + $0x2c] ss:$16 sps:$4 sm:$0xff]  }
 0x271   :  { %4527 = vmatprep.subr.bf16.mxu0 %v5261_v0  ;;  %4547 = vmatprep.subr.bf16.mxu1 %v5261_v0 }
 0x274   :  { %4528 = vmatpush3.bf16.msra.mxu0 %v5025_v9  ;;  %4548 = vmatpush3.bf16.msra.mxu1 %v5026_v10  ;;  %v5041_v9 = vld [vmem:[%s6498_s3 + $0x48] ss:$16 sps:$4 sm:$0xff]   ;;  %v5042_v10 = vld [vmem:[%s6498_s3 + $0x4c] ss:$16 sps:$4 sm:$0xff]  }
 0x275   :  { %4529 = vmatprep.subr.bf16.mxu0 %v5261_v0  ;;  %4549 = vmatprep.subr.bf16.mxu1 %v5261_v0 }
 0x278   :  { %4530 = vmatpush3.bf16.msra.mxu0 %v5027_v11  ;;  %4550 = vmatpush3.bf16.msra.mxu1 %v5028_v12  ;;  %v5043_v11 = vld [vmem:[%s6498_s3 + $0x68] ss:$16 sps:$4 sm:$0xff]   ;;  %v5044_v12 = vld [vmem:[%s6498_s3 + $0x6c] ss:$16 sps:$4 sm:$0xff]  }
 0x279   :  { %4531 = vmatprep.subr.bf16.mxu0 %v5261_v0  ;;  %4551 = vmatprep.subr.bf16.mxu1 %v5261_v0 }
 0x27c   :  { %4532 = vmatpush3.bf16.msra.mxu0 %v5029_v13  ;;  %4552 = vmatpush3.bf16.msra.mxu1 %v5030_v14  ;;  %v5045_v13 = vld [vmem:[%s6498_s3 + $0x88] ss:$16 sps:$4 sm:$0xff]   ;;  %v5046_v14 = vld [vmem:[%s6498_s3 + $0x8c] ss:$16 sps:$4 sm:$0xff]  }
 0x27d   :  { %4533 = vmatprep.subr.bf16.mxu0 %v5261_v0  ;;  %4553 = vmatprep.subr.bf16.mxu1 %v5261_v0 }
 0x280   :  { %4534 = vmatpush3.bf16.msra.mxu0 %v5031_v15  ;;  %4554 = vmatpush3.bf16.msra.mxu1 %v5032_v16  ;;  %v5047_v15 = vld [vmem:[%s6498_s3 + $0xa8] ss:$16 sps:$4 sm:$0xff]   ;;  %v5048_v16 = vld [vmem:[%s6498_s3 + $0xac] ss:$16 sps:$4 sm:$0xff]  }
 0x281   :  { %4535 = vmatprep.subr.bf16.mxu0 %v5261_v0  ;;  %4555 = vmatprep.subr.bf16.mxu1 %v5261_v0 }
 0x284   :  { %4536 = vmatpush3.bf16.msra.mxu0 %v5033_v17  ;;  %4556 = vmatpush3.bf16.msra.mxu1 %v5034_v18  ;;  %v5049_v17 = vld [vmem:[%s6498_s3 + $0xc8] ss:$16 sps:$4 sm:$0xff]   ;;  %v5050_v18 = vld [vmem:[%s6498_s3 + $0xcc] ss:$16 sps:$4 sm:$0xff]  }
 0x285   :  { %4537 = vmatprep.subr.bf16.mxu0 %v5261_v0  ;;  %4557 = vmatprep.subr.bf16.mxu1 %v5261_v0 }
 0x288   :  { %4538 = vmatpush3.bf16.msra.mxu0 %v5035_v19  ;;  %4558 = vmatpush3.bf16.msra.mxu1 %v5036_v20  ;;  %v5051_v19 = vld [vmem:[%s6498_s3 + $0xe8] ss:$16 sps:$4 sm:$0xff]   ;;  %v5052_v20 = vld [vmem:[%s6498_s3 + $0xec] ss:$16 sps:$4 sm:$0xff]  }
 0x289   :  { %4563 = vmatprep.subr.bf16.mxu0 %v5261_v0  ;;  %4583 = vmatprep.subr.bf16.mxu1 %v5261_v0 }
 0x31d   :  { %v1050_v21 = vpop.f32.mrb[16].mxu0  ;;  %v1163_v22 = vpop.f32.mrb[16].mxu1 }
 0x31e   :  { %v4461_v23 = vpop.f32.mrb[17].mxu0  ;;  %v4481_v24 = vpop.f32.mrb[17].mxu1  ;;  %v1169_v34 = vadd.f32 %v1163_v22, %v1064_v32  ;;  %v1056_v35 = vadd.f32 %v1050_v21, %v951_v33  ;;  %v5053_v21 = vld [vmem:[%s6498_s3] ss:$16 sps:$4 sm:$0xff]   ;;  %v5054_v22 = vld [vmem:[%s6498_s3 + $0x4] ss:$16 sps:$4 sm:$0xff]  }
 0x31f   :  { %v1053_v25 = vpop.f32.mrb[18].mxu0  ;;  %v1166_v26 = vpop.f32.mrb[18].mxu1  ;;  %v5055_v23 = vld [vmem:[%s6498_s3 + $0x20] ss:$16 sps:$4 sm:$0xff]   ;;  %v5056_v24 = vld [vmem:[%s6498_s3 + $0x24] ss:$16 sps:$4 sm:$0xff]  }
 0x320   :  { %v4462_v27 = vpop.f32.mrb[19].mxu0  ;;  %v4482_v28 = vpop.f32.mrb[19].mxu1  ;;  %v1170_v36 = vmul.f32 0.5, %v1169_v34  ;;  %v1057_v37 = vmul.f32 0.5, %v1056_v35  ;;  %v5057_v25 = vld [vmem:[%s6498_s3 + $0x40] ss:$16 sps:$4 sm:$0xff]  }
 0x321   :  { %v5058_v26 = vld [vmem:[%s6498_s3 + $0x44] ss:$16 sps:$4 sm:$0xff]   ;;  %v5059_v27 = vld [vmem:[%s6498_s3 + $0x60] ss:$16 sps:$4 sm:$0xff]  }
 0x322   :  { %5201 = vtanh.f32 %v1170_v36  ;;  %v5060_v28 = vld [vmem:[%s6498_s3 + $0x64] ss:$16 sps:$4 sm:$0xff]   ;;  %v5063_v32 = vld [vmem:[%s6498_s3 + $0xa0] ss:$16 sps:$4 sm:$0xff]  }
 0x323   :  { %5203 = vtanh.f32 %v1057_v37  ;;  %v5064_v33 = vld [vmem:[%s6498_s3 + $0xa4] ss:$16 sps:$4 sm:$0xff]   ;;  %v5065_v34 = vld [vmem:[%s6498_s3 + $0xc0] ss:$16 sps:$4 sm:$0xff]  }
 0x324   :  { %v5066_v35 = vld [vmem:[%s6498_s3 + $0xc4] ss:$16 sps:$4 sm:$0xff]   ;;  %v5067_v36 = vld [vmem:[%s6498_s3 + $0xe0] ss:$16 sps:$4 sm:$0xff]  }
 0x325   :  { %v5068_v37 = vld [vmem:[%s6498_s3 + $0xe4] ss:$16 sps:$4 sm:$0xff]  }
 0x32c   :  { %v5202_v51 = vpop.eup %5201 }
 0x32d   :  { %v5204_v54 = vpop.eup %5203  ;;  %v1172_v29 = vmul.f32 0.5, %v5202_v51 }
 0x32e   :  { %v1059_v56 = vmul.f32 0.5, %v5204_v54 }
 0x32f   :  { %v1173_v57 = vadd.f32 0.5, %v1172_v29  ;;  %v3821_v29 = vld [vmem:[%s6500_s0 + $0x38] sm:$0xff] }
 0x330   :  { %v1060_v58 = vadd.f32 0.5, %v1059_v56  ;;  %v1633_v56 = vunpack.c.l.bf16 %v3821_v29 }
 0x331   :  { %v1394_v60 = vmul.f32 %v1173_v57, %v5665_v46  ;;  %v5039_v46 = vld [vmem:[%s6498_s3 + $0x28] ss:$16 sps:$4 sm:$0xff]  }
 0x33d   :  { %v1273_v42 = vpop.f32.mrb[20].mxu0  ;;  %v1383_v43 = vpop.f32.mrb[20].mxu1 }
 0x33e   :  { %v1279_v44 = vadd.f32 %v1273_v42, %v1174_v40  ;;  %v4501_v45 = vpop.f32.mrb[21].mxu0  ;;  %v4521_v47 = vpop.f32.mrb[21].mxu1  ;;  %v1389_v48 = vadd.f32 %v1383_v43, %v1284_v41 }
 0x33f   :  { %v1276_v49 = vpop.f32.mrb[22].mxu0  ;;  %v1386_v50 = vpop.f32.mrb[22].mxu1  ;;  %v3820_v47 = vld [vmem:[%s6500_s0 + $0x30] sm:$0xff] }
 0x340   :  { %5205 = vtanh.f32 %v1279_v44  ;;  %v4502_v52 = vpop.f32.mrb[23].mxu0  ;;  %v4522_v53 = vpop.f32.mrb[23].mxu1  ;;  %v1390_v55 = vmul.f32 0.5, %v1389_v48  ;;  %v1521_v48 = vrot.slane %v3820_v47, 4  ;;  %v1410_v50 = vunpack.c.l.bf16 %v3820_v47  ;;  %v5093_v47 = vld [vmem:[%s6498_s3 + $0x80] ss:$16 sps:$4 sm:$0xff]  }
 0x342   :  { %5207 = vtanh.f32 %v1390_v55  ;;  %v1523_v49 = vunpack.c.l.bf16 %v1521_v48  ;;  %v1741_v55 = vrot.slane %v3821_v29, 4  ;;  %v5094_v48 = vld [vmem:[%s6498_s3 + $0x84] ss:$16 sps:$4 sm:$0xff]  }
 0x344   :  { %v1743_v57 = vunpack.c.l.bf16 %v1741_v55 }
 0x34a   :  { %v5206_v59 = vpop.eup %5205 }
 0x34b   :  { %v1395_v61 = vmul.f32 %v5206_v59, %v1060_v58 }
 0x34c   :  { %v5208_v63 = vpop.eup %5207 }
 0x34d   :  { %v5814_v62 = vadd.f32 %v1395_v61, %v1394_v60  ;;  %v1392_v1 = vmul.f32 0.5, %v5208_v63 }
 0x34f   :  { %5209 = vtanh.f32 %v5814_v62  ;;  %v1393_v2 = vadd.f32 0.5, %v1392_v1 }
 0x359   :  { %v5210_v3 = vpop.eup %5209 }
 0x35a   :  { %v1398_v4 = vmul.f32 %v5210_v3, %v1393_v2 }
 0x35c   :  { %v1401_v7 = vpack.c.bf16 %v1398_v4, %v1398_v4 }
 0x35e   :  { %3819 = vst [vmem:[%s6502_s4 + $0x8] sm:$0xf] %v1401_v7  ;;  %4540 = vmatmul.mubr.bf16.vlgmr.msra.gmra.mrb[24].mxu0 %v1401_v7  ;;  %4560 = vmatmul.mubr.bf16.vlgmr.msra.gmra.mrb[24].mxu1 %v1401_v7 }
 0x35f   :  { %4564 = vmatpush3.bf16.msra.mxu0 %v5037_v5  ;;  %4584 = vmatpush3.bf16.msra.mxu1 %v5038_v6 }
 0x360   :  { %4565 = vmatprep.subr.bf16.mxu0 %v5261_v0  ;;  %4585 = vmatprep.subr.bf16.mxu1 %v5261_v0 }
 0x361   :  { %4579 = vmatprep.mubr.msk.bf16.mxu0 %vm5262_vm0, %v5261_v0  ;;  %4599 = vmatprep.mubr.msk.bf16.mxu1 %vm5262_vm0, %v5261_v0 }
 0x363   :  { %4566 = vmatpush3.bf16.msra.mxu0 %v5039_v46  ;;  %4586 = vmatpush3.bf16.msra.mxu1 %v5040_v8 }
 0x364   :  { %4567 = vmatprep.subr.bf16.mxu0 %v5261_v0  ;;  %4587 = vmatprep.subr.bf16.mxu1 %v5261_v0 }
 0x367   :  { %4568 = vmatpush3.bf16.msra.mxu0 %v5041_v9  ;;  %4588 = vmatpush3.bf16.msra.mxu1 %v5042_v10 }
 0x368   :  { %4569 = vmatprep.subr.bf16.mxu0 %v5261_v0  ;;  %4589 = vmatprep.subr.bf16.mxu1 %v5261_v0 }
 0x36b   :  { %4570 = vmatpush3.bf16.msra.mxu0 %v5043_v11  ;;  %4590 = vmatpush3.bf16.msra.mxu1 %v5044_v12 }
 0x36c   :  { %4571 = vmatprep.subr.bf16.mxu0 %v5261_v0  ;;  %4591 = vmatprep.subr.bf16.mxu1 %v5261_v0 }
 0x36f   :  { %4572 = vmatpush3.bf16.msra.mxu0 %v5045_v13  ;;  %4592 = vmatpush3.bf16.msra.mxu1 %v5046_v14 }
 0x370   :  { %4573 = vmatprep.subr.bf16.mxu0 %v5261_v0  ;;  %4593 = vmatprep.subr.bf16.mxu1 %v5261_v0 }
 0x373   :  { %4574 = vmatpush3.bf16.msra.mxu0 %v5047_v15  ;;  %4594 = vmatpush3.bf16.msra.mxu1 %v5048_v16 }
 0x374   :  { %4575 = vmatprep.subr.bf16.mxu0 %v5261_v0  ;;  %4595 = vmatprep.subr.bf16.mxu1 %v5261_v0 }
 0x377   :  { %4576 = vmatpush3.bf16.msra.mxu0 %v5049_v17  ;;  %4596 = vmatpush3.bf16.msra.mxu1 %v5050_v18 }
 0x378   :  { %4577 = vmatprep.subr.bf16.mxu0 %v5261_v0  ;;  %4597 = vmatprep.subr.bf16.mxu1 %v5261_v0 }
 0x37b   :  { %4578 = vmatpush3.bf16.msra.mxu0 %v5051_v19  ;;  %4598 = vmatpush3.bf16.msra.mxu1 %v5052_v20 }
 0x37c   :  { %4603 = vmatprep.subr.bf16.mxu0 %v5261_v0  ;;  %4623 = vmatprep.subr.bf16.mxu1 %v5261_v0 }
 0x37e   :  { %4580 = vmatmul.mubr.bf16.vlgmr.msra.gmra.mrb[28].mxu0 %v1401_v7  ;;  %4600 = vmatmul.mubr.bf16.vlgmr.msra.gmra.mrb[28].mxu1 %v1401_v7 }
 0x37f   :  { %4619 = vmatprep.mubr.msk.bf16.mxu0 %vm5262_vm0, %v5261_v0  ;;  %4639 = vmatprep.mubr.msk.bf16.mxu1 %vm5262_vm0, %v5261_v0 }
 0x380   :  { %4604 = vmatpush3.bf16.msra.mxu0 %v5053_v21  ;;  %4624 = vmatpush3.bf16.msra.mxu1 %v5054_v22  ;;  %v5069_v21 = vld [vmem:[%s6498_s3 + $0x8] ss:$16 sps:$4 sm:$0xff]   ;;  %v5070_v22 = vld [vmem:[%s6498_s3 + $0xc] ss:$16 sps:$4 sm:$0xff]  }
 0x381   :  { %4605 = vmatprep.subr.bf16.mxu0 %v5261_v0  ;;  %4625 = vmatprep.subr.bf16.mxu1 %v5261_v0 }
 0x384   :  { %4606 = vmatpush3.bf16.msra.mxu0 %v5055_v23  ;;  %4626 = vmatpush3.bf16.msra.mxu1 %v5056_v24  ;;  %v5072_v24 = vld [vmem:[%s6498_s3 + $0x2c] ss:$16 sps:$4 sm:$0xff]  }
 0x385   :  { %4607 = vmatprep.subr.bf16.mxu0 %v5261_v0  ;;  %4627 = vmatprep.subr.bf16.mxu1 %v5261_v0 }
 0x388   :  { %4608 = vmatpush3.bf16.msra.mxu0 %v5057_v25  ;;  %4628 = vmatpush3.bf16.msra.mxu1 %v5058_v26  ;;  %v5073_v25 = vld [vmem:[%s6498_s3 + $0x48] ss:$16 sps:$4 sm:$0xff]   ;;  %v5074_v26 = vld [vmem:[%s6498_s3 + $0x4c] ss:$16 sps:$4 sm:$0xff]  }
 0x389   :  { %4609 = vmatprep.subr.bf16.mxu0 %v5261_v0  ;;  %4629 = vmatprep.subr.bf16.mxu1 %v5261_v0 }
 0x38c   :  { %4610 = vmatpush3.bf16.msra.mxu0 %v5059_v27  ;;  %4630 = vmatpush3.bf16.msra.mxu1 %v5060_v28  ;;  %v5075_v27 = vld [vmem:[%s6498_s3 + $0x68] ss:$16 sps:$4 sm:$0xff]   ;;  %v5076_v28 = vld [vmem:[%s6498_s3 + $0x6c] ss:$16 sps:$4 sm:$0xff]  }
 0x38d   :  { %4611 = vmatprep.subr.bf16.mxu0 %v5261_v0  ;;  %4631 = vmatprep.subr.bf16.mxu1 %v5261_v0 }
 0x390   :  { %4612 = vmatpush3.bf16.msra.mxu0 %v5061_v30  ;;  %4632 = vmatpush3.bf16.msra.mxu1 %v5062_v31  ;;  %v5077_v30 = vld [vmem:[%s6498_s3 + $0x88] ss:$16 sps:$4 sm:$0xff]   ;;  %v5078_v31 = vld [vmem:[%s6498_s3 + $0x8c] ss:$16 sps:$4 sm:$0xff]  }
 0x391   :  { %4613 = vmatprep.subr.bf16.mxu0 %v5261_v0  ;;  %4633 = vmatprep.subr.bf16.mxu1 %v5261_v0 }
 0x394   :  { %4614 = vmatpush3.bf16.msra.mxu0 %v5063_v32  ;;  %4634 = vmatpush3.bf16.msra.mxu1 %v5064_v33  ;;  %v5079_v32 = vld [vmem:[%s6498_s3 + $0xa8] ss:$16 sps:$4 sm:$0xff]   ;;  %v5080_v33 = vld [vmem:[%s6498_s3 + $0xac] ss:$16 sps:$4 sm:$0xff]  }
 0x395   :  { %4615 = vmatprep.subr.bf16.mxu0 %v5261_v0  ;;  %4635 = vmatprep.subr.bf16.mxu1 %v5261_v0 }
 0x398   :  { %4616 = vmatpush3.bf16.msra.mxu0 %v5065_v34  ;;  %4636 = vmatpush3.bf16.msra.mxu1 %v5066_v35  ;;  %v5081_v34 = vld [vmem:[%s6498_s3 + $0xc8] ss:$16 sps:$4 sm:$0xff]   ;;  %v5082_v35 = vld [vmem:[%s6498_s3 + $0xcc] ss:$16 sps:$4 sm:$0xff]  }
 0x399   :  { %4617 = vmatprep.subr.bf16.mxu0 %v5261_v0  ;;  %4637 = vmatprep.subr.bf16.mxu1 %v5261_v0 }
 0x39c   :  { %4618 = vmatpush3.bf16.msra.mxu0 %v5067_v36  ;;  %4638 = vmatpush3.bf16.msra.mxu1 %v5068_v37  ;;  %v5083_v36 = vld [vmem:[%s6498_s3 + $0xe8] ss:$16 sps:$4 sm:$0xff]   ;;  %v5084_v37 = vld [vmem:[%s6498_s3 + $0xec] ss:$16 sps:$4 sm:$0xff]  }
 0x39d   :  { %4643 = vmatprep.subr.bf16.mxu0 %v5261_v0  ;;  %4663 = vmatprep.subr.bf16.mxu1 %v5261_v0 }
 0x431   :  { %v1509_v38 = vpop.f32.mrb[24].mxu0  ;;  %v1622_v39 = vpop.f32.mrb[24].mxu1 }
 0x432   :  { %v4541_v40 = vpop.f32.mrb[25].mxu0  ;;  %v4561_v41 = vpop.f32.mrb[25].mxu1  ;;  %v1628_v51 = vadd.f32 %v1622_v39, %v1523_v49  ;;  %v1515_v52 = vadd.f32 %v1509_v38, %v1410_v50  ;;  %v5085_v38 = vld [vmem:[%s6498_s3] ss:$16 sps:$4 sm:$0xff]   ;;  %v5086_v39 = vld [vmem:[%s6498_s3 + $0x4] ss:$16 sps:$4 sm:$0xff]  }
 0x433   :  { %v1512_v42 = vpop.f32.mrb[26].mxu0  ;;  %v1625_v43 = vpop.f32.mrb[26].mxu1  ;;  %v5087_v40 = vld [vmem:[%s6498_s3 + $0x20] ss:$16 sps:$4 sm:$0xff]   ;;  %v5088_v41 = vld [vmem:[%s6498_s3 + $0x24] ss:$16 sps:$4 sm:$0xff]  }
 0x434   :  { %v4542_v44 = vpop.f32.mrb[27].mxu0  ;;  %v4562_v45 = vpop.f32.mrb[27].mxu1  ;;  %v1629_v53 = vmul.f32 0.5, %v1628_v51  ;;  %v1516_v54 = vmul.f32 0.5, %v1515_v52  ;;  %v5089_v42 = vld [vmem:[%s6498_s3 + $0x40] ss:$16 sps:$4 sm:$0xff]  }
 0x435   :  { %v5090_v43 = vld [vmem:[%s6498_s3 + $0x44] ss:$16 sps:$4 sm:$0xff]   ;;  %v5091_v44 = vld [vmem:[%s6498_s3 + $0x60] ss:$16 sps:$4 sm:$0xff]  }
 0x436   :  { %5211 = vtanh.f32 %v1629_v53  ;;  %v5092_v45 = vld [vmem:[%s6498_s3 + $0x64] ss:$16 sps:$4 sm:$0xff]   ;;  %v5095_v49 = vld [vmem:[%s6498_s3 + $0xa0] ss:$16 sps:$4 sm:$0xff]  }
 0x437   :  { %5213 = vtanh.f32 %v1516_v54  ;;  %v5096_v50 = vld [vmem:[%s6498_s3 + $0xa4] ss:$16 sps:$4 sm:$0xff]   ;;  %v5097_v51 = vld [vmem:[%s6498_s3 + $0xc0] ss:$16 sps:$4 sm:$0xff]  }
 0x438   :  { %v5098_v52 = vld [vmem:[%s6498_s3 + $0xc4] ss:$16 sps:$4 sm:$0xff]   ;;  %v5099_v53 = vld [vmem:[%s6498_s3 + $0xe0] ss:$16 sps:$4 sm:$0xff]  }
 0x439   :  { %v5100_v54 = vld [vmem:[%s6498_s3 + $0xe4] ss:$16 sps:$4 sm:$0xff]  }
 0x440   :  { %v5212_v4 = vpop.eup %5211 }
 0x441   :  { %v5214_v7 = vpop.eup %5213  ;;  %v1631_v46 = vmul.f32 0.5, %v5212_v4 }
 0x442   :  { %v1518_v9 = vmul.f32 0.5, %v5214_v7 }
 0x443   :  { %v1632_v10 = vadd.f32 0.5, %v1631_v46  ;;  %v3856_v46 = vld [vmem:[%s6500_s0 + $0x48] sm:$0xff] }
 0x444   :  { %v1519_v11 = vadd.f32 0.5, %v1518_v9  ;;  %v2092_v9 = vunpack.c.l.bf16 %v3856_v46 }
 0x445   :  { %v1853_v13 = vmul.f32 %v1632_v10, %v5814_v62  ;;  %v5071_v62 = vld [vmem:[%s6498_s3 + $0x28] ss:$16 sps:$4 sm:$0xff]  }
 0x451   :  { %v1732_v58 = vpop.f32.mrb[28].mxu0  ;;  %v1842_v59 = vpop.f32.mrb[28].mxu1 }
 0x452   :  { %v1738_v60 = vadd.f32 %v1732_v58, %v1633_v56  ;;  %v4581_v61 = vpop.f32.mrb[29].mxu0  ;;  %v4601_v63 = vpop.f32.mrb[29].mxu1  ;;  %v1848_v1 = vadd.f32 %v1842_v59, %v1743_v57 }
 0x453   :  { %v1735_v2 = vpop.f32.mrb[30].mxu0  ;;  %v1845_v3 = vpop.f32.mrb[30].mxu1  ;;  %v3855_v63 = vld [vmem:[%s6500_s0 + $0x40] sm:$0xff] }
 0x454   :  { %5215 = vtanh.f32 %v1738_v60  ;;  %v4582_v5 = vpop.f32.mrb[31].mxu0  ;;  %v4602_v6 = vpop.f32.mrb[31].mxu1  ;;  %v1849_v8 = vmul.f32 0.5, %v1848_v1  ;;  %v1980_v1 = vrot.slane %v3855_v63, 4  ;;  %v1869_v3 = vunpack.c.l.bf16 %v3855_v63  ;;  %v5125_v63 = vld [vmem:[%s6498_s3 + $0x80] ss:$16 sps:$4 sm:$0xff]  }
 0x456   :  { %5217 = vtanh.f32 %v1849_v8  ;;  %v1982_v2 = vunpack.c.l.bf16 %v1980_v1  ;;  %v2200_v8 = vrot.slane %v3856_v46, 4  ;;  %v5126_v1 = vld [vmem:[%s6498_s3 + $0x84] ss:$16 sps:$4 sm:$0xff]  }
 0x458   :  { %v2202_v10 = vunpack.c.l.bf16 %v2200_v8 }
 0x45e   :  { %v5216_v12 = vpop.eup %5215 }
 0x45f   :  { %v1854_v14 = vmul.f32 %v5216_v12, %v1519_v11 }
 0x460   :  { %v5218_v16 = vpop.eup %5217 }
 0x461   :  { %v5963_v15 = vadd.f32 %v1854_v14, %v1853_v13  ;;  %v1851_v17 = vmul.f32 0.5, %v5218_v16 }
 0x463   :  { %5219 = vtanh.f32 %v5963_v15  ;;  %v1852_v18 = vadd.f32 0.5, %v1851_v17 }
 0x46d   :  { %v5220_v19 = vpop.eup %5219 }
 0x46e   :  { %v1857_v20 = vmul.f32 %v5220_v19, %v1852_v18 }
 0x470   :  { %v1860_v23 = vpack.c.bf16 %v1857_v20, %v1857_v20 }
 0x472   :  { %3854 = vst [vmem:[%s6502_s4 + $0xc] sm:$0xf] %v1860_v23  ;;  %4620 = vmatmul.mubr.bf16.vlgmr.msra.gmra.mrb[32].mxu0 %v1860_v23  ;;  %4640 = vmatmul.mubr.bf16.vlgmr.msra.gmra.mrb[32].mxu1 %v1860_v23 }
 0x473   :  { %4644 = vmatpush3.bf16.msra.mxu0 %v5069_v21  ;;  %4664 = vmatpush3.bf16.msra.mxu1 %v5070_v22 }
 0x474   :  { %4645 = vmatprep.subr.bf16.mxu0 %v5261_v0  ;;  %4665 = vmatprep.subr.bf16.mxu1 %v5261_v0 }
 0x475   :  { %4659 = vmatprep.mubr.msk.bf16.mxu0 %vm5262_vm0, %v5261_v0  ;;  %4679 = vmatprep.mubr.msk.bf16.mxu1 %vm5262_vm0, %v5261_v0 }
 0x477   :  { %4646 = vmatpush3.bf16.msra.mxu0 %v5071_v62  ;;  %4666 = vmatpush3.bf16.msra.mxu1 %v5072_v24 }
 0x478   :  { %4647 = vmatprep.subr.bf16.mxu0 %v5261_v0  ;;  %4667 = vmatprep.subr.bf16.mxu1 %v5261_v0 }
 0x47b   :  { %4648 = vmatpush3.bf16.msra.mxu0 %v5073_v25  ;;  %4668 = vmatpush3.bf16.msra.mxu1 %v5074_v26 }
 0x47c   :  { %4649 = vmatprep.subr.bf16.mxu0 %v5261_v0  ;;  %4669 = vmatprep.subr.bf16.mxu1 %v5261_v0 }
 0x47f   :  { %4650 = vmatpush3.bf16.msra.mxu0 %v5075_v27  ;;  %4670 = vmatpush3.bf16.msra.mxu1 %v5076_v28 }
 0x480   :  { %4651 = vmatprep.subr.bf16.mxu0 %v5261_v0  ;;  %4671 = vmatprep.subr.bf16.mxu1 %v5261_v0 }
 0x483   :  { %4652 = vmatpush3.bf16.msra.mxu0 %v5077_v30  ;;  %4672 = vmatpush3.bf16.msra.mxu1 %v5078_v31 }
 0x484   :  { %4653 = vmatprep.subr.bf16.mxu0 %v5261_v0  ;;  %4673 = vmatprep.subr.bf16.mxu1 %v5261_v0 }
 0x487   :  { %4654 = vmatpush3.bf16.msra.mxu0 %v5079_v32  ;;  %4674 = vmatpush3.bf16.msra.mxu1 %v5080_v33 }
 0x488   :  { %4655 = vmatprep.subr.bf16.mxu0 %v5261_v0  ;;  %4675 = vmatprep.subr.bf16.mxu1 %v5261_v0 }
 0x48b   :  { %4656 = vmatpush3.bf16.msra.mxu0 %v5081_v34  ;;  %4676 = vmatpush3.bf16.msra.mxu1 %v5082_v35 }
 0x48c   :  { %4657 = vmatprep.subr.bf16.mxu0 %v5261_v0  ;;  %4677 = vmatprep.subr.bf16.mxu1 %v5261_v0 }
 0x48f   :  { %4658 = vmatpush3.bf16.msra.mxu0 %v5083_v36  ;;  %4678 = vmatpush3.bf16.msra.mxu1 %v5084_v37 }
 0x490   :  { %4683 = vmatprep.subr.bf16.mxu0 %v5261_v0  ;;  %4703 = vmatprep.subr.bf16.mxu1 %v5261_v0 }
 0x492   :  { %4660 = vmatmul.mubr.bf16.vlgmr.msra.gmra.mrb[36].mxu0 %v1860_v23  ;;  %4680 = vmatmul.mubr.bf16.vlgmr.msra.gmra.mrb[36].mxu1 %v1860_v23 }
 0x493   :  { %4699 = vmatprep.mubr.msk.bf16.mxu0 %vm5262_vm0, %v5261_v0  ;;  %4719 = vmatprep.mubr.msk.bf16.mxu1 %vm5262_vm0, %v5261_v0 }
 0x494   :  { %4684 = vmatpush3.bf16.msra.mxu0 %v5085_v38  ;;  %4704 = vmatpush3.bf16.msra.mxu1 %v5086_v39  ;;  %v5101_v38 = vld [vmem:[%s6498_s3 + $0x8] ss:$16 sps:$4 sm:$0xff]   ;;  %v5102_v39 = vld [vmem:[%s6498_s3 + $0xc] ss:$16 sps:$4 sm:$0xff]  }
 0x495   :  { %4685 = vmatprep.subr.bf16.mxu0 %v5261_v0  ;;  %4705 = vmatprep.subr.bf16.mxu1 %v5261_v0 }
 0x498   :  { %4686 = vmatpush3.bf16.msra.mxu0 %v5087_v40  ;;  %4706 = vmatpush3.bf16.msra.mxu1 %v5088_v41  ;;  %v5104_v41 = vld [vmem:[%s6498_s3 + $0x2c] ss:$16 sps:$4 sm:$0xff]  }
 0x499   :  { %4687 = vmatprep.subr.bf16.mxu0 %v5261_v0  ;;  %4707 = vmatprep.subr.bf16.mxu1 %v5261_v0 }
 0x49c   :  { %4688 = vmatpush3.bf16.msra.mxu0 %v5089_v42  ;;  %4708 = vmatpush3.bf16.msra.mxu1 %v5090_v43  ;;  %v5105_v42 = vld [vmem:[%s6498_s3 + $0x48] ss:$16 sps:$4 sm:$0xff]   ;;  %v5106_v43 = vld [vmem:[%s6498_s3 + $0x4c] ss:$16 sps:$4 sm:$0xff]  }
 0x49d   :  { %4689 = vmatprep.subr.bf16.mxu0 %v5261_v0  ;;  %4709 = vmatprep.subr.bf16.mxu1 %v5261_v0 }
 0x4a0   :  { %4690 = vmatpush3.bf16.msra.mxu0 %v5091_v44  ;;  %4710 = vmatpush3.bf16.msra.mxu1 %v5092_v45  ;;  %v5107_v44 = vld [vmem:[%s6498_s3 + $0x68] ss:$16 sps:$4 sm:$0xff]   ;;  %v5108_v45 = vld [vmem:[%s6498_s3 + $0x6c] ss:$16 sps:$4 sm:$0xff]  }
 0x4a1   :  { %4691 = vmatprep.subr.bf16.mxu0 %v5261_v0  ;;  %4711 = vmatprep.subr.bf16.mxu1 %v5261_v0 }
 0x4a4   :  { %4692 = vmatpush3.bf16.msra.mxu0 %v5093_v47  ;;  %4712 = vmatpush3.bf16.msra.mxu1 %v5094_v48  ;;  %v5109_v47 = vld [vmem:[%s6498_s3 + $0x88] ss:$16 sps:$4 sm:$0xff]   ;;  %v5110_v48 = vld [vmem:[%s6498_s3 + $0x8c] ss:$16 sps:$4 sm:$0xff]  }
 0x4a5   :  { %4693 = vmatprep.subr.bf16.mxu0 %v5261_v0  ;;  %4713 = vmatprep.subr.bf16.mxu1 %v5261_v0 }
 0x4a8   :  { %4694 = vmatpush3.bf16.msra.mxu0 %v5095_v49  ;;  %4714 = vmatpush3.bf16.msra.mxu1 %v5096_v50  ;;  %v5111_v49 = vld [vmem:[%s6498_s3 + $0xa8] ss:$16 sps:$4 sm:$0xff]   ;;  %v5112_v50 = vld [vmem:[%s6498_s3 + $0xac] ss:$16 sps:$4 sm:$0xff]  }
 0x4a9   :  { %4695 = vmatprep.subr.bf16.mxu0 %v5261_v0  ;;  %4715 = vmatprep.subr.bf16.mxu1 %v5261_v0 }
 0x4ac   :  { %4696 = vmatpush3.bf16.msra.mxu0 %v5097_v51  ;;  %4716 = vmatpush3.bf16.msra.mxu1 %v5098_v52  ;;  %v5113_v51 = vld [vmem:[%s6498_s3 + $0xc8] ss:$16 sps:$4 sm:$0xff]   ;;  %v5114_v52 = vld [vmem:[%s6498_s3 + $0xcc] ss:$16 sps:$4 sm:$0xff]  }
 0x4ad   :  { %4697 = vmatprep.subr.bf16.mxu0 %v5261_v0  ;;  %4717 = vmatprep.subr.bf16.mxu1 %v5261_v0 }
 0x4b0   :  { %4698 = vmatpush3.bf16.msra.mxu0 %v5099_v53  ;;  %4718 = vmatpush3.bf16.msra.mxu1 %v5100_v54  ;;  %v5115_v53 = vld [vmem:[%s6498_s3 + $0xe8] ss:$16 sps:$4 sm:$0xff]   ;;  %v5116_v54 = vld [vmem:[%s6498_s3 + $0xec] ss:$16 sps:$4 sm:$0xff]  }
 0x4b1   :  { %4723 = vmatprep.subr.bf16.mxu0 %v5261_v0  ;;  %4743 = vmatprep.subr.bf16.mxu1 %v5261_v0 }
 0x545   :  { %v1968_v29 = vpop.f32.mrb[32].mxu0  ;;  %v2081_v55 = vpop.f32.mrb[32].mxu1 }
 0x546   :  { %v4621_v56 = vpop.f32.mrb[33].mxu0  ;;  %v4641_v57 = vpop.f32.mrb[33].mxu1  ;;  %v2087_v4 = vadd.f32 %v2081_v55, %v1982_v2  ;;  %v1974_v5 = vadd.f32 %v1968_v29, %v1869_v3  ;;  %v5117_v29 = vld [vmem:[%s6498_s3] ss:$16 sps:$4 sm:$0xff]   ;;  %v5118_v55 = vld [vmem:[%s6498_s3 + $0x4] ss:$16 sps:$4 sm:$0xff]  }
 0x547   :  { %v1971_v58 = vpop.f32.mrb[34].mxu0  ;;  %v2084_v59 = vpop.f32.mrb[34].mxu1  ;;  %v5119_v56 = vld [vmem:[%s6498_s3 + $0x20] ss:$16 sps:$4 sm:$0xff]   ;;  %v5120_v57 = vld [vmem:[%s6498_s3 + $0x24] ss:$16 sps:$4 sm:$0xff]  }
 0x548   :  { %v4622_v60 = vpop.f32.mrb[35].mxu0  ;;  %v4642_v61 = vpop.f32.mrb[35].mxu1  ;;  %v2088_v6 = vmul.f32 0.5, %v2087_v4  ;;  %v1975_v7 = vmul.f32 0.5, %v1974_v5  ;;  %v5121_v58 = vld [vmem:[%s6498_s3 + $0x40] ss:$16 sps:$4 sm:$0xff]  }
 0x549   :  { %v5122_v59 = vld [vmem:[%s6498_s3 + $0x44] ss:$16 sps:$4 sm:$0xff]   ;;  %v5123_v60 = vld [vmem:[%s6498_s3 + $0x60] ss:$16 sps:$4 sm:$0xff]  }
 0x54a   :  { %5221 = vtanh.f32 %v2088_v6  ;;  %v5124_v61 = vld [vmem:[%s6498_s3 + $0x64] ss:$16 sps:$4 sm:$0xff]   ;;  %v5127_v2 = vld [vmem:[%s6498_s3 + $0xa0] ss:$16 sps:$4 sm:$0xff]  }
 0x54b   :  { %5223 = vtanh.f32 %v1975_v7  ;;  %v5128_v3 = vld [vmem:[%s6498_s3 + $0xa4] ss:$16 sps:$4 sm:$0xff]   ;;  %v5129_v4 = vld [vmem:[%s6498_s3 + $0xc0] ss:$16 sps:$4 sm:$0xff]  }
 0x54c   :  { %v5130_v5 = vld [vmem:[%s6498_s3 + $0xc4] ss:$16 sps:$4 sm:$0xff]   ;;  %v5131_v6 = vld [vmem:[%s6498_s3 + $0xe0] ss:$16 sps:$4 sm:$0xff]  }
 0x54d   :  { %v5132_v7 = vld [vmem:[%s6498_s3 + $0xe4] ss:$16 sps:$4 sm:$0xff]  }
 0x554   :  { %v5222_v20 = vpop.eup %5221 }
 0x555   :  { %v5224_v23 = vpop.eup %5223  ;;  %v2090_v62 = vmul.f32 0.5, %v5222_v20 }
 0x556   :  { %v1977_v25 = vmul.f32 0.5, %v5224_v23 }
 0x557   :  { %v2091_v26 = vadd.f32 0.5, %v2090_v62  ;;  %v3891_v62 = vld [vmem:[%s6500_s0 + $0x58] sm:$0xff] }
 0x558   :  { %v1978_v27 = vadd.f32 0.5, %v1977_v25  ;;  %v2551_v25 = vunpack.c.l.bf16 %v3891_v62 }
 0x559   :  { %v2312_v30 = vmul.f32 %v2091_v26, %v5963_v15  ;;  %v5103_v15 = vld [vmem:[%s6498_s3 + $0x28] ss:$16 sps:$4 sm:$0xff]  }
 0x565   :  { %v2191_v11 = vpop.f32.mrb[36].mxu0  ;;  %v2301_v12 = vpop.f32.mrb[36].mxu1 }
 0x566   :  { %v2197_v13 = vadd.f32 %v2191_v11, %v2092_v9  ;;  %v4661_v14 = vpop.f32.mrb[37].mxu0  ;;  %v4681_v16 = vpop.f32.mrb[37].mxu1  ;;  %v2307_v17 = vadd.f32 %v2301_v12, %v2202_v10 }
 0x567   :  { %v2194_v18 = vpop.f32.mrb[38].mxu0  ;;  %v2304_v19 = vpop.f32.mrb[38].mxu1  ;;  %v3890_v16 = vld [vmem:[%s6500_s0 + $0x50] sm:$0xff] }
 0x568   :  { %5225 = vtanh.f32 %v2197_v13  ;;  %v4662_v21 = vpop.f32.mrb[39].mxu0  ;;  %v4682_v22 = vpop.f32.mrb[39].mxu1  ;;  %v2308_v24 = vmul.f32 0.5, %v2307_v17  ;;  %v2439_v17 = vrot.slane %v3890_v16, 4  ;;  %v2328_v19 = vunpack.c.l.bf16 %v3890_v16  ;;  %v5157_v16 = vld [vmem:[%s6498_s3 + $0x80] ss:$16 sps:$4 sm:$0xff]  }
 0x56a   :  { %5227 = vtanh.f32 %v2308_v24  ;;  %v2441_v18 = vunpack.c.l.bf16 %v2439_v17  ;;  %v2659_v24 = vrot.slane %v3891_v62, 4  ;;  %v5158_v17 = vld [vmem:[%s6498_s3 + $0x84] ss:$16 sps:$4 sm:$0xff]  }
 0x56c   :  { %v2661_v26 = vunpack.c.l.bf16 %v2659_v24 }
 0x572   :  { %v5226_v28 = vpop.eup %5225 }
 0x573   :  { %v2313_v31 = vmul.f32 %v5226_v28, %v1978_v27 }
 0x574   :  { %v5228_v33 = vpop.eup %5227 }
 0x575   :  { %v6112_v32 = vadd.f32 %v2313_v31, %v2312_v30  ;;  %v2310_v34 = vmul.f32 0.5, %v5228_v33 }
 0x577   :  { %5229 = vtanh.f32 %v6112_v32  ;;  %v2311_v35 = vadd.f32 0.5, %v2310_v34 }
 0x581   :  { %v5230_v36 = vpop.eup %5229 }
 0x582   :  { %v2316_v37 = vmul.f32 %v5230_v36, %v2311_v35 }
 0x584   :  { %v2319_v40 = vpack.c.bf16 %v2316_v37, %v2316_v37 }
 0x586   :  { %3889 = vst [vmem:[%s6502_s4 + $0x10] sm:$0xf] %v2319_v40  ;;  %4700 = vmatmul.mubr.bf16.vlgmr.msra.gmra.mrb[40].mxu0 %v2319_v40  ;;  %4720 = vmatmul.mubr.bf16.vlgmr.msra.gmra.mrb[40].mxu1 %v2319_v40 }
 0x587   :  { %4724 = vmatpush3.bf16.msra.mxu0 %v5101_v38  ;;  %4744 = vmatpush3.bf16.msra.mxu1 %v5102_v39 }
 0x588   :  { %4725 = vmatprep.subr.bf16.mxu0 %v5261_v0  ;;  %4745 = vmatprep.subr.bf16.mxu1 %v5261_v0 }
 0x589   :  { %4739 = vmatprep.mubr.msk.bf16.mxu0 %vm5262_vm0, %v5261_v0  ;;  %4759 = vmatprep.mubr.msk.bf16.mxu1 %vm5262_vm0, %v5261_v0 }
 0x58b   :  { %4726 = vmatpush3.bf16.msra.mxu0 %v5103_v15  ;;  %4746 = vmatpush3.bf16.msra.mxu1 %v5104_v41 }
 0x58c   :  { %4727 = vmatprep.subr.bf16.mxu0 %v5261_v0  ;;  %4747 = vmatprep.subr.bf16.mxu1 %v5261_v0 }
 0x58f   :  { %4728 = vmatpush3.bf16.msra.mxu0 %v5105_v42  ;;  %4748 = vmatpush3.bf16.msra.mxu1 %v5106_v43 }
 0x590   :  { %4729 = vmatprep.subr.bf16.mxu0 %v5261_v0  ;;  %4749 = vmatprep.subr.bf16.mxu1 %v5261_v0 }
 0x593   :  { %4730 = vmatpush3.bf16.msra.mxu0 %v5107_v44  ;;  %4750 = vmatpush3.bf16.msra.mxu1 %v5108_v45 }
 0x594   :  { %4731 = vmatprep.subr.bf16.mxu0 %v5261_v0  ;;  %4751 = vmatprep.subr.bf16.mxu1 %v5261_v0 }
 0x597   :  { %4732 = vmatpush3.bf16.msra.mxu0 %v5109_v47  ;;  %4752 = vmatpush3.bf16.msra.mxu1 %v5110_v48 }
 0x598   :  { %4733 = vmatprep.subr.bf16.mxu0 %v5261_v0  ;;  %4753 = vmatprep.subr.bf16.mxu1 %v5261_v0 }
 0x59b   :  { %4734 = vmatpush3.bf16.msra.mxu0 %v5111_v49  ;;  %4754 = vmatpush3.bf16.msra.mxu1 %v5112_v50 }
 0x59c   :  { %4735 = vmatprep.subr.bf16.mxu0 %v5261_v0  ;;  %4755 = vmatprep.subr.bf16.mxu1 %v5261_v0 }
 0x59f   :  { %4736 = vmatpush3.bf16.msra.mxu0 %v5113_v51  ;;  %4756 = vmatpush3.bf16.msra.mxu1 %v5114_v52 }
 0x5a0   :  { %4737 = vmatprep.subr.bf16.mxu0 %v5261_v0  ;;  %4757 = vmatprep.subr.bf16.mxu1 %v5261_v0 }
 0x5a3   :  { %4738 = vmatpush3.bf16.msra.mxu0 %v5115_v53  ;;  %4758 = vmatpush3.bf16.msra.mxu1 %v5116_v54 }
 0x5a4   :  { %4763 = vmatprep.subr.bf16.mxu0 %v5261_v0  ;;  %4783 = vmatprep.subr.bf16.mxu1 %v5261_v0 }
 0x5a6   :  { %4740 = vmatmul.mubr.bf16.vlgmr.msra.gmra.mrb[44].mxu0 %v2319_v40  ;;  %4760 = vmatmul.mubr.bf16.vlgmr.msra.gmra.mrb[44].mxu1 %v2319_v40 }
 0x5a7   :  { %4779 = vmatprep.mubr.msk.bf16.mxu0 %vm5262_vm0, %v5261_v0  ;;  %4799 = vmatprep.mubr.msk.bf16.mxu1 %vm5262_vm0, %v5261_v0 }
 0x5a8   :  { %4764 = vmatpush3.bf16.msra.mxu0 %v5117_v29  ;;  %4784 = vmatpush3.bf16.msra.mxu1 %v5118_v55  ;;  %v5133_v29 = vld [vmem:[%s6498_s3 + $0x8] ss:$16 sps:$4 sm:$0xff]   ;;  %v5134_v55 = vld [vmem:[%s6498_s3 + $0xc] ss:$16 sps:$4 sm:$0xff]  }
 0x5a9   :  { %4765 = vmatprep.subr.bf16.mxu0 %v5261_v0  ;;  %4785 = vmatprep.subr.bf16.mxu1 %v5261_v0 }
 0x5ac   :  { %4766 = vmatpush3.bf16.msra.mxu0 %v5119_v56  ;;  %4786 = vmatpush3.bf16.msra.mxu1 %v5120_v57  ;;  %v5136_v57 = vld [vmem:[%s6498_s3 + $0x2c] ss:$16 sps:$4 sm:$0xff]  }
 0x5ad   :  { %4767 = vmatprep.subr.bf16.mxu0 %v5261_v0  ;;  %4787 = vmatprep.subr.bf16.mxu1 %v5261_v0 }
 0x5b0   :  { %4768 = vmatpush3.bf16.msra.mxu0 %v5121_v58  ;;  %4788 = vmatpush3.bf16.msra.mxu1 %v5122_v59  ;;  %v5137_v58 = vld [vmem:[%s6498_s3 + $0x48] ss:$16 sps:$4 sm:$0xff]   ;;  %v5138_v59 = vld [vmem:[%s6498_s3 + $0x4c] ss:$16 sps:$4 sm:$0xff]  }
 0x5b1   :  { %4769 = vmatprep.subr.bf16.mxu0 %v5261_v0  ;;  %4789 = vmatprep.subr.bf16.mxu1 %v5261_v0 }
 0x5b4   :  { %4770 = vmatpush3.bf16.msra.mxu0 %v5123_v60  ;;  %4790 = vmatpush3.bf16.msra.mxu1 %v5124_v61  ;;  %v5139_v60 = vld [vmem:[%s6498_s3 + $0x68] ss:$16 sps:$4 sm:$0xff]   ;;  %v5140_v61 = vld [vmem:[%s6498_s3 + $0x6c] ss:$16 sps:$4 sm:$0xff]  }
 0x5b5   :  { %4771 = vmatprep.subr.bf16.mxu0 %v5261_v0  ;;  %4791 = vmatprep.subr.bf16.mxu1 %v5261_v0 }
 0x5b8   :  { %4772 = vmatpush3.bf16.msra.mxu0 %v5125_v63  ;;  %4792 = vmatpush3.bf16.msra.mxu1 %v5126_v1  ;;  %v5141_v63 = vld [vmem:[%s6498_s3 + $0x88] ss:$16 sps:$4 sm:$0xff]   ;;  %v5142_v1 = vld [vmem:[%s6498_s3 + $0x8c] ss:$16 sps:$4 sm:$0xff]  }
 0x5b9   :  { %4773 = vmatprep.subr.bf16.mxu0 %v5261_v0  ;;  %4793 = vmatprep.subr.bf16.mxu1 %v5261_v0 }
 0x5bc   :  { %4774 = vmatpush3.bf16.msra.mxu0 %v5127_v2  ;;  %4794 = vmatpush3.bf16.msra.mxu1 %v5128_v3  ;;  %v5143_v2 = vld [vmem:[%s6498_s3 + $0xa8] ss:$16 sps:$4 sm:$0xff]   ;;  %v5144_v3 = vld [vmem:[%s6498_s3 + $0xac] ss:$16 sps:$4 sm:$0xff]  }
 0x5bd   :  { %4775 = vmatprep.subr.bf16.mxu0 %v5261_v0  ;;  %4795 = vmatprep.subr.bf16.mxu1 %v5261_v0 }
 0x5c0   :  { %4776 = vmatpush3.bf16.msra.mxu0 %v5129_v4  ;;  %4796 = vmatpush3.bf16.msra.mxu1 %v5130_v5  ;;  %v5145_v4 = vld [vmem:[%s6498_s3 + $0xc8] ss:$16 sps:$4 sm:$0xff]   ;;  %v5146_v5 = vld [vmem:[%s6498_s3 + $0xcc] ss:$16 sps:$4 sm:$0xff]  }
 0x5c1   :  { %4777 = vmatprep.subr.bf16.mxu0 %v5261_v0  ;;  %4797 = vmatprep.subr.bf16.mxu1 %v5261_v0 }
 0x5c4   :  { %4778 = vmatpush3.bf16.msra.mxu0 %v5131_v6  ;;  %4798 = vmatpush3.bf16.msra.mxu1 %v5132_v7  ;;  %v5147_v6 = vld [vmem:[%s6498_s3 + $0xe8] ss:$16 sps:$4 sm:$0xff]   ;;  %v5148_v7 = vld [vmem:[%s6498_s3 + $0xec] ss:$16 sps:$4 sm:$0xff]  }
 0x5c5   :  { %4803 = vmatprep.subr.bf16.mxu0 %v5261_v0  ;;  %4823 = vmatprep.subr.bf16.mxu1 %v5261_v0 }
 0x659   :  { %v2427_v46 = vpop.f32.mrb[40].mxu0  ;;  %v2540_v8 = vpop.f32.mrb[40].mxu1 }
 0x65a   :  { %v4701_v9 = vpop.f32.mrb[41].mxu0  ;;  %v4721_v10 = vpop.f32.mrb[41].mxu1  ;;  %v2546_v20 = vadd.f32 %v2540_v8, %v2441_v18  ;;  %v2433_v21 = vadd.f32 %v2427_v46, %v2328_v19  ;;  %v5149_v46 = vld [vmem:[%s6498_s3] ss:$16 sps:$4 sm:$0xff]   ;;  %v5150_v8 = vld [vmem:[%s6498_s3 + $0x4] ss:$16 sps:$4 sm:$0xff]  }
 0x65b   :  { %v2430_v11 = vpop.f32.mrb[42].mxu0  ;;  %v2543_v12 = vpop.f32.mrb[42].mxu1  ;;  %v5151_v9 = vld [vmem:[%s6498_s3 + $0x20] ss:$16 sps:$4 sm:$0xff]   ;;  %v5152_v10 = vld [vmem:[%s6498_s3 + $0x24] ss:$16 sps:$4 sm:$0xff]  }
 0x65c   :  { %v4702_v13 = vpop.f32.mrb[43].mxu0  ;;  %v4722_v14 = vpop.f32.mrb[43].mxu1  ;;  %v2547_v22 = vmul.f32 0.5, %v2546_v20  ;;  %v2434_v23 = vmul.f32 0.5, %v2433_v21  ;;  %v5153_v11 = vld [vmem:[%s6498_s3 + $0x40] ss:$16 sps:$4 sm:$0xff]  }
 0x65d   :  { %v5154_v12 = vld [vmem:[%s6498_s3 + $0x44] ss:$16 sps:$4 sm:$0xff]   ;;  %v5155_v13 = vld [vmem:[%s6498_s3 + $0x60] ss:$16 sps:$4 sm:$0xff]  }
 0x65e   :  { %5231 = vtanh.f32 %v2547_v22  ;;  %v5156_v14 = vld [vmem:[%s6498_s3 + $0x64] ss:$16 sps:$4 sm:$0xff]   ;;  %v5159_v18 = vld [vmem:[%s6498_s3 + $0xa0] ss:$16 sps:$4 sm:$0xff]  }
 0x65f   :  { %5233 = vtanh.f32 %v2434_v23  ;;  %v5160_v19 = vld [vmem:[%s6498_s3 + $0xa4] ss:$16 sps:$4 sm:$0xff]   ;;  %v5161_v20 = vld [vmem:[%s6498_s3 + $0xc0] ss:$16 sps:$4 sm:$0xff]  }
 0x660   :  { %v5162_v21 = vld [vmem:[%s6498_s3 + $0xc4] ss:$16 sps:$4 sm:$0xff]   ;;  %v5163_v22 = vld [vmem:[%s6498_s3 + $0xe0] ss:$16 sps:$4 sm:$0xff]  }
 0x661   :  { %v5164_v23 = vld [vmem:[%s6498_s3 + $0xe4] ss:$16 sps:$4 sm:$0xff]  }
 0x668   :  { %v5232_v37 = vpop.eup %5231 }
 0x669   :  { %v5234_v40 = vpop.eup %5233  ;;  %v2549_v15 = vmul.f32 0.5, %v5232_v37 }
 0x66a   :  { %v2436_v42 = vmul.f32 0.5, %v5234_v40 }
 0x66b   :  { %v2550_v43 = vadd.f32 0.5, %v2549_v15  ;;  %v3926_v15 = vld [vmem:[%s6500_s0 + $0x68] sm:$0xff] }
 0x66c   :  { %v2437_v44 = vadd.f32 0.5, %v2436_v42  ;;  %v3010_v42 = vunpack.c.l.bf16 %v3926_v15 }
 0x66d   :  { %v2771_v47 = vmul.f32 %v2550_v43, %v6112_v32  ;;  %v5135_v32 = vld [vmem:[%s6498_s3 + $0x28] ss:$16 sps:$4 sm:$0xff]  }
 0x679   :  { %v2650_v27 = vpop.f32.mrb[44].mxu0  ;;  %v2760_v28 = vpop.f32.mrb[44].mxu1 }
 0x67a   :  { %v2656_v30 = vadd.f32 %v2650_v27, %v2551_v25  ;;  %v4741_v31 = vpop.f32.mrb[45].mxu0  ;;  %v4761_v33 = vpop.f32.mrb[45].mxu1  ;;  %v2766_v34 = vadd.f32 %v2760_v28, %v2661_v26 }
 0x67b   :  { %v2653_v35 = vpop.f32.mrb[46].mxu0  ;;  %v2763_v36 = vpop.f32.mrb[46].mxu1  ;;  %v3925_v33 = vld [vmem:[%s6500_s0 + $0x60] sm:$0xff] }
 0x67c   :  { %5235 = vtanh.f32 %v2656_v30  ;;  %v4742_v38 = vpop.f32.mrb[47].mxu0  ;;  %v4762_v39 = vpop.f32.mrb[47].mxu1  ;;  %v2767_v41 = vmul.f32 0.5, %v2766_v34  ;;  %v2898_v34 = vrot.slane %v3925_v33, 4  ;;  %v2787_v36 = vunpack.c.l.bf16 %v3925_v33  ;;  %v3960_v33 = vld [vmem:[%s6500_s0 + $0x70] sm:$0xff] }
 0x67e   :  { %5237 = vtanh.f32 %v2767_v41  ;;  %v2900_v35 = vunpack.c.l.bf16 %v2898_v34  ;;  %v3118_v41 = vrot.slane %v3926_v15, 4  ;;  %v3357_v34 = vrot.slane %v3960_v33, 4 }
 0x680   :  { %v3120_v43 = vunpack.c.l.bf16 %v3118_v41 }
 0x686   :  { %v5236_v45 = vpop.eup %5235 }
 0x687   :  { %v2772_v48 = vmul.f32 %v5236_v45, %v2437_v44 }
 0x688   :  { %v5238_v50 = vpop.eup %5237 }
 0x689   :  { %v6261_v49 = vadd.f32 %v2772_v48, %v2771_v47  ;;  %v2769_v51 = vmul.f32 0.5, %v5238_v50 }
 0x68b   :  { %5239 = vtanh.f32 %v6261_v49  ;;  %v2770_v52 = vadd.f32 0.5, %v2769_v51 }
 0x695   :  { %v5240_v53 = vpop.eup %5239 }
 0x696   :  { %v2775_v54 = vmul.f32 %v5240_v53, %v2770_v52 }
 0x698   :  { %v2778_v56 = vpack.c.bf16 %v2775_v54, %v2775_v54 }
 0x69a   :  { %3924 = vst [vmem:[%s6502_s4 + $0x14] sm:$0xf] %v2778_v56  ;;  %4780 = vmatmul.mubr.bf16.vlgmr.msra.gmra.mrb[48].mxu0 %v2778_v56  ;;  %4800 = vmatmul.mubr.bf16.vlgmr.msra.gmra.mrb[48].mxu1 %v2778_v56 }
 0x69b   :  { %4804 = vmatpush3.bf16.msra.mxu0 %v5133_v29  ;;  %4824 = vmatpush3.bf16.msra.mxu1 %v5134_v55 }
 0x69c   :  { %4805 = vmatprep.subr.bf16.mxu0 %v5261_v0  ;;  %4825 = vmatprep.subr.bf16.mxu1 %v5261_v0 }
 0x69d   :  { %4819 = vmatprep.mubr.msk.bf16.mxu0 %vm5262_vm0, %v5261_v0  ;;  %4839 = vmatprep.mubr.msk.bf16.mxu1 %vm5262_vm0, %v5261_v0 }
 0x69f   :  { %4806 = vmatpush3.bf16.msra.mxu0 %v5135_v32  ;;  %4826 = vmatpush3.bf16.msra.mxu1 %v5136_v57 }
 0x6a0   :  { %4807 = vmatprep.subr.bf16.mxu0 %v5261_v0  ;;  %4827 = vmatprep.subr.bf16.mxu1 %v5261_v0 }
 0x6a3   :  { %4808 = vmatpush3.bf16.msra.mxu0 %v5137_v58  ;;  %4828 = vmatpush3.bf16.msra.mxu1 %v5138_v59 }
 0x6a4   :  { %4809 = vmatprep.subr.bf16.mxu0 %v5261_v0  ;;  %4829 = vmatprep.subr.bf16.mxu1 %v5261_v0 }
 0x6a7   :  { %4810 = vmatpush3.bf16.msra.mxu0 %v5139_v60  ;;  %4830 = vmatpush3.bf16.msra.mxu1 %v5140_v61 }
 0x6a8   :  { %4811 = vmatprep.subr.bf16.mxu0 %v5261_v0  ;;  %4831 = vmatprep.subr.bf16.mxu1 %v5261_v0 }
 0x6ab   :  { %4812 = vmatpush3.bf16.msra.mxu0 %v5141_v63  ;;  %4832 = vmatpush3.bf16.msra.mxu1 %v5142_v1 }
 0x6ac   :  { %4813 = vmatprep.subr.bf16.mxu0 %v5261_v0  ;;  %4833 = vmatprep.subr.bf16.mxu1 %v5261_v0 }
 0x6af   :  { %4814 = vmatpush3.bf16.msra.mxu0 %v5143_v2  ;;  %4834 = vmatpush3.bf16.msra.mxu1 %v5144_v3 }
 0x6b0   :  { %4815 = vmatprep.subr.bf16.mxu0 %v5261_v0  ;;  %4835 = vmatprep.subr.bf16.mxu1 %v5261_v0 }
 0x6b3   :  { %4816 = vmatpush3.bf16.msra.mxu0 %v5145_v4  ;;  %4836 = vmatpush3.bf16.msra.mxu1 %v5146_v5 }
 0x6b4   :  { %4817 = vmatprep.subr.bf16.mxu0 %v5261_v0  ;;  %4837 = vmatprep.subr.bf16.mxu1 %v5261_v0 }
 0x6b7   :  { %4818 = vmatpush3.bf16.msra.mxu0 %v5147_v6  ;;  %4838 = vmatpush3.bf16.msra.mxu1 %v5148_v7 }
 0x6b8   :  { %4843 = vmatprep.subr.bf16.mxu0 %v5261_v0  ;;  %4863 = vmatprep.subr.bf16.mxu1 %v5261_v0 }
 0x6ba   :  { %4820 = vmatmul.mubr.bf16.vlgmr.msra.gmra.mrb[52].mxu0 %v2778_v56  ;;  %4840 = vmatmul.mubr.bf16.vlgmr.msra.gmra.mrb[52].mxu1 %v2778_v56 }
 0x6bb   :  { %4859 = vmatprep.mubr.msk.bf16.mxu0 %vm5262_vm0, %v5261_v0  ;;  %4879 = vmatprep.mubr.msk.bf16.mxu1 %vm5262_vm0, %v5261_v0 }
 0x6bc   :  { %4844 = vmatpush3.bf16.msra.mxu0 %v5149_v46  ;;  %4864 = vmatpush3.bf16.msra.mxu1 %v5150_v8  ;;  %v5165_v46 = vld [vmem:[%s6498_s3 + $0x8] ss:$16 sps:$4 sm:$0xff]   ;;  %v5166_v8 = vld [vmem:[%s6498_s3 + $0xc] ss:$16 sps:$4 sm:$0xff]  }
 0x6bd   :  { %4845 = vmatprep.subr.bf16.mxu0 %v5261_v0  ;;  %4865 = vmatprep.subr.bf16.mxu1 %v5261_v0 }
 0x6c0   :  { %4846 = vmatpush3.bf16.msra.mxu0 %v5151_v9  ;;  %4866 = vmatpush3.bf16.msra.mxu1 %v5152_v10  ;;  %v5168_v10 = vld [vmem:[%s6498_s3 + $0x2c] ss:$16 sps:$4 sm:$0xff]  }
 0x6c1   :  { %4847 = vmatprep.subr.bf16.mxu0 %v5261_v0  ;;  %4867 = vmatprep.subr.bf16.mxu1 %v5261_v0 }
 0x6c4   :  { %4848 = vmatpush3.bf16.msra.mxu0 %v5153_v11  ;;  %4868 = vmatpush3.bf16.msra.mxu1 %v5154_v12  ;;  %v5169_v11 = vld [vmem:[%s6498_s3 + $0x48] ss:$16 sps:$4 sm:$0xff]   ;;  %v5170_v12 = vld [vmem:[%s6498_s3 + $0x4c] ss:$16 sps:$4 sm:$0xff]  }
 0x6c5   :  { %4849 = vmatprep.subr.bf16.mxu0 %v5261_v0  ;;  %4869 = vmatprep.subr.bf16.mxu1 %v5261_v0 }
 0x6c8   :  { %4850 = vmatpush3.bf16.msra.mxu0 %v5155_v13  ;;  %4870 = vmatpush3.bf16.msra.mxu1 %v5156_v14  ;;  %v5171_v13 = vld [vmem:[%s6498_s3 + $0x68] ss:$16 sps:$4 sm:$0xff]   ;;  %v5172_v14 = vld [vmem:[%s6498_s3 + $0x6c] ss:$16 sps:$4 sm:$0xff]  }
 0x6c9   :  { %4851 = vmatprep.subr.bf16.mxu0 %v5261_v0  ;;  %4871 = vmatprep.subr.bf16.mxu1 %v5261_v0 }
 0x6cc   :  { %4852 = vmatpush3.bf16.msra.mxu0 %v5157_v16  ;;  %4872 = vmatpush3.bf16.msra.mxu1 %v5158_v17  ;;  %v5173_v16 = vld [vmem:[%s6498_s3 + $0x88] ss:$16 sps:$4 sm:$0xff]   ;;  %v5174_v17 = vld [vmem:[%s6498_s3 + $0x8c] ss:$16 sps:$4 sm:$0xff]  }
 0x6cd   :  { %4853 = vmatprep.subr.bf16.mxu0 %v5261_v0  ;;  %4873 = vmatprep.subr.bf16.mxu1 %v5261_v0 }
 0x6d0   :  { %4854 = vmatpush3.bf16.msra.mxu0 %v5159_v18  ;;  %4874 = vmatpush3.bf16.msra.mxu1 %v5160_v19  ;;  %v5175_v18 = vld [vmem:[%s6498_s3 + $0xa8] ss:$16 sps:$4 sm:$0xff]   ;;  %v5176_v19 = vld [vmem:[%s6498_s3 + $0xac] ss:$16 sps:$4 sm:$0xff]  }
 0x6d1   :  { %4855 = vmatprep.subr.bf16.mxu0 %v5261_v0  ;;  %4875 = vmatprep.subr.bf16.mxu1 %v5261_v0 }
 0x6d4   :  { %4856 = vmatpush3.bf16.msra.mxu0 %v5161_v20  ;;  %4876 = vmatpush3.bf16.msra.mxu1 %v5162_v21  ;;  %v5177_v20 = vld [vmem:[%s6498_s3 + $0xc8] ss:$16 sps:$4 sm:$0xff]   ;;  %v5178_v21 = vld [vmem:[%s6498_s3 + $0xcc] ss:$16 sps:$4 sm:$0xff]  }
 0x6d5   :  { %4857 = vmatprep.subr.bf16.mxu0 %v5261_v0  ;;  %4877 = vmatprep.subr.bf16.mxu1 %v5261_v0 }
 0x6d8   :  { %4858 = vmatpush3.bf16.msra.mxu0 %v5163_v22  ;;  %4878 = vmatpush3.bf16.msra.mxu1 %v5164_v23  ;;  %v5179_v22 = vld [vmem:[%s6498_s3 + $0xe8] ss:$16 sps:$4 sm:$0xff]   ;;  %v5180_v23 = vld [vmem:[%s6498_s3 + $0xec] ss:$16 sps:$4 sm:$0xff]  }
 0x6d9   :  { %4883 = vmatprep.subr.bf16.mxu0 %v5261_v0  ;;  %4903 = vmatprep.subr.bf16.mxu1 %v5261_v0 }
 0x76d   :  { %v2886_v62 = vpop.f32.mrb[48].mxu0  ;;  %v2999_v24 = vpop.f32.mrb[48].mxu1 }
 0x76e   :  { %v4781_v25 = vpop.f32.mrb[49].mxu0  ;;  %v4801_v26 = vpop.f32.mrb[49].mxu1  ;;  %v3005_v37 = vadd.f32 %v2999_v24, %v2900_v35  ;;  %v2892_v38 = vadd.f32 %v2886_v62, %v2787_v36  ;;  %v3359_v35 = vunpack.c.l.bf16 %v3357_v34  ;;  %v3246_v36 = vunpack.c.l.bf16 %v3960_v33 }
 0x76f   :  { %v2889_v27 = vpop.f32.mrb[50].mxu0  ;;  %v3002_v28 = vpop.f32.mrb[50].mxu1 }
 0x770   :  { %v4782_v30 = vpop.f32.mrb[51].mxu0  ;;  %v4802_v31 = vpop.f32.mrb[51].mxu1  ;;  %v3006_v39 = vmul.f32 0.5, %v3005_v37  ;;  %v2893_v40 = vmul.f32 0.5, %v2892_v38 }
 0x772   :  { %5241 = vtanh.f32 %v3006_v39 }
 0x773   :  { %5243 = vtanh.f32 %v2893_v40  ;;  %v3961_v40 = vld [vmem:[%s6500_s0 + $0x78] sm:$0xff] }
 0x774   :  { %v3577_v15 = vrot.slane %v3961_v40, 4  ;;  %v3469_v41 = vunpack.c.l.bf16 %v3961_v40 }
 0x77c   :  { %v5242_v54 = vpop.eup %5241 }
 0x77d   :  { %v5244_v56 = vpop.eup %5243  ;;  %v3008_v32 = vmul.f32 0.5, %v5242_v54 }
 0x77e   :  { %v2895_v58 = vmul.f32 0.5, %v5244_v56 }
 0x77f   :  { %v3009_v59 = vadd.f32 0.5, %v3008_v32 }
 0x780   :  { %v2896_v60 = vadd.f32 0.5, %v2895_v58 }
 0x781   :  { %v3230_v63 = vmul.f32 %v3009_v59, %v6261_v49  ;;  %v5167_v49 = vld [vmem:[%s6498_s3 + $0x28] ss:$16 sps:$4 sm:$0xff]  }
 0x78d   :  { %v3109_v44 = vpop.f32.mrb[52].mxu0  ;;  %v3219_v45 = vpop.f32.mrb[52].mxu1 }
 0x78e   :  { %v3115_v47 = vadd.f32 %v3109_v44, %v3010_v42  ;;  %v4821_v48 = vpop.f32.mrb[53].mxu0  ;;  %v4841_v50 = vpop.f32.mrb[53].mxu1  ;;  %v3225_v51 = vadd.f32 %v3219_v45, %v3120_v43  ;;  %v3579_v42 = vunpack.c.l.bf16 %v3577_v15 }
 0x78f   :  { %v3112_v52 = vpop.f32.mrb[54].mxu0  ;;  %v3222_v53 = vpop.f32.mrb[54].mxu1 }
 0x790   :  { %5245 = vtanh.f32 %v3115_v47  ;;  %v4822_v29 = vpop.f32.mrb[55].mxu0  ;;  %v4842_v55 = vpop.f32.mrb[55].mxu1  ;;  %v3226_v57 = vmul.f32 0.5, %v3225_v51 }
 0x792   :  { %5247 = vtanh.f32 %v3226_v57 }
 0x79a   :  { %v5246_v61 = vpop.eup %5245 }
 0x79b   :  { %v3231_v1 = vmul.f32 %v5246_v61, %v2896_v60 }
 0x79c   :  { %v5248_v3 = vpop.eup %5247 }
 0x79d   :  { %v6410_v2 = vadd.f32 %v3231_v1, %v3230_v63  ;;  %v3228_v4 = vmul.f32 0.5, %v5248_v3 }
 0x79f   :  { %5249 = vtanh.f32 %v6410_v2  ;;  %v3229_v5 = vadd.f32 0.5, %v3228_v4 }
 0x7a9   :  { %v5250_v6 = vpop.eup %5249 }
 0x7aa   :  { %v3234_v7 = vmul.f32 %v5250_v6, %v3229_v5 }
 0x7ac   :  { %v3237_v9 = vpack.c.bf16 %v3234_v7, %v3234_v7 }
 0x7ae   :  { %3959 = vst [vmem:[%s6502_s4 + $0x18] sm:$0xf] %v3237_v9  ;;  %4860 = vmatmul.mubr.bf16.vlgmr.msra.gmra.mrb[56].mxu0 %v3237_v9  ;;  %4880 = vmatmul.mubr.bf16.vlgmr.msra.gmra.mrb[56].mxu1 %v3237_v9 }
 0x7af   :  { %4884 = vmatpush3.bf16.msra.mxu0 %v5165_v46  ;;  %4904 = vmatpush3.bf16.msra.mxu1 %v5166_v8 }
 0x7b0   :  { %4885 = vmatprep.subr.bf16.mxu0 %v5261_v0  ;;  %4905 = vmatprep.subr.bf16.mxu1 %v5261_v0 }
 0x7b1   :  { %4899 = vmatprep.mubr.msk.bf16.mxu0 %vm5262_vm0, %v5261_v0  ;;  %4919 = vmatprep.mubr.msk.bf16.mxu1 %vm5262_vm0, %v5261_v0 }
 0x7b3   :  { %4886 = vmatpush3.bf16.msra.mxu0 %v5167_v49  ;;  %4906 = vmatpush3.bf16.msra.mxu1 %v5168_v10 }
 0x7b4   :  { %4887 = vmatprep.subr.bf16.mxu0 %v5261_v0  ;;  %4907 = vmatprep.subr.bf16.mxu1 %v5261_v0 }
 0x7b7   :  { %4888 = vmatpush3.bf16.msra.mxu0 %v5169_v11  ;;  %4908 = vmatpush3.bf16.msra.mxu1 %v5170_v12 }
 0x7b8   :  { %4889 = vmatprep.subr.bf16.mxu0 %v5261_v0  ;;  %4909 = vmatprep.subr.bf16.mxu1 %v5261_v0 }
 0x7bb   :  { %4890 = vmatpush3.bf16.msra.mxu0 %v5171_v13  ;;  %4910 = vmatpush3.bf16.msra.mxu1 %v5172_v14 }
 0x7bc   :  { %4891 = vmatprep.subr.bf16.mxu0 %v5261_v0  ;;  %4911 = vmatprep.subr.bf16.mxu1 %v5261_v0 }
 0x7bf   :  { %4892 = vmatpush3.bf16.msra.mxu0 %v5173_v16  ;;  %4912 = vmatpush3.bf16.msra.mxu1 %v5174_v17 }
 0x7c0   :  { %4893 = vmatprep.subr.bf16.mxu0 %v5261_v0  ;;  %4913 = vmatprep.subr.bf16.mxu1 %v5261_v0 }
 0x7c3   :  { %4894 = vmatpush3.bf16.msra.mxu0 %v5175_v18  ;;  %4914 = vmatpush3.bf16.msra.mxu1 %v5176_v19 }
 0x7c4   :  { %4895 = vmatprep.subr.bf16.mxu0 %v5261_v0  ;;  %4915 = vmatprep.subr.bf16.mxu1 %v5261_v0 }
 0x7c7   :  { %4896 = vmatpush3.bf16.msra.mxu0 %v5177_v20  ;;  %4916 = vmatpush3.bf16.msra.mxu1 %v5178_v21 }
 0x7c8   :  { %4897 = vmatprep.subr.bf16.mxu0 %v5261_v0  ;;  %4917 = vmatprep.subr.bf16.mxu1 %v5261_v0 }
 0x7cb   :  { %4898 = vmatpush3.bf16.msra.mxu0 %v5179_v22  ;;  %4918 = vmatpush3.bf16.msra.mxu1 %v5180_v23 }
 0x7ce   :  { %4900 = vmatmul.mubr.bf16.vlgmr.msra.gmra.mrb[60].mxu0 %v3237_v9  ;;  %4920 = vmatmul.mubr.bf16.vlgmr.msra.gmra.mrb[60].mxu1 %v3237_v9 }
 0x881   :  { %v3345_v62 = vpop.f32.mrb[56].mxu0  ;;  %v3458_v24 = vpop.f32.mrb[56].mxu1 }
 0x882   :  { %v4861_v25 = vpop.f32.mrb[57].mxu0  ;;  %v4881_v26 = vpop.f32.mrb[57].mxu1  ;;  %v3464_v0 = vadd.f32 %v3458_v24, %v3359_v35  ;;  %v3351_v37 = vadd.f32 %v3345_v62, %v3246_v36 }
 0x883   :  { %v3348_v27 = vpop.f32.mrb[58].mxu0  ;;  %v3461_v28 = vpop.f32.mrb[58].mxu1 }
 0x884   :  { %v4862_v30 = vpop.f32.mrb[59].mxu0  ;;  %v4882_v31 = vpop.f32.mrb[59].mxu1  ;;  %v3465_v38 = vmul.f32 0.5, %v3464_v0  ;;  %v3352_v39 = vmul.f32 0.5, %v3351_v37 }
 0x886   :  { %5251 = vtanh.f32 %v3465_v38 }
 0x887   :  { %5253 = vtanh.f32 %v3352_v39 }
 0x890   :  { %v5252_v53 = vpop.eup %5251 }
 0x891   :  { %v5254_v55 = vpop.eup %5253  ;;  %v3467_v56 = vmul.f32 0.5, %v5252_v53 }
 0x892   :  { %v3354_v57 = vmul.f32 0.5, %v5254_v55 }
 0x893   :  { %v3468_v58 = vadd.f32 0.5, %v3467_v56 }
 0x894   :  { %v3355_v59 = vadd.f32 0.5, %v3354_v57 }
 0x895   :  { %v3689_v61 = vmul.f32 %v3468_v58, %v6410_v2 }
 0x8a1   :  { %v3568_v43 = vpop.f32.mrb[60].mxu0  ;;  %v3678_v44 = vpop.f32.mrb[60].mxu1 }
 0x8a2   :  { %v3574_v45 = vadd.f32 %v3568_v43, %v3469_v41  ;;  %v4901_v47 = vpop.f32.mrb[61].mxu0  ;;  %v4921_v48 = vpop.f32.mrb[61].mxu1  ;;  %v3684_v50 = vadd.f32 %v3678_v44, %v3579_v42 }
 0x8a3   :  { %v3571_v51 = vpop.f32.mrb[62].mxu0  ;;  %v3681_v52 = vpop.f32.mrb[62].mxu1 }
 0x8a4   :  { %5255 = vtanh.f32 %v3574_v45  ;;  %v4902_v54 = vpop.f32.mrb[63].mxu0  ;;  %v4922_v29 = vpop.f32.mrb[63].mxu1  ;;  %v3685_v32 = vmul.f32 0.5, %v3684_v50 }
 0x8a6   :  { %5257 = vtanh.f32 %v3685_v32 }
 0x8ae   :  { %v5256_v60 = vpop.eup %5255 }
 0x8af   :  { %v3690_v63 = vmul.f32 %v5256_v60, %v3355_v59 }
 0x8b0   :  { %v5258_v3 = vpop.eup %5257 }
 0x8b1   :  { %v3691_v1 = vadd.f32 %v3690_v63, %v3689_v61  ;;  %v3687_v4 = vmul.f32 0.5, %v5258_v3 }
 0x8b3   :  { %5259 = vtanh.f32 %v3691_v1  ;;  %3705 = vst [vmem:[%s6503_s6] sm:$0xff] %v3691_v1  ;;  %v3688_v5 = vadd.f32 0.5, %v3687_v4 }
 0x8bd   :  { %v5260_v6 = vpop.eup %5259 }
 0x8be   :  { %v3693_v7 = vmul.f32 %v5260_v6, %v3688_v5 }
 0x8c0   :  { %v3696_v46 = vpack.c.bf16 %v3693_v7, %v3693_v7  ;;  %3703 = vst [vmem:[%s6504_s5] sm:$0xff] %v3693_v7 }
 0x8c2   :  { %3994 = vst [vmem:[%s6502_s4 + $0x1c] sm:$0xf] %v3696_v46 }

</bundles_post_ra>
